<compile_context>
chip_gen: v5e
topology: v5e:2x2
jax: 0.10.0
libtpu: 0.0.40
codegen_flags: <defaults>
</compile_context>

<pallas_src>
import functools
import math

import jax
import jax.numpy as jnp
from jax.experimental import pallas as pl
from jax.experimental.pallas import tpu as pltpu


# ---------------------------------------------------------------------------
# Config (small, synthetic)
# ---------------------------------------------------------------------------
VOCAB = 128
HIDDEN = 128
NUM_HEADS = 4
HEAD_DIM = HIDDEN // NUM_HEADS           # 32
NUM_KV_HEADS = NUM_HEADS                 # cogvlm1: no num_multi_query_heads
INTERMEDIATE = 256
NUM_LAYERS = 2
RMS_EPS = 1e-6
ROPE_BASE = 10000.0
QKV_OUT = (NUM_HEADS + 2 * NUM_KV_HEADS) * HEAD_DIM   # 384

BATCH = 2
SEQ = 32                                  # first half language, second half vision

MAX_TOKEN_TILE = 512   # cap so large prefills still shard across TCs / fit VMEM


def _token_tile(T, expert_run):
    # Tiles must be expert-uniform -> bounded by the lang/vision run length.
    tm = min(MAX_TOKEN_TILE, expert_run)
    # TODO(synk): real CogVLM prefills need run-boundary padding when the
    # lang/vision runs are not multiples of the token tile.
    assert T % tm == 0 and tm % 16 == 0 and expert_run % tm == 0
    return tm


def _vmem_limit(blocks):
    """blocks: iterable of (block_shape, dtype). 2x for double buffering + slack."""
    nbytes = sum(math.prod(s) * jnp.dtype(d).itemsize for s, d in blocks)
    return int(max(2 * nbytes + (2 << 20), 16 << 20))


# ---------------------------------------------------------------------------
# K1: fused (add + RMSNorm) + expert-routed QKV projection
# ---------------------------------------------------------------------------
def _ln_qkv_kernel(eid_ref, x_ref, res_ref, w_ref, qkv_w_ref,
                   qkv_ref, newres_ref, *, eps):
    del eid_ref                                        # routing done by index_map
    r = x_ref[...].astype(jnp.float32) + res_ref[...]  # f32 [tm, H]
    newres_ref[...] = r
    var = jnp.mean(r * r, axis=-1, keepdims=True)
    xn = (r * jax.lax.rsqrt(var + eps) * w_ref[...]).astype(jnp.bfloat16)
    qkv_ref[...] = jnp.dot(xn, qkv_w_ref[0],
                           preferred_element_type=jnp.float32).astype(qkv_ref.dtype)


def fused_ln_qkv(x, residual, ln_w, tile_expert, qkv_w, tm, eps=RMS_EPS):
    T, H = x.shape
    qkv_out = qkv_w.shape[-1]
    kernel = functools.partial(_ln_qkv_kernel, eps=eps)
    blocks = [((tm, H), x.dtype), ((tm, H), jnp.float32), ((1, H), jnp.float32),
              ((1, H, qkv_out), qkv_w.dtype),
              ((tm, qkv_out), jnp.bfloat16), ((tm, H), jnp.float32)]
    return pl.pallas_call(
        kernel,
        out_shape=(jax.ShapeDtypeStruct((T, qkv_out), jnp.bfloat16),
                   jax.ShapeDtypeStruct((T, H), jnp.float32)),
        grid_spec=pltpu.PrefetchScalarGridSpec(
            num_scalar_prefetch=1,
            grid=(T // tm,),
            in_specs=[
                pl.BlockSpec((tm, H), lambda i, eid: (i, 0)),
                pl.BlockSpec((tm, H), lambda i, eid: (i, 0)),
                pl.BlockSpec((1, H), lambda i, eid: (0, 0)),
                # one expert slab per tile, chosen by the prefetched tile id
                pl.BlockSpec((1, H, qkv_out), lambda i, eid: (eid[i], 0, 0)),
            ],
            out_specs=[
                pl.BlockSpec((tm, qkv_out), lambda i, eid: (i, 0)),
                pl.BlockSpec((tm, H), lambda i, eid: (i, 0)),
            ],
        ),
        compiler_params=pltpu.CompilerParams(
            dimension_semantics=("parallel",),
            vmem_limit_bytes=_vmem_limit(blocks)),
    )(tile_expert, x, residual, ln_w.reshape(1, H), qkv_w)


# ---------------------------------------------------------------------------
# K2: RoPE + causal attention (all heads of one batch per grid step)
# ---------------------------------------------------------------------------
def _attn_kernel(qkv_ref, cos_ref, sin_ref, o_ref, *, scale, num_heads, head_dim):
    qkv = qkv_ref[...]                                   # bf16 [S, 3H]
    cos = cos_ref[...]                                   # f32 [S, H] (per-head tiled)
    sin = sin_ref[...]
    S = qkv.shape[0]
    H = num_heads * head_dim
    half = head_dim // 2

    row = jax.lax.broadcasted_iota(jnp.int32, (S, S), 0)
    col = jax.lax.broadcasted_iota(jnp.int32, (S, S), 1)
    causal = col <= row

    def rope_full(x):                                    # full-width [S, H] RoPE
        parts = []
        for h in range(num_heads):
            xh = x[:, h * head_dim:(h + 1) * head_dim]
            parts.append(jnp.concatenate([-xh[:, half:], xh[:, :half]], axis=-1))
        return x * cos + jnp.concatenate(parts, axis=-1) * sin

    # Fold the softmax scale into q before the bf16 cast.
    q = rope_full(qkv[:, :H].astype(jnp.float32)) * scale
    k = rope_full(qkv[:, H:2 * H].astype(jnp.float32))
    qb = q.astype(jnp.bfloat16)
    kb = k.astype(jnp.bfloat16)

    for h in range(num_heads):
        sl = slice(h * head_dim, (h + 1) * head_dim)
        s = jax.lax.dot_general(qb[:, sl], kb[:, sl],
                                (((1,), (1,)), ((), ())),
                                preferred_element_type=jnp.float32)
        s = jnp.where(causal, s, -1e30)
        m = jnp.max(s, axis=-1, keepdims=True)
        p = jnp.exp(s - m)
        p = p / jnp.sum(p, axis=-1, keepdims=True)       # exact division
        v = qkv[:, 2 * H + h * head_dim:2 * H + (h + 1) * head_dim]
        o = jnp.dot(p.astype(jnp.bfloat16), v, preferred_element_type=jnp.float32)
        o_ref[:, sl] = o.astype(o_ref.dtype)             # direct per-head store


def causal_attention(qkv, cos_h, sin_h, bsz, seqlen):
    T, three_h = qkv.shape
    H = NUM_HEADS * HEAD_DIM
    scale = 1.0 / math.sqrt(HEAD_DIM)
    kernel = functools.partial(_attn_kernel, scale=scale,
                               num_heads=NUM_HEADS, head_dim=HEAD_DIM)
    blocks = [((seqlen, three_h), qkv.dtype), ((seqlen, H), jnp.float32),
              ((seqlen, H), jnp.float32), ((seqlen, H), jnp.bfloat16)]
    return pl.pallas_call(
        kernel,
        out_shape=jax.ShapeDtypeStruct((T, H), jnp.bfloat16),
        grid_spec=pl.GridSpec(
            grid=(bsz,),
            in_specs=[
                pl.BlockSpec((seqlen, three_h), lambda b: (b, 0)),
                pl.BlockSpec((seqlen, H), lambda b: (0, 0)),
                pl.BlockSpec((seqlen, H), lambda b: (0, 0)),
            ],
            out_specs=pl.BlockSpec((seqlen, H), lambda b: (b, 0)),
        ),
        compiler_params=pltpu.CompilerParams(
            dimension_semantics=("parallel",),
            vmem_limit_bytes=_vmem_limit(blocks)),
    )(qkv, cos_h, sin_h)


# ---------------------------------------------------------------------------
# K3: expert-routed dense -> (add + RMSNorm) -> expert-routed gate_up ->
#     SiLU*Mul -> expert-routed down (+ optional fused final add+RMSNorm)
# ---------------------------------------------------------------------------
def _dense_ln_mlp_kernel(eid_ref, attn_ref, res_ref, post_w_ref, *rest,
                         eps, inter, fuse_final):
    del eid_ref
    if fuse_final:
        final_w_ref, dense_w_ref, gu_w_ref, down_w_ref, out_ref = rest
    else:
        dense_w_ref, gu_w_ref, down_w_ref, out_ref, newres_ref = rest

    dense = jnp.dot(attn_ref[...], dense_w_ref[0],
                    preferred_element_type=jnp.float32)          # [tm, H] f32
    r2 = dense + res_ref[...]
    var = jnp.mean(r2 * r2, axis=-1, keepdims=True)
    xn = (r2 * jax.lax.rsqrt(var + eps) * post_w_ref[...]).astype(jnp.bfloat16)

    gu = jnp.dot(xn, gu_w_ref[0], preferred_element_type=jnp.float32)  # [tm, 2I]
    gate = gu[:, :inter]
    up = gu[:, inter:]
    act = (gate * jax.nn.sigmoid(gate) * up).astype(jnp.bfloat16)

    down = jnp.dot(act, down_w_ref[0], preferred_element_type=jnp.float32)

    if fuse_final:
        r3 = down + r2
        var3 = jnp.mean(r3 * r3, axis=-1, keepdims=True)
        out_ref[...] = (r3 * jax.lax.rsqrt(var3 + eps)
                        * final_w_ref[...]).astype(out_ref.dtype)
    else:
        out_ref[...] = down.astype(out_ref.dtype)
        newres_ref[...] = r2


def fused_dense_ln_mlp(attn, residual, post_w, tile_expert, dense_w, gu_w,
                       down_w, tm, final_w=None, eps=RMS_EPS):
    T, H = attn.shape
    inter = down_w.shape[1]
    fuse_final = final_w is not None
    kernel = functools.partial(_dense_ln_mlp_kernel, eps=eps, inter=inter,
                               fuse_final=fuse_final)

    in_specs = [
        pl.BlockSpec((tm, H), lambda i, eid: (i, 0)),            # attn
        pl.BlockSpec((tm, H), lambda i, eid: (i, 0)),            # residual
        pl.BlockSpec((1, H), lambda i, eid: (0, 0)),             # post ln weight
    ]
    args = [tile_expert, attn, residual, post_w.reshape(1, H)]
    if fuse_final:
        in_specs.append(pl.BlockSpec((1, H), lambda i, eid: (0, 0)))
        args.append(final_w.reshape(1, H))
    in_specs += [
        pl.BlockSpec((1, H, H), lambda i, eid: (eid[i], 0, 0)),
        pl.BlockSpec((1, H, 2 * inter), lambda i, eid: (eid[i], 0, 0)),
        pl.BlockSpec((1, inter, H), lambda i, eid: (eid[i], 0, 0)),
    ]
    args += [dense_w, gu_w, down_w]

    if fuse_final:
        out_shape = jax.ShapeDtypeStruct((T, H), jnp.float32)
        out_specs = pl.BlockSpec((tm, H), lambda i, eid: (i, 0))
    else:
        out_shape = (jax.ShapeDtypeStruct((T, H), jnp.bfloat16),
                     jax.ShapeDtypeStruct((T, H), jnp.float32))
        out_specs = [pl.BlockSpec((tm, H), lambda i, eid: (i, 0)),
                     pl.BlockSpec((tm, H), lambda i, eid: (i, 0))]

    blocks = [((tm, H), attn.dtype), ((tm, H), jnp.float32), ((1, H), jnp.float32),
              ((1, H, H), dense_w.dtype), ((1, H, 2 * inter), gu_w.dtype),
              ((1, inter, H), down_w.dtype),
              ((tm, H), jnp.float32), ((tm, H), jnp.float32)]

    return pl.pallas_call(
        kernel,
        out_shape=out_shape,
        grid_spec=pltpu.PrefetchScalarGridSpec(
            num_scalar_prefetch=1,
            grid=(T // tm,),
            in_specs=in_specs,
            out_specs=out_specs,
        ),
        compiler_params=pltpu.CompilerParams(
            dimension_semantics=("parallel",),
            vmem_limit_bytes=_vmem_limit(blocks)),
    )(*args)


# ---------------------------------------------------------------------------
# Model glue (plain JAX: embedding lookup + rope table + routing metadata)
# ---------------------------------------------------------------------------
def rope_tables(position_ids, head_dim, num_heads):
    # LinearScaling rotary embedding (scaling factor 1.0), HF/llama convention.
    # NOTE: matches the reference which uses cos[0]/sin[0] (first batch row).
    inv_freq = 1.0 / (ROPE_BASE ** (jnp.arange(0, head_dim, 2,
                                                dtype=jnp.float32) / head_dim))
    pos = position_ids[0].astype(jnp.float32)                 # [S]
    freqs = pos[:, None] * inv_freq[None, :]                  # [S, D/2]
    emb = jnp.concatenate([freqs, freqs], axis=-1)            # [S, D]
    # Pre-tile per head so in-kernel RoPE multiplies run on full 128-lane slabs.
    return (jnp.tile(jnp.cos(emb), (1, num_heads)),
            jnp.tile(jnp.sin(emb), (1, num_heads)))            # [S, H] each


def cogvlm_forward(params, input_ids, position_ids, lang_mask_seq):
    bsz, seqlen = input_ids.shape
    T = bsz * seqlen
    expert_run = seqlen // 2                 # lang run then vision run per sequence
    tm = _token_tile(T, expert_run)

    h = jnp.take(params["embed"], input_ids, axis=0)           # [B, S, H]
    x = h.reshape(T, HIDDEN).astype(jnp.bfloat16)
    # residual=None first-layer path is equivalent to residual = zeros.
    residual = jnp.zeros((T, HIDDEN), jnp.float32)

    cos_h, sin_h = rope_tables(position_ids, HEAD_DIM, NUM_HEADS)

    # Token-grouped expert routing (0 = language, 1 = vision); one expert id
    # per token tile (tiles are aligned to the contiguous expert runs).
    expert_per_tok = jnp.tile((~lang_mask_seq).astype(jnp.int32), (bsz,))   # [T]
    tile_expert = expert_per_tok.reshape(T // tm, tm)[:, 0]

    n_layers = len(params["layers"])
    out = None
    for li, layer in enumerate(params["layers"]):
        qkv, residual = fused_ln_qkv(x, residual, layer["input_ln"],
                                     tile_expert, layer["qkv_w"], tm)
        attn = causal_attention(qkv, cos_h, sin_h, bsz, seqlen)
        if li + 1 < n_layers:
            x, residual = fused_dense_ln_mlp(attn, residual, layer["post_ln"],
                                             tile_expert, layer["dense_w"],
                                             layer["gate_up_w"], layer["down_w"],
                                             tm)
        else:
            # Final model add+RMSNorm fused into the last layer's MLP epilogue.
            out = fused_dense_ln_mlp(attn, residual, layer["post_ln"],
                                     tile_expert, layer["dense_w"],
                                     layer["gate_up_w"], layer["down_w"],
                                     tm, final_w=params["norm"])
    return out.reshape(bsz, seqlen, HIDDEN)


# ---------------------------------------------------------------------------
# Deterministic parameter init (experts stacked on a leading axis, bf16)
# ---------------------------------------------------------------------------
def init_params(key):
    def nrm(k, shape, scale=0.02):
        return jax.random.normal(k, shape, jnp.float32) * scale

    keys = jax.random.split(key, 1 + NUM_LAYERS)
    params = {
        "embed": nrm(keys[0], (VOCAB, HIDDEN), 1.0),
        "norm": jnp.ones((HIDDEN,), jnp.float32),
        "layers": [],
    }
    for li in range(NUM_LAYERS):
        lk = jax.random.split(keys[1 + li], 8)
        lang_qkv = nrm(lk[0], (HIDDEN, QKV_OUT))
        vis_qkv = nrm(lk[1], (HIDDEN, QKV_OUT))
        lang_dense = nrm(lk[2], (HIDDEN, HIDDEN))
        vis_dense = nrm(lk[3], (HIDDEN, HIDDEN))
        lang_gu = nrm(lk[4], (HIDDEN, 2 * INTERMEDIATE))
        lang_down = nrm(lk[5], (INTERMEDIATE, HIDDEN))
        vis_gu = nrm(lk[6], (HIDDEN, 2 * INTERMEDIATE))
        vis_down = nrm(lk[7], (INTERMEDIATE, HIDDEN))
        params["layers"].append({
            "input_ln": jnp.ones((HIDDEN,), jnp.float32),
            "post_ln": jnp.ones((HIDDEN,), jnp.float32),
            # expert axis first: index 0 = language expert, 1 = vision expert.
            "qkv_w": jnp.stack([lang_qkv, vis_qkv], 0).astype(jnp.bfloat16),
            "dense_w": jnp.stack([lang_dense, vis_dense], 0).astype(jnp.bfloat16),
            "gate_up_w": jnp.stack([lang_gu, vis_gu], 0).astype(jnp.bfloat16),
            "down_w": jnp.stack([lang_down, vis_down], 0).astype(jnp.bfloat16),
        })
    return params


if __name__ == "__main__":
    key = jax.random.PRNGKey(0)
    pkey, ikey = jax.random.split(key)
    params = init_params(pkey)

    input_ids = jax.random.randint(ikey, (BATCH, SEQ), 0, VOCAB, dtype=jnp.int32)
    position_ids = jnp.arange(SEQ, dtype=jnp.int32)[None, :]          # [1, S]
    # First half of each sequence = language tokens, second half = vision tokens.
    lang_mask_seq = jnp.arange(SEQ) < (SEQ // 2)

    fwd = jax.jit(cogvlm_forward)
    out = fwd(params, input_ids, position_ids, lang_mask_seq)
    out = jax.block_until_ready(out)

    assert out.shape == (BATCH, SEQ, HIDDEN)
    assert bool(jnp.all(jnp.isfinite(out)))
    print("KERNEL_OK")
</pallas_src>

<mosaic_0001>
module attributes {stable_mosaic.version = 11 : i64} {
  func.func @_ln_qkv_kernel(%arg0: i32, %arg1: memref<4xi32, #tpu.memory_space<smem>>, %arg2: memref<16x128xbf16, #tpu.memory_space<vmem>>, %arg3: memref<16x128xf32, #tpu.memory_space<vmem>>, %arg4: memref<1x128xf32, #tpu.memory_space<vmem>>, %arg5: memref<1x128x384xbf16, #tpu.memory_space<vmem>>, %arg6: memref<16x384xbf16, #tpu.memory_space<vmem>>, %arg7: memref<16x128xf32, #tpu.memory_space<vmem>>) attributes {dimension_semantics = [#tpu.dimension_semantics<parallel>], iteration_bounds = array<i64: 4>, scalar_prefetch = 1 : i64, scratch_operands = 0 : i64, tpu.core_type = #tpu.core_type<tc>, window_params = [{transform_indices = @transform_0, window_bounds = array<i64: 16, 128>}, {transform_indices = @transform_1, window_bounds = array<i64: 16, 128>}, {pipeline_mode = #tpu.pipeline_mode<synchronous>, transform_indices = @transform_2, window_bounds = array<i64: 1, 128>}, {transform_indices = @transform_3, window_bounds = array<i64: 1, 128, 384>}, {transform_indices = @transform_4, window_bounds = array<i64: 16, 384>}, {transform_indices = @transform_5, window_bounds = array<i64: 16, 128>}]} {
    %c0 = arith.constant 0 : index
    %c0_0 = arith.constant 0 : index
    %0 = vector.load %arg2[%c0, %c0_0] : memref<16x128xbf16, #tpu.memory_space<vmem>>, vector<16x128xbf16>
    %1 = arith.extf %0 : vector<16x128xbf16> to vector<16x128xf32>
    %c0_1 = arith.constant 0 : index
    %c0_2 = arith.constant 0 : index
    %2 = vector.load %arg3[%c0_1, %c0_2] : memref<16x128xf32, #tpu.memory_space<vmem>>, vector<16x128xf32>
    %3 = arith.addf %1, %2 : vector<16x128xf32>
    %c0_3 = arith.constant 0 : index
    %c0_4 = arith.constant 0 : index
    %4 = vector.load %arg7[%c0_3, %c0_4] : memref<16x128xf32, #tpu.memory_space<vmem>>, vector<16x128xf32>
    tpu.vector_store %arg7[%c0_3, %c0_4], %3 {strides = array<i32>} : memref<16x128xf32, #tpu.memory_space<vmem>>, vector<16x128xf32>,
    %5 = arith.mulf %3, %3 : vector<16x128xf32>
    %cst = arith.constant dense<0.000000e+00> : vector<16xf32>
    %6 = vector.multi_reduction <add>, %5, %cst [1] : vector<16x128xf32> to vector<16xf32>
    %7 = vector.shape_cast %6 : vector<16xf32> to vector<16x1xf32>
    %cst_5 = arith.constant 1.280000e+02 : f32
    %8 = vector.broadcast %cst_5 : f32 to vector<16x1xf32>
    %9 = arith.divf %7, %8 : vector<16x1xf32>
    %cst_6 = arith.constant 9.99999997E-7 : f32
    %10 = vector.broadcast %cst_6 : f32 to vector<16x1xf32>
    %11 = arith.addf %9, %10 : vector<16x1xf32>
    %12 = math.rsqrt %11 : vector<16x1xf32>
    %13 = vector.broadcast %12 : vector<16x1xf32> to vector<16x128xf32>
    %14 = arith.mulf %3, %13 : vector<16x128xf32>
    %c0_7 = arith.constant 0 : index
    %c0_8 = arith.constant 0 : index
    %15 = vector.load %arg4[%c0_7, %c0_8] : memref<1x128xf32, #tpu.memory_space<vmem>>, vector<1x128xf32>
    %16 = vector.broadcast %15 : vector<1x128xf32> to vector<16x128xf32>
    %17 = arith.mulf %14, %16 : vector<16x128xf32>
    %18 = arith.truncf %17 : vector<16x128xf32> to vector<16x128xbf16>
    %c0_9 = arith.constant 0 : index
    %c0_10 = arith.constant 0 : index
    %c0_11 = arith.constant 0 : index
    %19 = vector.load %arg5[%c0_9, %c0_10, %c0_11] : memref<1x128x384xbf16, #tpu.memory_space<vmem>>, vector<1x128x384xbf16>
    %20 = vector.shape_cast %19 : vector<1x128x384xbf16> to vector<128x384xbf16>
    %cst_12 = arith.constant dense<0.000000e+00> : vector<16x384xf32>
    %21 = tpu.matmul %18, %20, %cst_12 {dimension_numbers = #tpu.dot_dimension_numbers<[1], [0], [0], [1], [0, 0, 1, 1], [], []>} : vector<16x128xbf16>, vector<128x384xbf16>, vector<16x384xf32> -> vector<16x384xf32>
    %22 = arith.truncf %21 : vector<16x384xf32> to vector<16x384xbf16>
    %c0_13 = arith.constant 0 : index
    %c0_14 = arith.constant 0 : index
    %23 = vector.load %arg6[%c0_13, %c0_14] : memref<16x384xbf16, #tpu.memory_space<vmem>>, vector<16x384xbf16>
    tpu.vector_store %arg6[%c0_13, %c0_14], %22 {strides = array<i32>} : memref<16x384xbf16, #tpu.memory_space<vmem>>, vector<16x384xbf16>,
    return
  }
  func.func @transform_0(%arg0: i32, %arg1: memref<4xi32, #tpu.memory_space<smem>>) -> (i32, i32) {
    %c0_i32 = arith.constant 0 : i32
    %c0_i32_0 = arith.constant 0 : i32
    return %arg0, %c0_i32 : i32, i32
  }
  func.func @transform_1(%arg0: i32, %arg1: memref<4xi32, #tpu.memory_space<smem>>) -> (i32, i32) {
    %c0_i32 = arith.constant 0 : i32
    %c0_i32_0 = arith.constant 0 : i32
    return %arg0, %c0_i32 : i32, i32
  }
  func.func @transform_2(%arg0: i32, %arg1: memref<4xi32, #tpu.memory_space<smem>>) -> (i32, i32) {
    %c0_i32 = arith.constant 0 : i32
    %c0_i32_0 = arith.constant 0 : i32
    %c0_i32_1 = arith.constant 0 : i32
    return %c0_i32, %c0_i32_0 : i32, i32
  }
  func.func @transform_3(%arg0: i32, %arg1: memref<4xi32, #tpu.memory_space<smem>>) -> (i32, i32, i32) {
    %0 = arith.index_cast %arg0 : i32 to index
    %1 = memref.load %arg1[%0] : memref<4xi32, #tpu.memory_space<smem>>
    %c0_i32 = arith.constant 0 : i32
    %c0_i32_0 = arith.constant 0 : i32
    %c0_i32_1 = arith.constant 0 : i32
    return %1, %c0_i32, %c0_i32_0 : i32, i32, i32
  }
  func.func @transform_4(%arg0: i32, %arg1: memref<4xi32, #tpu.memory_space<smem>>) -> (i32, i32) {
    %c0_i32 = arith.constant 0 : i32
    %c0_i32_0 = arith.constant 0 : i32
    return %arg0, %c0_i32 : i32, i32
  }
  func.func @transform_5(%arg0: i32, %arg1: memref<4xi32, #tpu.memory_space<smem>>) -> (i32, i32) {
    %c0_i32 = arith.constant 0 : i32
    %c0_i32_0 = arith.constant 0 : i32
    return %arg0, %c0_i32 : i32, i32
  }
}

module attributes {stable_mosaic.version = 11 : i64} {
  func.func @_attn_kernel(%arg0: i32, %arg1: memref<32x384xbf16, #tpu.memory_space<vmem>>, %arg2: memref<32x128xf32, #tpu.memory_space<vmem>>, %arg3: memref<32x128xf32, #tpu.memory_space<vmem>>, %arg4: memref<32x128xbf16, #tpu.memory_space<vmem>>) attributes {dimension_semantics = [#tpu.dimension_semantics<parallel>], iteration_bounds = array<i64: 2>, scalar_prefetch = 0 : i64, scratch_operands = 0 : i64, tpu.core_type = #tpu.core_type<tc>, window_params = [{transform_indices = @transform_0, window_bounds = array<i64: 32, 384>}, {pipeline_mode = #tpu.pipeline_mode<synchronous>, transform_indices = @transform_1, window_bounds = array<i64: 32, 128>}, {pipeline_mode = #tpu.pipeline_mode<synchronous>, transform_indices = @transform_2, window_bounds = array<i64: 32, 128>}, {transform_indices = @transform_3, window_bounds = array<i64: 32, 128>}]} {
    %c0 = arith.constant 0 : index
    %c0_0 = arith.constant 0 : index
    %0 = vector.load %arg1[%c0, %c0_0] : memref<32x384xbf16, #tpu.memory_space<vmem>>, vector<32x384xbf16>
    %c0_1 = arith.constant 0 : index
    %c0_2 = arith.constant 0 : index
    %1 = vector.load %arg2[%c0_1, %c0_2] : memref<32x128xf32, #tpu.memory_space<vmem>>, vector<32x128xf32>
    %c0_3 = arith.constant 0 : index
    %c0_4 = arith.constant 0 : index
    %2 = vector.load %arg3[%c0_3, %c0_4] : memref<32x128xf32, #tpu.memory_space<vmem>>, vector<32x128xf32>
    %3 = tpu.iota {dimensions = array<i32: 0>} : vector<32x32xi32>
    %4 = tpu.iota {dimensions = array<i32: 1>} : vector<32x32xi32>
    %5 = arith.cmpi sle, %4, %3 : vector<32x32xi32>
    %6 = vector.extract_strided_slice %0 {offsets = [0, 0], sizes = [32, 128], strides = [1, 1]} : vector<32x384xbf16> to vector<32x128xbf16>
    %7 = arith.extf %6 : vector<32x128xbf16> to vector<32x128xf32>
    %8 = vector.extract_strided_slice %7 {offsets = [0, 0], sizes = [32, 32], strides = [1, 1]} : vector<32x128xf32> to vector<32x32xf32>
    %9 = vector.extract_strided_slice %8 {offsets = [0, 16], sizes = [32, 16], strides = [1, 1]} : vector<32x32xf32> to vector<32x16xf32>
    %cst = arith.constant 0.000000e+00 : f32
    %10 = vector.broadcast %cst : f32 to vector<32x16xf32>
    %11 = arith.subf %10, %9 : vector<32x16xf32>
    %12 = vector.extract_strided_slice %8 {offsets = [0, 0], sizes = [32, 16], strides = [1, 1]} : vector<32x32xf32> to vector<32x16xf32>
    %13 = tpu.concatenate %11, %12 in 1 : vector<32x16xf32>, vector<32x16xf32> -> vector<32x32xf32>
    %14 = vector.extract_strided_slice %7 {offsets = [0, 32], sizes = [32, 32], strides = [1, 1]} : vector<32x128xf32> to vector<32x32xf32>
    %15 = vector.extract_strided_slice %14 {offsets = [0, 16], sizes = [32, 16], strides = [1, 1]} : vector<32x32xf32> to vector<32x16xf32>
    %cst_5 = arith.constant 0.000000e+00 : f32
    %16 = vector.broadcast %cst_5 : f32 to vector<32x16xf32>
    %17 = arith.subf %16, %15 : vector<32x16xf32>
    %18 = vector.extract_strided_slice %14 {offsets = [0, 0], sizes = [32, 16], strides = [1, 1]} : vector<32x32xf32> to vector<32x16xf32>
    %19 = tpu.concatenate %17, %18 in 1 : vector<32x16xf32>, vector<32x16xf32> -> vector<32x32xf32>
    %20 = vector.extract_strided_slice %7 {offsets = [0, 64], sizes = [32, 32], strides = [1, 1]} : vector<32x128xf32> to vector<32x32xf32>
    %21 = vector.extract_strided_slice %20 {offsets = [0, 16], sizes = [32, 16], strides = [1, 1]} : vector<32x32xf32> to vector<32x16xf32>
    %cst_6 = arith.constant 0.000000e+00 : f32
    %22 = vector.broadcast %cst_6 : f32 to vector<32x16xf32>
    %23 = arith.subf %22, %21 : vector<32x16xf32>
    %24 = vector.extract_strided_slice %20 {offsets = [0, 0], sizes = [32, 16], strides = [1, 1]} : vector<32x32xf32> to vector<32x16xf32>
    %25 = tpu.concatenate %23, %24 in 1 : vector<32x16xf32>, vector<32x16xf32> -> vector<32x32xf32>
    %26 = vector.extract_strided_slice %7 {offsets = [0, 96], sizes = [32, 32], strides = [1, 1]} : vector<32x128xf32> to vector<32x32xf32>
    %27 = vector.extract_strided_slice %26 {offsets = [0, 16], sizes = [32, 16], strides = [1, 1]} : vector<32x32xf32> to vector<32x16xf32>
    %cst_7 = arith.constant 0.000000e+00 : f32
    %28 = vector.broadcast %cst_7 : f32 to vector<32x16xf32>
    %29 = arith.subf %28, %27 : vector<32x16xf32>
    %30 = vector.extract_strided_slice %26 {offsets = [0, 0], sizes = [32, 16], strides = [1, 1]} : vector<32x32xf32> to vector<32x16xf32>
    %31 = tpu.concatenate %29, %30 in 1 : vector<32x16xf32>, vector<32x16xf32> -> vector<32x32xf32>
    %32 = arith.mulf %7, %1 : vector<32x128xf32>
    %33 = tpu.concatenate %13, %19, %25, %31 in 1 : vector<32x32xf32>, vector<32x32xf32>, vector<32x32xf32>, vector<32x32xf32> -> vector<32x128xf32>
    %34 = arith.mulf %33, %2 : vector<32x128xf32>
    %35 = arith.addf %32, %34 : vector<32x128xf32>
    %cst_8 = arith.constant 0.176776692 : f32
    %36 = vector.broadcast %cst_8 : f32 to vector<32x128xf32>
    %37 = arith.mulf %35, %36 : vector<32x128xf32>
    %38 = vector.extract_strided_slice %0 {offsets = [0, 128], sizes = [32, 128], strides = [1, 1]} : vector<32x384xbf16> to vector<32x128xbf16>
    %39 = arith.extf %38 : vector<32x128xbf16> to vector<32x128xf32>
    %40 = vector.extract_strided_slice %39 {offsets = [0, 0], sizes = [32, 32], strides = [1, 1]} : vector<32x128xf32> to vector<32x32xf32>
    %41 = vector.extract_strided_slice %40 {offsets = [0, 16], sizes = [32, 16], strides = [1, 1]} : vector<32x32xf32> to vector<32x16xf32>
    %cst_9 = arith.constant 0.000000e+00 : f32
    %42 = vector.broadcast %cst_9 : f32 to vector<32x16xf32>
    %43 = arith.subf %42, %41 : vector<32x16xf32>
    %44 = vector.extract_strided_slice %40 {offsets = [0, 0], sizes = [32, 16], strides = [1, 1]} : vector<32x32xf32> to vector<32x16xf32>
    %45 = tpu.concatenate %43, %44 in 1 : vector<32x16xf32>, vector<32x16xf32> -> vector<32x32xf32>
    %46 = vector.extract_strided_slice %39 {offsets = [0, 32], sizes = [32, 32], strides = [1, 1]} : vector<32x128xf32> to vector<32x32xf32>
    %47 = vector.extract_strided_slice %46 {offsets = [0, 16], sizes = [32, 16], strides = [1, 1]} : vector<32x32xf32> to vector<32x16xf32>
    %cst_10 = arith.constant 0.000000e+00 : f32
    %48 = vector.broadcast %cst_10 : f32 to vector<32x16xf32>
    %49 = arith.subf %48, %47 : vector<32x16xf32>
    %50 = vector.extract_strided_slice %46 {offsets = [0, 0], sizes = [32, 16], strides = [1, 1]} : vector<32x32xf32> to vector<32x16xf32>
    %51 = tpu.concatenate %49, %50 in 1 : vector<32x16xf32>, vector<32x16xf32> -> vector<32x32xf32>
    %52 = vector.extract_strided_slice %39 {offsets = [0, 64], sizes = [32, 32], strides = [1, 1]} : vector<32x128xf32> to vector<32x32xf32>
    %53 = vector.extract_strided_slice %52 {offsets = [0, 16], sizes = [32, 16], strides = [1, 1]} : vector<32x32xf32> to vector<32x16xf32>
    %cst_11 = arith.constant 0.000000e+00 : f32
    %54 = vector.broadcast %cst_11 : f32 to vector<32x16xf32>
    %55 = arith.subf %54, %53 : vector<32x16xf32>
    %56 = vector.extract_strided_slice %52 {offsets = [0, 0], sizes = [32, 16], strides = [1, 1]} : vector<32x32xf32> to vector<32x16xf32>
    %57 = tpu.concatenate %55, %56 in 1 : vector<32x16xf32>, vector<32x16xf32> -> vector<32x32xf32>
    %58 = vector.extract_strided_slice %39 {offsets = [0, 96], sizes = [32, 32], strides = [1, 1]} : vector<32x128xf32> to vector<32x32xf32>
    %59 = vector.extract_strided_slice %58 {offsets = [0, 16], sizes = [32, 16], strides = [1, 1]} : vector<32x32xf32> to vector<32x16xf32>
    %cst_12 = arith.constant 0.000000e+00 : f32
    %60 = vector.broadcast %cst_12 : f32 to vector<32x16xf32>
    %61 = arith.subf %60, %59 : vector<32x16xf32>
    %62 = vector.extract_strided_slice %58 {offsets = [0, 0], sizes = [32, 16], strides = [1, 1]} : vector<32x32xf32> to vector<32x16xf32>
    %63 = tpu.concatenate %61, %62 in 1 : vector<32x16xf32>, vector<32x16xf32> -> vector<32x32xf32>
    %64 = arith.mulf %39, %1 : vector<32x128xf32>
    %65 = tpu.concatenate %45, %51, %57, %63 in 1 : vector<32x32xf32>, vector<32x32xf32>, vector<32x32xf32>, vector<32x32xf32> -> vector<32x128xf32>
    %66 = arith.mulf %65, %2 : vector<32x128xf32>
    %67 = arith.addf %64, %66 : vector<32x128xf32>
    %68 = arith.truncf %37 : vector<32x128xf32> to vector<32x128xbf16>
    %69 = arith.truncf %67 : vector<32x128xf32> to vector<32x128xbf16>
    %70 = vector.extract_strided_slice %68 {offsets = [0, 0], sizes = [32, 32], strides = [1, 1]} : vector<32x128xbf16> to vector<32x32xbf16>
    %71 = vector.extract_strided_slice %69 {offsets = [0, 0], sizes = [32, 32], strides = [1, 1]} : vector<32x128xbf16> to vector<32x32xbf16>
    %cst_13 = arith.constant dense<0.000000e+00> : vector<32x32xf32>
    %72 = tpu.matmul %70, %71, %cst_13 {dimension_numbers = #tpu.dot_dimension_numbers<[1], [1], [0], [0], [0, 0, 1, 0], [], []>} : vector<32x32xbf16>, vector<32x32xbf16>, vector<32x32xf32> -> vector<32x32xf32>
    %cst_14 = arith.constant -1.000000e+30 : f32
    %73 = vector.broadcast %cst_14 : f32 to vector<32x32xf32>
    %74 = arith.select %5, %72, %73 : vector<32x32xi1>, vector<32x32xf32>
    %cst_15 = arith.constant dense<0xFF800000> : vector<32xf32>
    %75 = vector.multi_reduction <maximumf>, %74, %cst_15 [1] : vector<32x32xf32> to vector<32xf32>
    %76 = vector.shape_cast %75 : vector<32xf32> to vector<32x1xf32>
    %77 = vector.broadcast %76 : vector<32x1xf32> to vector<32x32xf32>
    %78 = arith.subf %74, %77 : vector<32x32xf32>
    %79 = math.exp %78 : vector<32x32xf32>
    %cst_16 = arith.constant dense<0.000000e+00> : vector<32xf32>
    %80 = vector.multi_reduction <add>, %79, %cst_16 [1] : vector<32x32xf32> to vector<32xf32>
    %81 = vector.shape_cast %80 : vector<32xf32> to vector<32x1xf32>
    %82 = vector.broadcast %81 : vector<32x1xf32> to vector<32x32xf32>
    %83 = arith.divf %79, %82 : vector<32x32xf32>
    %84 = vector.extract_strided_slice %0 {offsets = [0, 256], sizes = [32, 32], strides = [1, 1]} : vector<32x384xbf16> to vector<32x32xbf16>
    %85 = arith.truncf %83 : vector<32x32xf32> to vector<32x32xbf16>
    %cst_17 = arith.constant dense<0.000000e+00> : vector<32x32xf32>
    %86 = tpu.matmul %85, %84, %cst_17 {dimension_numbers = #tpu.dot_dimension_numbers<[1], [0], [0], [1], [0, 0, 1, 1], [], []>} : vector<32x32xbf16>, vector<32x32xbf16>, vector<32x32xf32> -> vector<32x32xf32>
    %87 = arith.truncf %86 : vector<32x32xf32> to vector<32x32xbf16>
    %c0_18 = arith.constant 0 : index
    %c0_19 = arith.constant 0 : index
    %88 = vector.load %arg4[%c0_18, %c0_19] : memref<32x128xbf16, #tpu.memory_space<vmem>>, vector<32x32xbf16>
    tpu.vector_store %arg4[%c0_18, %c0_19], %87 {strides = array<i32>} : memref<32x128xbf16, #tpu.memory_space<vmem>>, vector<32x32xbf16>,
    %89 = vector.extract_strided_slice %68 {offsets = [0, 32], sizes = [32, 32], strides = [1, 1]} : vector<32x128xbf16> to vector<32x32xbf16>
    %90 = vector.extract_strided_slice %69 {offsets = [0, 32], sizes = [32, 32], strides = [1, 1]} : vector<32x128xbf16> to vector<32x32xbf16>
    %cst_20 = arith.constant dense<0.000000e+00> : vector<32x32xf32>
    %91 = tpu.matmul %89, %90, %cst_20 {dimension_numbers = #tpu.dot_dimension_numbers<[1], [1], [0], [0], [0, 0, 1, 0], [], []>} : vector<32x32xbf16>, vector<32x32xbf16>, vector<32x32xf32> -> vector<32x32xf32>
    %cst_21 = arith.constant -1.000000e+30 : f32
    %92 = vector.broadcast %cst_21 : f32 to vector<32x32xf32>
    %93 = arith.select %5, %91, %92 : vector<32x32xi1>, vector<32x32xf32>
    %cst_22 = arith.constant dense<0xFF800000> : vector<32xf32>
    %94 = vector.multi_reduction <maximumf>, %93, %cst_22 [1] : vector<32x32xf32> to vector<32xf32>
    %95 = vector.shape_cast %94 : vector<32xf32> to vector<32x1xf32>
    %96 = vector.broadcast %95 : vector<32x1xf32> to vector<32x32xf32>
    %97 = arith.subf %93, %96 : vector<32x32xf32>
    %98 = math.exp %97 : vector<32x32xf32>
    %cst_23 = arith.constant dense<0.000000e+00> : vector<32xf32>
    %99 = vector.multi_reduction <add>, %98, %cst_23 [1] : vector<32x32xf32> to vector<32xf32>
    %100 = vector.shape_cast %99 : vector<32xf32> to vector<32x1xf32>
    %101 = vector.broadcast %100 : vector<32x1xf32> to vector<32x32xf32>
    %102 = arith.divf %98, %101 : vector<32x32xf32>
    %103 = vector.extract_strided_slice %0 {offsets = [0, 288], sizes = [32, 32], strides = [1, 1]} : vector<32x384xbf16> to vector<32x32xbf16>
    %104 = arith.truncf %102 : vector<32x32xf32> to vector<32x32xbf16>
    %cst_24 = arith.constant dense<0.000000e+00> : vector<32x32xf32>
    %105 = tpu.matmul %104, %103, %cst_24 {dimension_numbers = #tpu.dot_dimension_numbers<[1], [0], [0], [1], [0, 0, 1, 1], [], []>} : vector<32x32xbf16>, vector<32x32xbf16>, vector<32x32xf32> -> vector<32x32xf32>
    %106 = arith.truncf %105 : vector<32x32xf32> to vector<32x32xbf16>
    %c0_25 = arith.constant 0 : index
    %c32 = arith.constant 32 : index
    %107 = vector.load %arg4[%c0_25, %c32] : memref<32x128xbf16, #tpu.memory_space<vmem>>, vector<32x32xbf16>
    tpu.vector_store %arg4[%c0_25, %c32], %106 {strides = array<i32>} : memref<32x128xbf16, #tpu.memory_space<vmem>>, vector<32x32xbf16>,
    %108 = vector.extract_strided_slice %68 {offsets = [0, 64], sizes = [32, 32], strides = [1, 1]} : vector<32x128xbf16> to vector<32x32xbf16>
    %109 = vector.extract_strided_slice %69 {offsets = [0, 64], sizes = [32, 32], strides = [1, 1]} : vector<32x128xbf16> to vector<32x32xbf16>
    %cst_26 = arith.constant dense<0.000000e+00> : vector<32x32xf32>
    %110 = tpu.matmul %108, %109, %cst_26 {dimension_numbers = #tpu.dot_dimension_numbers<[1], [1], [0], [0], [0, 0, 1, 0], [], []>} : vector<32x32xbf16>, vector<32x32xbf16>, vector<32x32xf32> -> vector<32x32xf32>
    %cst_27 = arith.constant -1.000000e+30 : f32
    %111 = vector.broadcast %cst_27 : f32 to vector<32x32xf32>
    %112 = arith.select %5, %110, %111 : vector<32x32xi1>, vector<32x32xf32>
    %cst_28 = arith.constant dense<0xFF800000> : vector<32xf32>
    %113 = vector.multi_reduction <maximumf>, %112, %cst_28 [1] : vector<32x32xf32> to vector<32xf32>
    %114 = vector.shape_cast %113 : vector<32xf32> to vector<32x1xf32>
    %115 = vector.broadcast %114 : vector<32x1xf32> to vector<32x32xf32>
    %116 = arith.subf %112, %115 : vector<32x32xf32>
    %117 = math.exp %116 : vector<32x32xf32>
    %cst_29 = arith.constant dense<0.000000e+00> : vector<32xf32>
    %118 = vector.multi_reduction <add>, %117, %cst_29 [1] : vector<32x32xf32> to vector<32xf32>
    %119 = vector.shape_cast %118 : vector<32xf32> to vector<32x1xf32>
    %120 = vector.broadcast %119 : vector<32x1xf32> to vector<32x32xf32>
    %121 = arith.divf %117, %120 : vector<32x32xf32>
    %122 = vector.extract_strided_slice %0 {offsets = [0, 320], sizes = [32, 32], strides = [1, 1]} : vector<32x384xbf16> to vector<32x32xbf16>
    %123 = arith.truncf %121 : vector<32x32xf32> to vector<32x32xbf16>
    %cst_30 = arith.constant dense<0.000000e+00> : vector<32x32xf32>
    %124 = tpu.matmul %123, %122, %cst_30 {dimension_numbers = #tpu.dot_dimension_numbers<[1], [0], [0], [1], [0, 0, 1, 1], [], []>} : vector<32x32xbf16>, vector<32x32xbf16>, vector<32x32xf32> -> vector<32x32xf32>
    %125 = arith.truncf %124 : vector<32x32xf32> to vector<32x32xbf16>
    %c0_31 = arith.constant 0 : index
    %c64 = arith.constant 64 : index
    %126 = vector.load %arg4[%c0_31, %c64] : memref<32x128xbf16, #tpu.memory_space<vmem>>, vector<32x32xbf16>
    tpu.vector_store %arg4[%c0_31, %c64], %125 {strides = array<i32>} : memref<32x128xbf16, #tpu.memory_space<vmem>>, vector<32x32xbf16>,
    %127 = vector.extract_strided_slice %68 {offsets = [0, 96], sizes = [32, 32], strides = [1, 1]} : vector<32x128xbf16> to vector<32x32xbf16>
    %128 = vector.extract_strided_slice %69 {offsets = [0, 96], sizes = [32, 32], strides = [1, 1]} : vector<32x128xbf16> to vector<32x32xbf16>
    %cst_32 = arith.constant dense<0.000000e+00> : vector<32x32xf32>
    %129 = tpu.matmul %127, %128, %cst_32 {dimension_numbers = #tpu.dot_dimension_numbers<[1], [1], [0], [0], [0, 0, 1, 0], [], []>} : vector<32x32xbf16>, vector<32x32xbf16>, vector<32x32xf32> -> vector<32x32xf32>
    %cst_33 = arith.constant -1.000000e+30 : f32
    %130 = vector.broadcast %cst_33 : f32 to vector<32x32xf32>
    %131 = arith.select %5, %129, %130 : vector<32x32xi1>, vector<32x32xf32>
    %cst_34 = arith.constant dense<0xFF800000> : vector<32xf32>
    %132 = vector.multi_reduction <maximumf>, %131, %cst_34 [1] : vector<32x32xf32> to vector<32xf32>
    %133 = vector.shape_cast %132 : vector<32xf32> to vector<32x1xf32>
    %134 = vector.broadcast %133 : vector<32x1xf32> to vector<32x32xf32>
    %135 = arith.subf %131, %134 : vector<32x32xf32>
    %136 = math.exp %135 : vector<32x32xf32>
    %cst_35 = arith.constant dense<0.000000e+00> : vector<32xf32>
    %137 = vector.multi_reduction <add>, %136, %cst_35 [1] : vector<32x32xf32> to vector<32xf32>
    %138 = vector.shape_cast %137 : vector<32xf32> to vector<32x1xf32>
    %139 = vector.broadcast %138 : vector<32x1xf32> to vector<32x32xf32>
    %140 = arith.divf %136, %139 : vector<32x32xf32>
    %141 = vector.extract_strided_slice %0 {offsets = [0, 352], sizes = [32, 32], strides = [1, 1]} : vector<32x384xbf16> to vector<32x32xbf16>
    %142 = arith.truncf %140 : vector<32x32xf32> to vector<32x32xbf16>
    %cst_36 = arith.constant dense<0.000000e+00> : vector<32x32xf32>
    %143 = tpu.matmul %142, %141, %cst_36 {dimension_numbers = #tpu.dot_dimension_numbers<[1], [0], [0], [1], [0, 0, 1, 1], [], []>} : vector<32x32xbf16>, vector<32x32xbf16>, vector<32x32xf32> -> vector<32x32xf32>
    %144 = arith.truncf %143 : vector<32x32xf32> to vector<32x32xbf16>
    %c0_37 = arith.constant 0 : index
    %c96 = arith.constant 96 : index
    %145 = vector.load %arg4[%c0_37, %c96] : memref<32x128xbf16, #tpu.memory_space<vmem>>, vector<32x32xbf16>
    tpu.vector_store %arg4[%c0_37, %c96], %144 {strides = array<i32>} : memref<32x128xbf16, #tpu.memory_space<vmem>>, vector<32x32xbf16>,
    return
  }
  func.func @transform_0(%arg0: i32) -> (i32, i32) {
    %c0_i32 = arith.constant 0 : i32
    %c0_i32_0 = arith.constant 0 : i32
    return %arg0, %c0_i32 : i32, i32
  }
  func.func @transform_1(%arg0: i32) -> (i32, i32) {
    %c0_i32 = arith.constant 0 : i32
    %c0_i32_0 = arith.constant 0 : i32
    %c0_i32_1 = arith.constant 0 : i32
    return %c0_i32, %c0_i32_0 : i32, i32
  }
  func.func @transform_2(%arg0: i32) -> (i32, i32) {
    %c0_i32 = arith.constant 0 : i32
    %c0_i32_0 = arith.constant 0 : i32
    %c0_i32_1 = arith.constant 0 : i32
    return %c0_i32, %c0_i32_0 : i32, i32
  }
  func.func @transform_3(%arg0: i32) -> (i32, i32) {
    %c0_i32 = arith.constant 0 : i32
    %c0_i32_0 = arith.constant 0 : i32
    return %arg0, %c0_i32 : i32, i32
  }
}

module attributes {stable_mosaic.version = 11 : i64} {
  func.func @_dense_ln_mlp_kernel(%arg0: i32, %arg1: memref<4xi32, #tpu.memory_space<smem>>, %arg2: memref<16x128xbf16, #tpu.memory_space<vmem>>, %arg3: memref<16x128xf32, #tpu.memory_space<vmem>>, %arg4: memref<1x128xf32, #tpu.memory_space<vmem>>, %arg5: memref<1x128x128xbf16, #tpu.memory_space<vmem>>, %arg6: memref<1x128x512xbf16, #tpu.memory_space<vmem>>, %arg7: memref<1x256x128xbf16, #tpu.memory_space<vmem>>, %arg8: memref<16x128xbf16, #tpu.memory_space<vmem>>, %arg9: memref<16x128xf32, #tpu.memory_space<vmem>>) attributes {dimension_semantics = [#tpu.dimension_semantics<parallel>], iteration_bounds = array<i64: 4>, scalar_prefetch = 1 : i64, scratch_operands = 0 : i64, tpu.core_type = #tpu.core_type<tc>, window_params = [{transform_indices = @transform_0, window_bounds = array<i64: 16, 128>}, {transform_indices = @transform_1, window_bounds = array<i64: 16, 128>}, {pipeline_mode = #tpu.pipeline_mode<synchronous>, transform_indices = @transform_2, window_bounds = array<i64: 1, 128>}, {transform_indices = @transform_3, window_bounds = array<i64: 1, 128, 128>}, {transform_indices = @transform_4, window_bounds = array<i64: 1, 128, 512>}, {transform_indices = @transform_5, window_bounds = array<i64: 1, 256, 128>}, {transform_indices = @transform_6, window_bounds = array<i64: 16, 128>}, {transform_indices = @transform_7, window_bounds = array<i64: 16, 128>}]} {
    %c0 = arith.constant 0 : index
    %c0_0 = arith.constant 0 : index
    %0 = vector.load %arg2[%c0, %c0_0] : memref<16x128xbf16, #tpu.memory_space<vmem>>, vector<16x128xbf16>
    %c0_1 = arith.constant 0 : index
    %c0_2 = arith.constant 0 : index
    %c0_3 = arith.constant 0 : index
    %1 = vector.load %arg5[%c0_1, %c0_2, %c0_3] : memref<1x128x128xbf16, #tpu.memory_space<vmem>>, vector<1x128x128xbf16>
    %2 = vector.shape_cast %1 : vector<1x128x128xbf16> to vector<128x128xbf16>
    %cst = arith.constant dense<0.000000e+00> : vector<16x128xf32>
    %3 = tpu.matmul %0, %2, %cst {dimension_numbers = #tpu.dot_dimension_numbers<[1], [0], [0], [1], [0, 0, 1, 1], [], []>} : vector<16x128xbf16>, vector<128x128xbf16>, vector<16x128xf32> -> vector<16x128xf32>
    %c0_4 = arith.constant 0 : index
    %c0_5 = arith.constant 0 : index
    %4 = vector.load %arg3[%c0_4, %c0_5] : memref<16x128xf32, #tpu.memory_space<vmem>>, vector<16x128xf32>
    %5 = arith.addf %3, %4 : vector<16x128xf32>
    %6 = arith.mulf %5, %5 : vector<16x128xf32>
    %cst_6 = arith.constant dense<0.000000e+00> : vector<16xf32>
    %7 = vector.multi_reduction <add>, %6, %cst_6 [1] : vector<16x128xf32> to vector<16xf32>
    %8 = vector.shape_cast %7 : vector<16xf32> to vector<16x1xf32>
    %cst_7 = arith.constant 1.280000e+02 : f32
    %9 = vector.broadcast %cst_7 : f32 to vector<16x1xf32>
    %10 = arith.divf %8, %9 : vector<16x1xf32>
    %cst_8 = arith.constant 9.99999997E-7 : f32
    %11 = vector.broadcast %cst_8 : f32 to vector<16x1xf32>
    %12 = arith.addf %10, %11 : vector<16x1xf32>
    %13 = math.rsqrt %12 : vector<16x1xf32>
    %14 = vector.broadcast %13 : vector<16x1xf32> to vector<16x128xf32>
    %15 = arith.mulf %5, %14 : vector<16x128xf32>
    %c0_9 = arith.constant 0 : index
    %c0_10 = arith.constant 0 : index
    %16 = vector.load %arg4[%c0_9, %c0_10] : memref<1x128xf32, #tpu.memory_space<vmem>>, vector<1x128xf32>
    %17 = vector.broadcast %16 : vector<1x128xf32> to vector<16x128xf32>
    %18 = arith.mulf %15, %17 : vector<16x128xf32>
    %19 = arith.truncf %18 : vector<16x128xf32> to vector<16x128xbf16>
    %c0_11 = arith.constant 0 : index
    %c0_12 = arith.constant 0 : index
    %c0_13 = arith.constant 0 : index
    %20 = vector.load %arg6[%c0_11, %c0_12, %c0_13] : memref<1x128x512xbf16, #tpu.memory_space<vmem>>, vector<1x128x512xbf16>
    %21 = vector.shape_cast %20 : vector<1x128x512xbf16> to vector<128x512xbf16>
    %cst_14 = arith.constant dense<0.000000e+00> : vector<16x512xf32>
    %22 = tpu.matmul %19, %21, %cst_14 {dimension_numbers = #tpu.dot_dimension_numbers<[1], [0], [0], [1], [0, 0, 1, 1], [], []>} : vector<16x128xbf16>, vector<128x512xbf16>, vector<16x512xf32> -> vector<16x512xf32>
    %23 = vector.extract_strided_slice %22 {offsets = [0, 0], sizes = [16, 256], strides = [1, 1]} : vector<16x512xf32> to vector<16x256xf32>
    %24 = vector.extract_strided_slice %22 {offsets = [0, 256], sizes = [16, 256], strides = [1, 1]} : vector<16x512xf32> to vector<16x256xf32>
    %25 = arith.negf %23 : vector<16x256xf32>
    %26 = math.exp %25 : vector<16x256xf32>
    %cst_15 = arith.constant 1.000000e+00 : f32
    %27 = vector.broadcast %cst_15 : f32 to vector<16x256xf32>
    %28 = arith.addf %27, %26 : vector<16x256xf32>
    %29 = arith.divf %27, %28 : vector<16x256xf32>
    %30 = arith.mulf %23, %29 : vector<16x256xf32>
    %31 = arith.mulf %30, %24 : vector<16x256xf32>
    %32 = arith.truncf %31 : vector<16x256xf32> to vector<16x256xbf16>
    %c0_16 = arith.constant 0 : index
    %c0_17 = arith.constant 0 : index
    %c0_18 = arith.constant 0 : index
    %33 = vector.load %arg7[%c0_16, %c0_17, %c0_18] : memref<1x256x128xbf16, #tpu.memory_space<vmem>>, vector<1x256x128xbf16>
    %34 = vector.shape_cast %33 : vector<1x256x128xbf16> to vector<256x128xbf16>
    %cst_19 = arith.constant dense<0.000000e+00> : vector<16x128xf32>
    %35 = tpu.matmul %32, %34, %cst_19 {dimension_numbers = #tpu.dot_dimension_numbers<[1], [0], [0], [1], [0, 0, 1, 1], [], []>} : vector<16x256xbf16>, vector<256x128xbf16>, vector<16x128xf32> -> vector<16x128xf32>
    %36 = arith.truncf %35 : vector<16x128xf32> to vector<16x128xbf16>
    %c0_20 = arith.constant 0 : index
    %c0_21 = arith.constant 0 : index
    %37 = vector.load %arg8[%c0_20, %c0_21] : memref<16x128xbf16, #tpu.memory_space<vmem>>, vector<16x128xbf16>
    tpu.vector_store %arg8[%c0_20, %c0_21], %36 {strides = array<i32>} : memref<16x128xbf16, #tpu.memory_space<vmem>>, vector<16x128xbf16>,
    %c0_22 = arith.constant 0 : index
    %c0_23 = arith.constant 0 : index
    %38 = vector.load %arg9[%c0_22, %c0_23] : memref<16x128xf32, #tpu.memory_space<vmem>>, vector<16x128xf32>
    tpu.vector_store %arg9[%c0_22, %c0_23], %5 {strides = array<i32>} : memref<16x128xf32, #tpu.memory_space<vmem>>, vector<16x128xf32>,
    return
  }
  func.func @transform_0(%arg0: i32, %arg1: memref<4xi32, #tpu.memory_space<smem>>) -> (i32, i32) {
    %c0_i32 = arith.constant 0 : i32
    %c0_i32_0 = arith.constant 0 : i32
    return %arg0, %c0_i32 : i32, i32
  }
  func.func @transform_1(%arg0: i32, %arg1: memref<4xi32, #tpu.memory_space<smem>>) -> (i32, i32) {
    %c0_i32 = arith.constant 0 : i32
    %c0_i32_0 = arith.constant 0 : i32
    return %arg0, %c0_i32 : i32, i32
  }
  func.func @transform_2(%arg0: i32, %arg1: memref<4xi32, #tpu.memory_space<smem>>) -> (i32, i32) {
    %c0_i32 = arith.constant 0 : i32
    %c0_i32_0 = arith.constant 0 : i32
    %c0_i32_1 = arith.constant 0 : i32
    return %c0_i32, %c0_i32_0 : i32, i32
  }
  func.func @transform_3(%arg0: i32, %arg1: memref<4xi32, #tpu.memory_space<smem>>) -> (i32, i32, i32) {
    %0 = arith.index_cast %arg0 : i32 to index
    %1 = memref.load %arg1[%0] : memref<4xi32, #tpu.memory_space<smem>>
    %c0_i32 = arith.constant 0 : i32
    %c0_i32_0 = arith.constant 0 : i32
    %c0_i32_1 = arith.constant 0 : i32
    return %1, %c0_i32, %c0_i32_0 : i32, i32, i32
  }
  func.func @transform_4(%arg0: i32, %arg1: memref<4xi32, #tpu.memory_space<smem>>) -> (i32, i32, i32) {
    %0 = arith.index_cast %arg0 : i32 to index
    %1 = memref.load %arg1[%0] : memref<4xi32, #tpu.memory_space<smem>>
    %c0_i32 = arith.constant 0 : i32
    %c0_i32_0 = arith.constant 0 : i32
    %c0_i32_1 = arith.constant 0 : i32
    return %1, %c0_i32, %c0_i32_0 : i32, i32, i32
  }
  func.func @transform_5(%arg0: i32, %arg1: memref<4xi32, #tpu.memory_space<smem>>) -> (i32, i32, i32) {
    %0 = arith.index_cast %arg0 : i32 to index
    %1 = memref.load %arg1[%0] : memref<4xi32, #tpu.memory_space<smem>>
    %c0_i32 = arith.constant 0 : i32
    %c0_i32_0 = arith.constant 0 : i32
    %c0_i32_1 = arith.constant 0 : i32
    return %1, %c0_i32, %c0_i32_0 : i32, i32, i32
  }
  func.func @transform_6(%arg0: i32, %arg1: memref<4xi32, #tpu.memory_space<smem>>) -> (i32, i32) {
    %c0_i32 = arith.constant 0 : i32
    %c0_i32_0 = arith.constant 0 : i32
    return %arg0, %c0_i32 : i32, i32
  }
  func.func @transform_7(%arg0: i32, %arg1: memref<4xi32, #tpu.memory_space<smem>>) -> (i32, i32) {
    %c0_i32 = arith.constant 0 : i32
    %c0_i32_0 = arith.constant 0 : i32
    return %arg0, %c0_i32 : i32, i32
  }
}

module attributes {stable_mosaic.version = 11 : i64} {
  func.func @_dense_ln_mlp_kernel(%arg0: i32, %arg1: memref<4xi32, #tpu.memory_space<smem>>, %arg2: memref<16x128xbf16, #tpu.memory_space<vmem>>, %arg3: memref<16x128xf32, #tpu.memory_space<vmem>>, %arg4: memref<1x128xf32, #tpu.memory_space<vmem>>, %arg5: memref<1x128xf32, #tpu.memory_space<vmem>>, %arg6: memref<1x128x128xbf16, #tpu.memory_space<vmem>>, %arg7: memref<1x128x512xbf16, #tpu.memory_space<vmem>>, %arg8: memref<1x256x128xbf16, #tpu.memory_space<vmem>>, %arg9: memref<16x128xf32, #tpu.memory_space<vmem>>) attributes {dimension_semantics = [#tpu.dimension_semantics<parallel>], iteration_bounds = array<i64: 4>, scalar_prefetch = 1 : i64, scratch_operands = 0 : i64, tpu.core_type = #tpu.core_type<tc>, window_params = [{transform_indices = @transform_0, window_bounds = array<i64: 16, 128>}, {transform_indices = @transform_1, window_bounds = array<i64: 16, 128>}, {pipeline_mode = #tpu.pipeline_mode<synchronous>, transform_indices = @transform_2, window_bounds = array<i64: 1, 128>}, {pipeline_mode = #tpu.pipeline_mode<synchronous>, transform_indices = @transform_3, window_bounds = array<i64: 1, 128>}, {transform_indices = @transform_4, window_bounds = array<i64: 1, 128, 128>}, {transform_indices = @transform_5, window_bounds = array<i64: 1, 128, 512>}, {transform_indices = @transform_6, window_bounds = array<i64: 1, 256, 128>}, {transform_indices = @transform_7, window_bounds = array<i64: 16, 128>}]} {
    %c0 = arith.constant 0 : index
    %c0_0 = arith.constant 0 : index
    %0 = vector.load %arg2[%c0, %c0_0] : memref<16x128xbf16, #tpu.memory_space<vmem>>, vector<16x128xbf16>
    %c0_1 = arith.constant 0 : index
    %c0_2 = arith.constant 0 : index
    %c0_3 = arith.constant 0 : index
    %1 = vector.load %arg6[%c0_1, %c0_2, %c0_3] : memref<1x128x128xbf16, #tpu.memory_space<vmem>>, vector<1x128x128xbf16>
    %2 = vector.shape_cast %1 : vector<1x128x128xbf16> to vector<128x128xbf16>
    %cst = arith.constant dense<0.000000e+00> : vector<16x128xf32>
    %3 = tpu.matmul %0, %2, %cst {dimension_numbers = #tpu.dot_dimension_numbers<[1], [0], [0], [1], [0, 0, 1, 1], [], []>} : vector<16x128xbf16>, vector<128x128xbf16>, vector<16x128xf32> -> vector<16x128xf32>
    %c0_4 = arith.constant 0 : index
    %c0_5 = arith.constant 0 : index
    %4 = vector.load %arg3[%c0_4, %c0_5] : memref<16x128xf32, #tpu.memory_space<vmem>>, vector<16x128xf32>
    %5 = arith.addf %3, %4 : vector<16x128xf32>
    %6 = arith.mulf %5, %5 : vector<16x128xf32>
    %cst_6 = arith.constant dense<0.000000e+00> : vector<16xf32>
    %7 = vector.multi_reduction <add>, %6, %cst_6 [1] : vector<16x128xf32> to vector<16xf32>
    %8 = vector.shape_cast %7 : vector<16xf32> to vector<16x1xf32>
    %cst_7 = arith.constant 1.280000e+02 : f32
    %9 = vector.broadcast %cst_7 : f32 to vector<16x1xf32>
    %10 = arith.divf %8, %9 : vector<16x1xf32>
    %cst_8 = arith.constant 9.99999997E-7 : f32
    %11 = vector.broadcast %cst_8 : f32 to vector<16x1xf32>
    %12 = arith.addf %10, %11 : vector<16x1xf32>
    %13 = math.rsqrt %12 : vector<16x1xf32>
    %14 = vector.broadcast %13 : vector<16x1xf32> to vector<16x128xf32>
    %15 = arith.mulf %5, %14 : vector<16x128xf32>
    %c0_9 = arith.constant 0 : index
    %c0_10 = arith.constant 0 : index
    %16 = vector.load %arg4[%c0_9, %c0_10] : memref<1x128xf32, #tpu.memory_space<vmem>>, vector<1x128xf32>
    %17 = vector.broadcast %16 : vector<1x128xf32> to vector<16x128xf32>
    %18 = arith.mulf %15, %17 : vector<16x128xf32>
    %19 = arith.truncf %18 : vector<16x128xf32> to vector<16x128xbf16>
    %c0_11 = arith.constant 0 : index
    %c0_12 = arith.constant 0 : index
    %c0_13 = arith.constant 0 : index
    %20 = vector.load %arg7[%c0_11, %c0_12, %c0_13] : memref<1x128x512xbf16, #tpu.memory_space<vmem>>, vector<1x128x512xbf16>
    %21 = vector.shape_cast %20 : vector<1x128x512xbf16> to vector<128x512xbf16>
    %cst_14 = arith.constant dense<0.000000e+00> : vector<16x512xf32>
    %22 = tpu.matmul %19, %21, %cst_14 {dimension_numbers = #tpu.dot_dimension_numbers<[1], [0], [0], [1], [0, 0, 1, 1], [], []>} : vector<16x128xbf16>, vector<128x512xbf16>, vector<16x512xf32> -> vector<16x512xf32>
    %23 = vector.extract_strided_slice %22 {offsets = [0, 0], sizes = [16, 256], strides = [1, 1]} : vector<16x512xf32> to vector<16x256xf32>
    %24 = vector.extract_strided_slice %22 {offsets = [0, 256], sizes = [16, 256], strides = [1, 1]} : vector<16x512xf32> to vector<16x256xf32>
    %25 = arith.negf %23 : vector<16x256xf32>
    %26 = math.exp %25 : vector<16x256xf32>
    %cst_15 = arith.constant 1.000000e+00 : f32
    %27 = vector.broadcast %cst_15 : f32 to vector<16x256xf32>
    %28 = arith.addf %27, %26 : vector<16x256xf32>
    %29 = arith.divf %27, %28 : vector<16x256xf32>
    %30 = arith.mulf %23, %29 : vector<16x256xf32>
    %31 = arith.mulf %30, %24 : vector<16x256xf32>
    %32 = arith.truncf %31 : vector<16x256xf32> to vector<16x256xbf16>
    %c0_16 = arith.constant 0 : index
    %c0_17 = arith.constant 0 : index
    %c0_18 = arith.constant 0 : index
    %33 = vector.load %arg8[%c0_16, %c0_17, %c0_18] : memref<1x256x128xbf16, #tpu.memory_space<vmem>>, vector<1x256x128xbf16>
    %34 = vector.shape_cast %33 : vector<1x256x128xbf16> to vector<256x128xbf16>
    %cst_19 = arith.constant dense<0.000000e+00> : vector<16x128xf32>
    %35 = tpu.matmul %32, %34, %cst_19 {dimension_numbers = #tpu.dot_dimension_numbers<[1], [0], [0], [1], [0, 0, 1, 1], [], []>} : vector<16x256xbf16>, vector<256x128xbf16>, vector<16x128xf32> -> vector<16x128xf32>
    %36 = arith.addf %35, %5 : vector<16x128xf32>
    %37 = arith.mulf %36, %36 : vector<16x128xf32>
    %cst_20 = arith.constant dense<0.000000e+00> : vector<16xf32>
    %38 = vector.multi_reduction <add>, %37, %cst_20 [1] : vector<16x128xf32> to vector<16xf32>
    %39 = vector.shape_cast %38 : vector<16xf32> to vector<16x1xf32>
    %cst_21 = arith.constant 1.280000e+02 : f32
    %40 = vector.broadcast %cst_21 : f32 to vector<16x1xf32>
    %41 = arith.divf %39, %40 : vector<16x1xf32>
    %cst_22 = arith.constant 9.99999997E-7 : f32
    %42 = vector.broadcast %cst_22 : f32 to vector<16x1xf32>
    %43 = arith.addf %41, %42 : vector<16x1xf32>
    %44 = math.rsqrt %43 : vector<16x1xf32>
    %45 = vector.broadcast %44 : vector<16x1xf32> to vector<16x128xf32>
    %46 = arith.mulf %36, %45 : vector<16x128xf32>
    %c0_23 = arith.constant 0 : index
    %c0_24 = arith.constant 0 : index
    %47 = vector.load %arg5[%c0_23, %c0_24] : memref<1x128xf32, #tpu.memory_space<vmem>>, vector<1x128xf32>
    %48 = vector.broadcast %47 : vector<1x128xf32> to vector<16x128xf32>
    %49 = arith.mulf %46, %48 : vector<16x128xf32>
    %c0_25 = arith.constant 0 : index
    %c0_26 = arith.constant 0 : index
    %50 = vector.load %arg9[%c0_25, %c0_26] : memref<16x128xf32, #tpu.memory_space<vmem>>, vector<16x128xf32>
    tpu.vector_store %arg9[%c0_25, %c0_26], %49 {strides = array<i32>} : memref<16x128xf32, #tpu.memory_space<vmem>>, vector<16x128xf32>,
    return
  }
  func.func @transform_0(%arg0: i32, %arg1: memref<4xi32, #tpu.memory_space<smem>>) -> (i32, i32) {
    %c0_i32 = arith.constant 0 : i32
    %c0_i32_0 = arith.constant 0 : i32
    return %arg0, %c0_i32 : i32, i32
  }
  func.func @transform_1(%arg0: i32, %arg1: memref<4xi32, #tpu.memory_space<smem>>) -> (i32, i32) {
    %c0_i32 = arith.constant 0 : i32
    %c0_i32_0 = arith.constant 0 : i32
    return %arg0, %c0_i32 : i32, i32
  }
  func.func @transform_2(%arg0: i32, %arg1: memref<4xi32, #tpu.memory_space<smem>>) -> (i32, i32) {
    %c0_i32 = arith.constant 0 : i32
    %c0_i32_0 = arith.constant 0 : i32
    %c0_i32_1 = arith.constant 0 : i32
    return %c0_i32, %c0_i32_0 : i32, i32
  }
  func.func @transform_3(%arg0: i32, %arg1: memref<4xi32, #tpu.memory_space<smem>>) -> (i32, i32) {
    %c0_i32 = arith.constant 0 : i32
    %c0_i32_0 = arith.constant 0 : i32
    %c0_i32_1 = arith.constant 0 : i32
    return %c0_i32, %c0_i32_0 : i32, i32
  }
  func.func @transform_4(%arg0: i32, %arg1: memref<4xi32, #tpu.memory_space<smem>>) -> (i32, i32, i32) {
    %0 = arith.index_cast %arg0 : i32 to index
    %1 = memref.load %arg1[%0] : memref<4xi32, #tpu.memory_space<smem>>
    %c0_i32 = arith.constant 0 : i32
    %c0_i32_0 = arith.constant 0 : i32
    %c0_i32_1 = arith.constant 0 : i32
    return %1, %c0_i32, %c0_i32_0 : i32, i32, i32
  }
  func.func @transform_5(%arg0: i32, %arg1: memref<4xi32, #tpu.memory_space<smem>>) -> (i32, i32, i32) {
    %0 = arith.index_cast %arg0 : i32 to index
    %1 = memref.load %arg1[%0] : memref<4xi32, #tpu.memory_space<smem>>
    %c0_i32 = arith.constant 0 : i32
    %c0_i32_0 = arith.constant 0 : i32
    %c0_i32_1 = arith.constant 0 : i32
    return %1, %c0_i32, %c0_i32_0 : i32, i32, i32
  }
  func.func @transform_6(%arg0: i32, %arg1: memref<4xi32, #tpu.memory_space<smem>>) -> (i32, i32, i32) {
    %0 = arith.index_cast %arg0 : i32 to index
    %1 = memref.load %arg1[%0] : memref<4xi32, #tpu.memory_space<smem>>
    %c0_i32 = arith.constant 0 : i32
    %c0_i32_0 = arith.constant 0 : i32
    %c0_i32_1 = arith.constant 0 : i32
    return %1, %c0_i32, %c0_i32_0 : i32, i32, i32
  }
  func.func @transform_7(%arg0: i32, %arg1: memref<4xi32, #tpu.memory_space<smem>>) -> (i32, i32) {
    %c0_i32 = arith.constant 0 : i32
    %c0_i32_0 = arith.constant 0 : i32
    return %arg0, %c0_i32 : i32, i32
  }
}

</mosaic_0001>

<bundles_post_ra>
// kernel: tile.24
= control target key start
LH: loop header
LB: loop body
LE: loop exit
PB: predicated region body
PF: predicated region fallthrough
CT: control target
= control target key end

     0   :  { %vm132_vm0 = vcmask 1047556   ;;  %s338_s15 = smov 96   ;;  %s339_s30 = smov 64   ;;  %vm134_vm1 = vcmask 261120   ;;  %vm171_vm2 = vcmask 1048320   ;;  %vm214_vm3 = vcmask 785920   ;;  %s535_s0 = inlined_call_operand.vmem [shape: f32[32,4,32], index: 0, kind: input, shape index: {}]   ;;  %s536_s1 = inlined_call_operand.vmem [shape: f32[32,128], index: 1, kind: output, shape index: {}]  }
   0x1   :  { %v316_v0 = vld [vmem:[%s535_s0 + $0x1c] sm:$0xf]  ;;  %v317_v1 = vld [vmem:[%s535_s0 + $0x18] sm:$0xf]  ;;  %v318_v2 = vld [vmem:[%s535_s0 + $0x14] sm:$0xf] }
   0x2   :  { %103 = vst [vmem:[#allocation0 + $0x38] sm:$0xf] %v316_v0  ;;  %v319_v3 = vld [vmem:[%s535_s0 + $0x10] sm:$0xf]  ;;  %v320_v4 = vld [vmem:[%s535_s0 + $0xc] sm:$0xf] }
   0x3   :  { %107 = vst [vmem:[#allocation0 + $0x30] sm:$0xf] %v317_v1  ;;  %v321_v5 = vld [vmem:[%s535_s0 + $0x8] sm:$0xf]  ;;  %v322_v6 = vld [vmem:[%s535_s0 + $0x4] sm:$0xf] }
   0x4   :  { %111 = vst [vmem:[#allocation0 + $0x28] sm:$0xf] %v318_v2  ;;  %v128_v7 = vld [vmem:[%s535_s0] sm:$0xf]  ;;  %v300_v8 = vld [vmem:[%s535_s0 + $0x5c] sm:$0xf] }
   0x5   :  { %115 = vst [vmem:[#allocation0 + $0x20] sm:$0xf] %v319_v3  ;;  %v301_v9 = vld [vmem:[%s535_s0 + $0x58] sm:$0xf]  ;;  %v302_v10 = vld [vmem:[%s535_s0 + $0x54] sm:$0xf] }
   0x6   :  { %119 = vst [vmem:[#allocation0 + $0x18] sm:$0xf] %v320_v4  ;;  %v303_v11 = vld [vmem:[%s535_s0 + $0x50] sm:$0xf]  ;;  %v304_v12 = vld [vmem:[%s535_s0 + $0x4c] sm:$0xf] }
   0x7   :  { %123 = vst [vmem:[#allocation0 + $0x10] sm:$0xf] %v321_v5  ;;  %v305_v13 = vld [vmem:[%s535_s0 + $0x48] sm:$0xf]  ;;  %v306_v14 = vld [vmem:[%s535_s0 + $0x44] sm:$0xf] }
   0x8   :  { %127 = vst [vmem:[#allocation0 + $0x8] sm:$0xf] %v322_v6  ;;  %v307_v15 = vld [vmem:[%s535_s0 + $0x40] sm:$0xf]  ;;  %v308_v17 = vld [vmem:[%s535_s0 + $0x3c] sm:$0xf] }
   0x9   :  { %129 = vst [vmem:[#allocation0] sm:$0xf] %v128_v7  ;;  %v309_v18 = vld [vmem:[%s535_s0 + $0x38] sm:$0xf]  ;;  %v310_v21 = vld [vmem:[%s535_s0 + $0x34] sm:$0xf] }
   0xa   :  { %39 = vst [vmem:[#allocation0 + $0xb8] sm:$0xf] %v300_v8  ;;  %v311_v22 = vld [vmem:[%s535_s0 + $0x30] sm:$0xf]  ;;  %v312_v23 = vld [vmem:[%s535_s0 + $0x2c] sm:$0xf] }
   0xb   :  { %43 = vst [vmem:[#allocation0 + $0xb0] sm:$0xf] %v301_v9  ;;  %v313_v24 = vld [vmem:[%s535_s0 + $0x28] sm:$0xf]  ;;  %v314_v25 = vld [vmem:[%s535_s0 + $0x24] sm:$0xf] }
   0xc   :  { %47 = vst [vmem:[#allocation0 + $0xa8] sm:$0xf] %v302_v10  ;;  %v166_v16 = vld [vmem:[#allocation0 + $0x3] ss:$8 sm:$0xf0]   ;;  %vm257_vm4 = vcmask 523520  }
   0xd   :  { %51 = vst [vmem:[#allocation0 + $0xa0] sm:$0xf] %v303_v11  ;;  %v315_v26 = vld [vmem:[%s535_s0 + $0x20] sm:$0xf]  ;;  %v292_v30 = vld [vmem:[%s535_s0 + $0x7c] sm:$0xf] }
   0xe   :  { %55 = vst [vmem:[#allocation0 + $0x98] sm:$0xf] %v304_v12  ;;  %v209_v29 = vld [vmem:[#allocation0 + $0x2] ss:$8 sm:$0xf0]  }
   0xf   :  { %59 = vst [vmem:[#allocation0 + $0x90] sm:$0xf] %v305_v13  ;;  %v293_v31 = vld [vmem:[%s535_s0 + $0x78] sm:$0xf]  ;;  %v294_v35 = vld [vmem:[%s535_s0 + $0x74] sm:$0xf] }
  0x10   :  { %v164_v19 = vld [vmem:[#allocation0 + $0x3] ss:$8 sm:$0xf]   ;;  %63 = vst [vmem:[#allocation0 + $0x88] sm:$0xf] %v306_v14 }
  0x11   :  { %v168_v20 = vsel %vm132_vm0, %v166_v16, %v164_v19  ;;  %67 = vst [vmem:[#allocation0 + $0x80] sm:$0xf] %v307_v15  ;;  %v207_v27 = vld [vmem:[#allocation0 + $0x2] ss:$8 sm:$0xf]  }
  0x12   :  { %169 = vrot.lane.b32.xlu0 %v168_v20, %s338_s15  ;;  %71 = vst [vmem:[#allocation0 + $0x78] sm:$0xf] %v308_v17  ;;  %v211_v32 = vsel %vm132_vm0, %v209_v29, %v207_v27  ;;  %v295_v36 = vld [vmem:[%s535_s0 + $0x70] sm:$0xf]  ;;  %v296_v37 = vld [vmem:[%s535_s0 + $0x6c] sm:$0xf] }
  0x13   :  { %75 = vst [vmem:[#allocation0 + $0x70] sm:$0xf] %v309_v18  ;;  %212 = vrot.lane.b32.xlu2 %v211_v32, %s339_s30  ;;  %v297_v38 = vld [vmem:[%s535_s0 + $0x68] sm:$0xf]  ;;  %v298_v39 = vld [vmem:[%s535_s0 + $0x64] sm:$0xf] }
  0x14   :  { %79 = vst [vmem:[#allocation0 + $0x68] sm:$0xf] %v310_v21  ;;  %v187_v28 = vld [vmem:[#allocation0 + $0x83] ss:$8 sm:$0xf0]  }
  0x15   :  { %83 = vst [vmem:[#allocation0 + $0x60] sm:$0xf] %v311_v22  ;;  %v299_v40 = vld [vmem:[%s535_s0 + $0x60] sm:$0xf]  ;;  %s340_s0 = smov 32  }
  0x16   :  { %87 = vst [vmem:[#allocation0 + $0x58] sm:$0xf] %v312_v23  ;;  %v230_v48 = vld [vmem:[#allocation0 + $0x82] ss:$8 sm:$0xf0]  }
  0x17   :  { %91 = vst [vmem:[#allocation0 + $0x50] sm:$0xf] %v313_v24  ;;  %v250_v49 = vld [vmem:[#allocation0 + $0x1] ss:$8 sm:$0xf]  }
  0x18   :  { %v185_v33 = vld [vmem:[#allocation0 + $0x83] ss:$8 sm:$0xf]   ;;  %95 = vst [vmem:[#allocation0 + $0x48] sm:$0xf] %v314_v25 }
  0x19   :  { %v189_v34 = vsel %vm132_vm0, %v187_v28, %v185_v33  ;;  %99 = vst [vmem:[#allocation0 + $0x40] sm:$0xf] %v315_v26  ;;  %v228_v47 = vld [vmem:[#allocation0 + $0x82] ss:$8 sm:$0xf]  }
  0x1a   :  { %190 = vrot.lane.b32.xlu1 %v189_v34, %s338_s15  ;;  %7 = vst [vmem:[#allocation0 + $0xf8] sm:$0xf] %v292_v30  ;;  %v252_v51 = vld [vmem:[#allocation0 + $0x1] ss:$8 sm:$0xf0]   ;;  %v232_v52 = vsel %vm132_vm0, %v230_v48, %v228_v47 }
  0x1b   :  { %11 = vst [vmem:[#allocation0 + $0xf0] sm:$0xf] %v293_v31  ;;  %v254_v55 = vsel %vm132_vm0, %v252_v51, %v250_v49  ;;  %v271_v1 = vld [vmem:[#allocation0 + $0x81] ss:$8 sm:$0xf]  }
  0x1c   :  { %15 = vst [vmem:[#allocation0 + $0xe8] sm:$0xf] %v294_v35  ;;  %v176_v41 = vld [vmem:[#allocation0 + $0x43] ss:$8 sm:$0xf0]  }
  0x1d   :  { %19 = vst [vmem:[#allocation0 + $0xe0] sm:$0xf] %v295_v36  ;;  %v219_v42 = vld [vmem:[#allocation0 + $0x42] ss:$8 sm:$0xf0]  }
  0x1e   :  { %23 = vst [vmem:[#allocation0 + $0xd8] sm:$0xf] %v296_v37  ;;  %v262_v57 = vld [vmem:[#allocation0 + $0x41] ss:$8 sm:$0xf0]  }
  0x1f   :  { %27 = vst [vmem:[#allocation0 + $0xd0] sm:$0xf] %v297_v38  ;;  %v273_v2 = vld [vmem:[#allocation0 + $0x81] ss:$8 sm:$0xf0]  }
  0x20   :  { %v174_v43 = vld [vmem:[#allocation0 + $0x43] ss:$8 sm:$0xf]   ;;  %31 = vst [vmem:[#allocation0 + $0xc8] sm:$0xf] %v298_v39  ;;  %v275_v3 = vsel %vm132_vm0, %v273_v2, %v271_v1 }
  0x21   :  { %v178_v44 = vsel %vm132_vm0, %v176_v41, %v174_v43  ;;  %35 = vst [vmem:[#allocation0 + $0xc0] sm:$0xf] %v299_v40  ;;  %v217_v45 = vld [vmem:[#allocation0 + $0x42] ss:$8 sm:$0xf]  }
  0x22   :  { %179 = vrot.lane.b32.xlu0 %v178_v44, %s338_s15  ;;  %v221_v46 = vsel %vm132_vm0, %v219_v42, %v217_v45  ;;  %v260_v56 = vld [vmem:[#allocation0 + $0x41] ss:$8 sm:$0xf]   ;;  %v130_v4 = vld [vmem:[#allocation0] ss:$8 sm:$0xf]  }
  0x23   :  { %222 = vrot.lane.b32.xlu2 %v221_v46, %s339_s30  ;;  %v264_v63 = vsel %vm132_vm0, %v262_v57, %v260_v56  ;;  %v131_v5 = vld [vmem:[#allocation0] ss:$8 sm:$0xf0]  }
  0x24   :  { %v198_v50 = vld [vmem:[#allocation0 + $0xc3] ss:$8 sm:$0xf0]   ;;  %v241_v59 = vld [vmem:[#allocation0 + $0xc2] ss:$8 sm:$0xf0]   ;;  %v133_v6 = vsel %vm132_vm0, %v131_v5, %v130_v4 }
  0x25   :  { %v284_v61 = vld [vmem:[#allocation0 + $0xc1] ss:$8 sm:$0xf0]   ;;  %135 = vst.msk [vmem:[%s536_s1] sm:$0xff] %vm134_vm1, %v133_v6  }
  0x26   :  { %v146_v7 = vld [vmem:[#allocation0 + $0x80] ss:$8 sm:$0xf]  }
  0x27   :  { %v148_v8 = vld [vmem:[#allocation0 + $0x80] ss:$8 sm:$0xf0]  }
  0x28   :  { %v196_v53 = vld [vmem:[#allocation0 + $0xc3] ss:$8 sm:$0xf]   ;;  %v239_v58 = vld [vmem:[#allocation0 + $0xc2] ss:$8 sm:$0xf]   ;;  %v150_v9 = vsel %vm132_vm0, %v148_v8, %v146_v7 }
  0x29   :  { %v200_v54 = vsel %vm132_vm0, %v198_v50, %v196_v53  ;;  %v282_v60 = vld [vmem:[#allocation0 + $0xc1] ss:$8 sm:$0xf]   ;;  %v243_v62 = vsel %vm132_vm0, %v241_v59, %v239_v58  ;;  %324 = vst.msk [vmem:[%s536_s1 + $0x10] sm:$0xff] %vm134_vm1, %v150_v9  }
  0x2a   :  { %201 = vrot.lane.b32.xlu1 %v200_v54, %s338_s15  ;;  %233 = vrot.lane.b32.xlu0 %v232_v52, %s339_s30  ;;  %v286_v0 = vsel %vm132_vm0, %v284_v61, %v282_v60  ;;  %v137_v11 = vld [vmem:[#allocation0 + $0x40] ss:$8 sm:$0xf]  }
  0x2b   :  { %255 = vrot.lane.b32.xlu2 %v254_v55, %s340_s0  ;;  %v139_v12 = vld [vmem:[#allocation0 + $0x40] ss:$8 sm:$0xf0]  }
  0x2c   :  { %v141_v13 = vsel %vm132_vm0, %v139_v12, %v137_v11  ;;  %v155_v14 = vld [vmem:[#allocation0 + $0xc0] ss:$8 sm:$0xf]  }
  0x2d   :  { %323 = vst.msk [vmem:[%s536_s1 + $0x8] sm:$0xff] %vm134_vm1, %v141_v13   ;;  %v157_v15 = vld [vmem:[#allocation0 + $0xc0] ss:$8 sm:$0xf0]  }
  0x2e   :  { %v159_v16 = vsel %vm132_vm0, %v157_v15, %v155_v14 }
  0x2f   :  { %325 = vst.msk [vmem:[%s536_s1 + $0x18] sm:$0xff] %vm134_vm1, %v159_v16  }
  0x32   :  { %244 = vrot.lane.b32.xlu1 %v243_v62, %s339_s30  ;;  %265 = vrot.lane.b32.xlu0 %v264_v63, %s340_s0 }
  0x33   :  { %287 = vrot.lane.b32.xlu2 %v286_v0, %s340_s0 }
  0x3a   :  { %276 = vrot.lane.b32.xlu1 %v275_v3, %s340_s0 }
  0x6d   :  { %v213_v10 = vpop.permute.xlu2 %212  }
  0x7d   :  { %v223_v17 = vpop.permute.xlu2 %222  }
  0x84   :  { %v170_v18 = vpop.permute.xlu0 %169  }
  0x85   :  { %172 = vst.msk [vmem:[%s536_s1] sm:$0xff] %vm171_vm2, %v170_v18   ;;  %v256_v19 = vpop.permute.xlu2 %255  }
  0x86   :  { %215 = vst.msk [vmem:[%s536_s1] sm:$0xff] %vm214_vm3, %v213_v10  }
  0x87   :  { %258 = vst.msk [vmem:[%s536_s1] sm:$0xff] %vm257_vm4, %v256_v19  }
  0x8c   :  { %v191_v20 = vpop.permute.xlu1 %190  }
  0x8d   :  { %327 = vst.msk [vmem:[%s536_s1 + $0x10] sm:$0xff] %vm171_vm2, %v191_v20   ;;  %v288_v21 = vpop.permute.xlu2 %287  }
  0x94   :  { %v180_v22 = vpop.permute.xlu0 %179  }
  0x95   :  { %326 = vst.msk [vmem:[%s536_s1 + $0x8] sm:$0xff] %vm171_vm2, %v180_v22  }
  0x96   :  { %329 = vst.msk [vmem:[%s536_s1 + $0x8] sm:$0xff] %vm214_vm3, %v223_v17  }
  0x9c   :  { %v202_v23 = vpop.permute.xlu1 %201   ;;  %v234_v24 = vpop.permute.xlu0 %233  }
  0x9d   :  { %328 = vst.msk [vmem:[%s536_s1 + $0x18] sm:$0xff] %vm171_vm2, %v202_v23  }
  0x9e   :  { %330 = vst.msk [vmem:[%s536_s1 + $0x10] sm:$0xff] %vm214_vm3, %v234_v24  }
  0xa4   :  { %v245_v25 = vpop.permute.xlu1 %244   ;;  %v266_v26 = vpop.permute.xlu0 %265  }
  0xa5   :  { %331 = vst.msk [vmem:[%s536_s1 + $0x18] sm:$0xff] %vm214_vm3, %v245_v25  }
  0xa6   :  { %332 = vst.msk [vmem:[%s536_s1 + $0x8] sm:$0xff] %vm257_vm4, %v266_v26  }
  0xa7   :  { %334 = vst.msk [vmem:[%s536_s1 + $0x18] sm:$0xff] %vm257_vm4, %v288_v21  }
  0xac   :  { %v277_v27 = vpop.permute.xlu1 %276  }
  0xad   :  { %333 = vst.msk [vmem:[%s536_s1 + $0x10] sm:$0xff] %vm257_vm4, %v277_v27  }

// kernel: cogvlm_forward.6
= control target key start
LH: loop header
LB: loop body
LE: loop exit
PB: predicated region body
PF: predicated region fallthrough
CT: control target
= control target key end

     0   :  { %s992_s24 = smov [#allocation3]   ;;  %s1219_s0 = inlined_call_operand.vmem [shape: s32[4], index: 0, kind: input, shape index: {}]   ;;  %s1220_s1 = inlined_call_operand.vmem [shape: bf16[64,128], index: 1, kind: input, shape index: {}]   ;;  %s1221_s2 = inlined_call_operand.vmem [shape: f32[64,128], index: 2, kind: input, shape index: {}]   ;;  %s1222_s3 = inlined_call_operand.vmem [shape: f32[1,128], index: 3, kind: input, shape index: {}]   ;;  %s1223_s4 = inlined_call_operand.hbm [shape: bf16[2,128,384], index: 4, kind: input, shape index: {}]   ;;  %s1224_s5 = inlined_call_operand.vmem [shape: bf16[64,384], index: 5, kind: output, shape index: {0}]   ;;  %s1225_s6 = inlined_call_operand.vmem [shape: f32[64,128], index: 6, kind: output, shape index: {1}]  }
   0x1   :  { %s13_s23 = sshll.u32 %s1219_s0, 4  ;;  %s14_s23 = int_to_ptr.vmem [resolvable:$true] %s13_s23 }
   0x2   :  { %16 = dma.vmem_to_smem %s14_s23, 16, %s992_s24, [#allocation2] }
   0x3   :  { %970 = dma.done.wait [#allocation2], 16 }
   0x4   :  { %971 = vsyncadd [#allocation2], 4294967280 }
   0x5   :  { %19 = sfence }
   0x6   :  { %20 = vsyncpa [#allocation5], 0 }
   0x7   :  { %22 = vsyncpa [#allocation5 + $0x1], 0  ;;  %s1034_s25 = smov 0   ;;  %s1036_s26 = smov 0  }
   0x8   :  { %s1038_s27 = smov 0   ;;  %s1040_s28 = smov 0  }
   0x9 LB: > { %s1053_s0 = sadd.s32 1, %s990_s28   ;;  %s714_s29 = sadd.s32 4294967295, %s990_s28   ;;  %s990_s28 = sphi %s1040_s28, %s1233_s28   ;;  %s986_s27 = sphi %s1038_s27, %s1232_s27   ;;  %s982_s26 = sphi %s1036_s26, %s1231_s26   ;;  %s978_s25 = sphi %s1034_s25, %s1230_s25  }
   0xa   : > { %s105_s30 = sld [smem:[#allocation3 + %s990_s28]]  ;;  %p117_p0 = scmp.ne.s32.totalorder %s986_s27, %s982_s26 }
   0xb   : > { %s106_s7 = sld [smem:[#allocation3 + %s1053_s0]]  ;;  %p118_p1 = scmp.eq.s32.totalorder %s990_s28, 0 }
   0xc   : > { %p123_p2 = scmp.ne.s32.totalorder %s982_s26, %s978_s25  ;;  %p124_p3 = scmp.eq.s32.totalorder %s714_s29, 0 }
   0xd   : > { %p1064_p4 = por %p118_p1, %p117_p0  ;;  %s220_s10 = sand.u32 1, %s986_s27  }
   0xe   : > { %p1068_p5 = por %p124_p3, %p123_p2  ;;  %s110_s11 = sadd.s32 1, %s986_s27 }
   0xf   : > { %p868_p6 = scmp.lt.s32.totalorder %s990_s28, 4  ;;  %s854_s13 = smul.u32 192, %s220_s10 }
  0x10   : > { %s858_s15 = scalar_select %p1064_p4, [#allocation3], [#allocation6] }
  0x11   : > { %s107_s12 = ssub.s32 %s105_s30, %s106_s7  ;;  %p1077_p8 = pnand %p868_p6, %p1064_p4 }
  0x12   : > { %p108_p7 = scmp.eq.s32.totalorder %s107_s12, 0  ;;  %s1235_s15 = smov (!%p868_p6, %s858_s15), [#allocation7] }
  0x13   : > { %s859_s17 = scalar_select %p1064_p4, %s990_s28, 0 }
  0x14   : > { %s1084_s16 = scalar_select %p108_p7, %s986_s27, %s110_s11  }
  0x15   : > { %s1237_s17 = smov (!%p868_p6, %s859_s17), 0  ;;  %p719_p9 = scmp.ge.s32.totalorder %s990_s28, 1 }
  0x16   : > { %s225_s18 = sld [smem:[%s1235_s15 + %s1237_s17]]  ;;  %p241_p10 = scmp.lt.s32.totalorder %s990_s28, 5 }
  0x17   : > { %s224_s19 = scalar_lea.vmem [#allocation4], %s854_s13  ;;  %s221_s7 = scalar_lea.sflag [#allocation5], %s220_s10 }
  0x18   : > { %s233_s20 = sshll.u32 %s224_s19, 4  ;;  %p1091_p11 = pnand %p719_p9, %p241_p10  ;;  %s234_s20 = int_to_ptr.vmem [resolvable:$true] %s233_s20 }
  0x19   : > { %p928_p13 = pneg %p1077_p8  ;;  %s931_s15 = scalar_lea.hbm %s1223_s4, 384 }
  0x1c   : > { %s855_s22 = smul.u32 192, %s225_s18 }
  0x1e   : > { %s230_s25 = scalar_lea.hbm %s1223_s4, %s855_s22 }
  0x1f   : > { %s231_s30 = sshll.u32 %s230_s25, 4  ;;  %s232_s30 = int_to_ptr.hbm [resolvable:$true] %s231_s30 }
  0x20   : > { %s924_s8 = sshra.s32 %s232_s30, 4  ;;  %s925_s8 = int_to_ptr.hbm [resolvable:$true] %s924_s8 }
  0x21   : > { %s926_s11 = scalar_lea.hbm %s925_s8, 192  ;;  %p932_p2 = scmp.lt.s32.totalorder %s925_s8, %s1223_s4 }
  0x22   : > { %p927_p12 = scmp.ne.s32.totalorder %s925_s8, %s926_s11  ;;  %p933_p3 = scmp.lt.s32.totalorder %s931_s15, %s926_s11 }
  0x24   : > { %p929_p0 = pnand %p928_p13, %p927_p12  ;;  %p934_p4 = por %p933_p3, %p932_p2 }
  0x26   : > { %p930_p1 = pneg %p929_p0 }
  0x28   : > { %p935_p6 = pnand %p934_p4, %p930_p1 }
  0x2a   : > { %938 = shalt.err (!%p935_p6)
}
  0x2b   : > { %s993_s10 = smov 192   ;;  %s994_s19 = smov 12  }
  0x2c   : > { %867 = dma.hbm_to_vmem [thread:$0]  (!%p1077_p8), %s232_s30, 3072, %s234_s20, %s221_s7, %s993_s10, %s993_s10, %s994_s19  }
  0x2d   : > { %245 = sbr.rel (%p1091_p11) target bundleno = 360 (0x168), region = 36  ;;  %s247_s22 = sand.u32 (!%p1091_p11), 1, %s982_s26  }
  0x2e   : > { %s856_s23 = smul.u32 (!%p1091_p11), 192, %s247_s22  ;;  %s248_s24 = scalar_lea.sflag (!%p1091_p11), [#allocation5], %s247_s22 }
  0x30   : > { %s1111_s25 = scalar_lea.vmem (!%p1091_p11), [#allocation4], %s856_s23 }
  0x32   : > { %973 = dma.done.wait (%p1068_p5), %s248_s24, 3072  }
  0x33   : > { %975 = vsyncadd (%p1068_p5), %s248_s24, 4294964224  ;;  %s720_s8 = sshll.u32 %s714_s29, 1  ;;  %v814_v9 = vld [vmem:[%s1111_s25 + $0xa8] sm:$0xf]  ;;  %v848_v10 = vld [vmem:[%s1111_s25 + $0xb0] sm:$0xf0] }
  0x34   : > { %p296_p7 = scmp.lt.s32.totalorder %s720_s8, 7  ;;  %v847_v11 = vld [vmem:[%s1111_s25 + $0xac] sm:$0xf]  ;;  %v815_v12 = vor.u32 %v848_v10, %v814_v9  ;;  %v816_v13 = vld [vmem:[%s1111_s25 + $0xb4] sm:$0xf0]  ;;  %v995_v16 = vmov 128.0  }
  0x35   : > { %v822_v14 = vld [vmem:[%s1111_s25 + $0xb0] sm:$0xf]  ;;  %v849_v15 = vld [vmem:[%s1111_s25 + $0xb8] sm:$0xf0]  ;;  %906 = vrcp.f32 %v995_v16  ;;  %v819_v17 = vor.u32 %v847_v11, %v816_v13  ;;  %v844_v21 = vld [vmem:[%s1111_s25 + $0x94] sm:$0xf] }
  0x36   : > { %s1239_s8 = smov (!%p296_p7, %s720_s8), 7  ;;  %v823_v18 = vor.u32 %v849_v15, %v822_v14  ;;  %537 = vmatpush.bf16.msra.mxu0 %v815_v12  ;;  %v802_v19 = vld [vmem:[%s1111_s25 + $0x90] sm:$0xf]  ;;  %v845_v20 = vld [vmem:[%s1111_s25 + $0x98] sm:$0xf0] }
  0x37   : > { %s721_s14 = sshll.u32 %s1239_s8, 2  ;;  %s723_s20 = sshll.u32 %s1239_s8, 3  ;;  %551 = vmatpush.bf16.msra.mxu1 %v819_v17  ;;  %v803_v22 = vor.u32 %v845_v20, %v802_v19  ;;  %v804_v23 = vld [vmem:[%s1111_s25 + $0x9c] sm:$0xf0]  ;;  %v810_v24 = vld [vmem:[%s1111_s25 + $0x98] sm:$0xf] }
  0x38   : > { %s299_s7 = scalar_lea.vmem %s1220_s1, %s721_s14  ;;  %s305_s9 = scalar_lea.vmem %s1221_s2, %s723_s20  ;;  %565 = vmatpush.bf16.msra.mxu2 %v823_v18  ;;  %v846_v25 = vld [vmem:[%s1111_s25 + $0xa0] sm:$0xf0]  ;;  %v807_v26 = vor.u32 %v844_v21, %v804_v23  ;;  %v790_v29 = vld [vmem:[%s1111_s25 + $0x78] sm:$0xf]  ;;  %v841_v31 = vld [vmem:[%s1111_s25 + $0x7c] sm:$0xf] }
  0x39   : > { %v851_v0 = vld [vmem:[%s299_s7] sm:$0xff]   ;;  %v326_v4 = vld [vmem:[%s305_s9 + $0x8] sm:$0xff]  ;;  %s319_s13 = scalar_lea.vmem %s1225_s6, %s723_s20  ;;  %v811_v27 = vor.u32 %v846_v25, %v810_v24  ;;  %v780_v43 = vld [vmem:[%s1111_s25 + $0x6c] sm:$0xf0]  ;;  %s857_s18 = smul.u32 12, %s1239_s8 }
  0x3a   : > { %v325_v1 = vld [vmem:[%s305_s9] sm:$0xff]  ;;  %v852_v2 = vunpack.c.l.bf16 %v851_v0  ;;  %v853_v3 = vunpack.c.h.bf16 %v851_v0  ;;  %538 = vmatpush.bf16.msra.mxu0 %v803_v22  ;;  %v792_v33 = vld [vmem:[%s1111_s25 + $0x84] sm:$0xf0]  ;;  %v843_v35 = vld [vmem:[%s1111_s25 + $0x88] sm:$0xf0] }
  0x3b   : > { %v1154_v28 = vpop.eup %906  ;;  %552 = vmatpush.bf16.msra.mxu1 %v807_v26  ;;  %v842_v30 = vld [vmem:[%s1111_s25 + $0x80] sm:$0xf0]  ;;  %v798_v34 = vld [vmem:[%s1111_s25 + $0x80] sm:$0xf]  ;;  %v795_v36 = vor.u32 %v841_v31, %v792_v33  ;;  %v839_v40 = vld [vmem:[%s1111_s25 + $0x68] sm:$0xf0]  ;;  %s313_s22 = scalar_lea.vmem %s1224_s5, %s857_s18 }
  0x3c   : > { %v1132_v5 = vadd.f32 %v852_v2, %v325_v1  ;;  %v1134_v6 = vadd.f32 %v853_v3, %v326_v4  ;;  %566 = vmatpush.bf16.msra.mxu2 %v811_v27  ;;  %v791_v32 = vor.u32 %v842_v30, %v790_v29  ;;  %v799_v37 = vor.u32 %v843_v35, %v798_v34  ;;  %v778_v39 = vld [vmem:[%s1111_s25 + $0x60] sm:$0xf]  ;;  %v838_v41 = vld [vmem:[%s1111_s25 + $0x64] sm:$0xf]  ;;  %v786_v44 = vld [vmem:[%s1111_s25 + $0x68] sm:$0xf] }
  0x3d   : > { %v338_v38 = vmul.f32 128.0, %v1154_v28  ;;  %v779_v42 = vor.u32 %v839_v40, %v778_v39  ;;  %v840_v45 = vld [vmem:[%s1111_s25 + $0x70] sm:$0xf0]  ;;  %v783_v46 = vor.u32 %v838_v41, %v780_v43  ;;  %v766_v49 = vld [vmem:[%s1111_s25 + $0x48] sm:$0xf]  ;;  %vm342_vm0 = vweird.f32 %v1154_v28 }
  0x3e   : > { %v331_v7 = vmul.f32 %v1132_v5, %v1132_v5  ;;  %329 = vst [vmem:[%s319_s13] sm:$0xff] %v1132_v5  ;;  %v332_v8 = vmul.f32 %v1134_v6, %v1134_v6  ;;  %539 = vmatpush.bf16.msra.mxu0 %v791_v32  ;;  %v787_v47 = vor.u32 %v840_v45, %v786_v44  ;;  %v836_v50 = vld [vmem:[%s1111_s25 + $0x50] sm:$0xf0]  ;;  %v835_v51 = vld [vmem:[%s1111_s25 + $0x4c] sm:$0xf]  ;;  %v768_v53 = vld [vmem:[%s1111_s25 + $0x54] sm:$0xf0] }
  0x3f   : > { %330 = vst [vmem:[%s319_s13 + $0x8] sm:$0xff] %v1134_v6  ;;  %553 = vmatpush.bf16.msra.mxu1 %v795_v36  ;;  %v339_v48 = vsub.f32 1.0, %v338_v38  ;;  %v767_v52 = vor.u32 %v836_v50, %v766_v49  ;;  %v774_v54 = vld [vmem:[%s1111_s25 + $0x50] sm:$0xf]  ;;  %v837_v55 = vld [vmem:[%s1111_s25 + $0x58] sm:$0xf0]  ;;  %v771_v56 = vor.u32 %v835_v51, %v768_v53 }
  0x40   : > { %333 = vadd.xlane.f32.xlu0 %v331_v7  ;;  %567 = vmatpush.bf16.msra.mxu2 %v799_v37  ;;  %v775_v57 = vor.u32 %v837_v55, %v774_v54  ;;  %v754_v59 = vld [vmem:[%s1111_s25 + $0x30] sm:$0xf]  ;;  %v833_v60 = vld [vmem:[%s1111_s25 + $0x38] sm:$0xf0]  ;;  %v832_v61 = vld [vmem:[%s1111_s25 + $0x34] sm:$0xf] }
  0x41   : > { %v340_v58 = vmul.f32 %v1154_v28, %v339_v48  ;;  %v755_v62 = vor.u32 %v833_v60, %v754_v59  ;;  %v756_v63 = vld [vmem:[%s1111_s25 + $0x3c] sm:$0xf0]  ;;  %v762_v0 = vld [vmem:[%s1111_s25 + $0x38] sm:$0xf]  ;;  %v834_v1 = vld [vmem:[%s1111_s25 + $0x40] sm:$0xf0] }
  0x42   : > { %540 = vmatpush.bf16.msra.mxu0 %v779_v42  ;;  %v759_v2 = vor.u32 %v832_v61, %v756_v63  ;;  %v763_v3 = vor.u32 %v834_v1, %v762_v0  ;;  %v742_v7 = vld [vmem:[%s1111_s25 + $0x18] sm:$0xf]  ;;  %v829_v9 = vld [vmem:[%s1111_s25 + $0x1c] sm:$0xf]  ;;  %v744_v11 = vld [vmem:[%s1111_s25 + $0x24] sm:$0xf0] }
  0x43   : > { %554 = vmatpush.bf16.msra.mxu1 %v783_v46  ;;  %v341_v4 = vadd.f32 %v1154_v28, %v340_v58  ;;  %v750_v12 = vld [vmem:[%s1111_s25 + $0x20] sm:$0xf]  ;;  %v831_v13 = vld [vmem:[%s1111_s25 + $0x28] sm:$0xf0]  ;;  %v747_v14 = vor.u32 %v829_v9, %v744_v11  ;;  %v826_v19 = vld [vmem:[%s1111_s25 + $0x4] sm:$0xf] }
  0x44   : > { %568 = vmatpush.bf16.msra.mxu2 %v787_v47  ;;  %v751_v15 = vor.u32 %v831_v13, %v750_v12  ;;  %v730_v17 = vld [vmem:[%s1111_s25] sm:$0xf]  ;;  %v827_v18 = vld [vmem:[%s1111_s25 + $0x8] sm:$0xf0]  ;;  %v732_v21 = vld [vmem:[%s1111_s25 + $0xc] sm:$0xf0] }
  0x45   : > { %v343_v16 = vsel %vm342_vm0, %v1154_v28, %v341_v4  ;;  %v731_v20 = vor.u32 %v827_v18, %v730_v17  ;;  %v738_v22 = vld [vmem:[%s1111_s25 + $0x8] sm:$0xf]  ;;  %v828_v23 = vld [vmem:[%s1111_s25 + $0x10] sm:$0xf0]  ;;  %v735_v25 = vor.u32 %v826_v19, %v732_v21  ;;  %v905_v46 = vld [vmem:[%s1222_s3] ss:$0 sm:$0xff] }
  0x46   : > { %541 = vmatpush.bf16.msra.mxu0 %v767_v52  ;;  %v739_v26 = vor.u32 %v828_v23, %v738_v22 }
  0x47   : > { %555 = vmatpush.bf16.msra.mxu1 %v771_v56 }
  0x48   : > { %335 = vadd.xlane.f32.xlu0 %v332_v8  ;;  %569 = vmatpush.bf16.msra.mxu2 %v775_v57  ;;  %v830_v8 = vld [vmem:[%s1111_s25 + $0x20] sm:$0xf0] }
  0x49   : > { %v743_v10 = vor.u32 %v830_v8, %v742_v7 }
  0x4a   : > { %542 = vmatpush.bf16.msra.mxu0 %v755_v62 }
  0x4b   : > { %556 = vmatpush.bf16.msra.mxu1 %v759_v2 }
  0x4c   : > { %570 = vmatpush.bf16.msra.mxu2 %v763_v3 }
  0x4e   : > { %543 = vmatpush.bf16.msra.mxu0 %v743_v10 }
  0x4f   : > { %557 = vmatpush.bf16.msra.mxu1 %v747_v14 }
  0x50   : > { %571 = vmatpush.bf16.msra.mxu2 %v751_v15 }
  0x52   : > { %544 = vmatpush.bf16.msra.mxu0 %v731_v20 }
  0x53   : > { %558 = vmatpush.bf16.msra.mxu1 %v735_v25 }
  0x54   : > { %572 = vmatpush.bf16.msra.mxu2 %v739_v26 }
  0xb3   : > { %v334_v24 = vpop.xlane.xlu0 %333 }
  0xb4   : > { %v344_v27 = vmul.f32 %v343_v16, %v334_v24 }
  0xb6   : > { %v346_v29 = vadd.f32 1e-06, %v344_v27 }
  0xb8   : > { %908 = vrsqrt.f32 %v346_v29  ;;  %vm354_vm2 = vweird.f32 %v346_v29 }
  0xbb   : > { %v336_v28 = vpop.xlane.xlu0 %335 }
  0xbc   : > { %v345_v30 = vmul.f32 %v343_v16, %v336_v28 }
  0xbe   : > { %v909_v31 = vpop.eup %908  ;;  %v347_v32 = vadd.f32 1e-06, %v345_v30 }
  0xbf   : > { %v349_v33 = vmul.f32 %v909_v31, %v346_v29  ;;  %vm355_vm1 = vweird.f32 %v909_v31 }
  0xc0   : > { %910 = vrsqrt.f32 %v347_v32  ;;  %vm356_vm3 = vmor %vm354_vm2, %vm355_vm1  ;;  %vm364_vm5 = vweird.f32 %v347_v32 }
  0xc1   : > { %v350_v34 = vmul.f32 %v909_v31, %v349_v33 }
  0xc3   : > { %v351_v35 = vmul.f32 0.5, %v350_v34 }
  0xc5   : > { %v352_v36 = vsub.f32 1.5, %v351_v35 }
  0xc6   : > { %v911_v37 = vpop.eup %910 }
  0xc7   : > { %v359_v38 = vmul.f32 %v911_v37, %v347_v32  ;;  %v353_v39 = vmul.f32 %v909_v31, %v352_v36  ;;  %vm365_vm4 = vweird.f32 %v911_v37 }
  0xc8   : > { %vm366_vm6 = vmor %vm364_vm5, %vm365_vm4 }
  0xc9   : > { %v360_v40 = vmul.f32 %v911_v37, %v359_v38  ;;  %v357_v42 = vsel %vm356_vm3, %v909_v31, %v353_v39 }
  0xca   : > { %v368_v45 = vmul.f32 %v357_v42, %v1132_v5 }
  0xcb   : > { %v361_v41 = vmul.f32 0.5, %v360_v40 }
  0xcc   : > { %v374_v49 = vmul.f32 %v905_v46, %v368_v45 }
  0xcd   : > { %v362_v43 = vsub.f32 1.5, %v361_v41 }
  0xcf   : > { %v363_v44 = vmul.f32 %v911_v37, %v362_v43 }
  0xd1   : > { %v367_v47 = vsel %vm366_vm6, %v911_v37, %v363_v44 }
  0xd2   : > { %v369_v48 = vmul.f32 %v367_v47, %v1134_v6 }
  0xd4   : > { %v375_v50 = vmul.f32 %v905_v46, %v369_v48 }
  0xd6   : > { %v376_v51 = vpack.c.bf16 %v375_v50, %v374_v49 }
  0xd8   : > { %545 = vmatmul.bf16.vlgmr.msra.gmra.mxu0 %v376_v51  ;;  %559 = vmatmul.bf16.vlgmr.msra.gmra.mxu1 %v376_v51 }
  0xd9   : > { %573 = vmatmul.bf16.vlgmr.msra.gmra.mxu2 %v376_v51 }
 0x155   : > { %v546_v52 = vpop.f32.mrf.mxu0  ;;  %v560_v5 = vpop.f32.mrf.mxu1 }
 0x156   : > { %v579_v53 = vpack.c.bf16 %v560_v5, %v546_v52 }
 0x158   : > { %583 = vst [vmem:[%s313_s22] sm:$0xff] %v579_v53 }
 0x15c   : > { %v574_v54 = vpop.f32.mrf.mxu2 }
 0x15d   : > { %v580_v55 = vpack.c.bf16 %v574_v54, %v574_v54  ;;  %v548_v56 = vpop.f32.mrf.mxu0  ;;  %v562_v57 = vpop.f32.mrf.mxu1 }
 0x15e   : > { %v581_v6 = vpack.c.bf16 %v562_v57, %v548_v56 }
 0x15f   : > { %584 = vst [vmem:[%s313_s22 + $0x8] sm:$0xf] %v580_v55 }
 0x160   : > { %585 = vst [vmem:[%s313_s22 + $0xc] sm:$0xff] %v581_v6 }
 0x164   : > { %v576_v58 = vpop.f32.mrf.mxu2 }
 0x165   : > { %v582_v59 = vpack.c.bf16 %v576_v58, %v576_v58 }
 0x167   : > { %586 = vst [vmem:[%s313_s22 + $0x14] sm:$0xf] %v582_v59 }
 0x168 PF: > { %p25_p5 = scmp.ge.s32.totalorder %s1053_s0, 6   ;;  %s1230_s25 = smov %s982_s26 }
 0x169   : > { %s1231_s26 = smov %s986_s27  ;;  %s1232_s27 = smov %s1084_s16 }
 0x16a   : > { %s1233_s28 = smov %s1053_s0  ;;  %27 = sbr.rel (!%p25_p5) target bundleno = 9 (0x9), region = 94 }
 0x16f   :  { %628 = vsyncpa [#allocation5], 1 }
 0x170   :  { %630 = vsyncpa [#allocation5 + $0x1], 1 }

// kernel: cogvlm_forward.11
= control target key start
LH: loop header
LB: loop body
LE: loop exit
PB: predicated region body
PF: predicated region fallthrough
CT: control target
= control target key end

     0   :  { %s1894_s30 = smov [#allocation3]   ;;  %s2363_s0 = inlined_call_operand.vmem [shape: s32[4], index: 0, kind: input, shape index: {}]   ;;  %s2364_s1 = inlined_call_operand.vmem [shape: bf16[64,128], index: 1, kind: input, shape index: {}]   ;;  %s2365_s2 = inlined_call_operand.vmem [shape: f32[64,128], index: 2, kind: input, shape index: {}]   ;;  %s2366_s3 = inlined_call_operand.vmem [shape: f32[1,128], index: 3, kind: input, shape index: {}]   ;;  %s2367_s4 = inlined_call_operand.vmem [shape: f32[1,128], index: 4, kind: input, shape index: {}]   ;;  %s2368_s5 = inlined_call_operand.hbm [shape: bf16[2,128,128], index: 5, kind: input, shape index: {}]   ;;  %s2369_s6 = inlined_call_operand.vmem [shape: bf16[2,128,512], index: 6, kind: input, shape index: {}]   ;;  %s2370_s7 = inlined_call_operand.hbm [shape: bf16[2,256,128], index: 7, kind: input, shape index: {}]   ;;  %s2371_s8 = inlined_call_operand.hbm [shape: f32[64,128], index: 8, kind: output, shape index: {}]  }
   0x1   :  { %2386 = sst [smem:[#allocation27_spill]] %s2367_s4  ;;  %s14_s29 = sshll.u32 %s2363_s0, 4  ;;  %s15_s29 = int_to_ptr.vmem [resolvable:$true] %s14_s29 }
   0x2   :  { %2387 = sst [smem:[#allocation28_spill]] %s2368_s5 }
   0x3   :  { %2388 = sst [smem:[#allocation29_spill]] %s2371_s8 }
   0x4   :  { %17 = dma.vmem_to_smem %s15_s29, 16, %s1894_s30, [#allocation2] }
   0x5   :  { %1840 = dma.done.wait [#allocation2], 16 }
   0x6   :  { %1841 = vsyncadd [#allocation2], 4294967280 }
   0x7   :  { %20 = sfence }
   0x8   :  { %21 = vsyncpa [#allocation5], 0 }
   0x9   :  { %23 = vsyncpa [#allocation5 + $0x1], 0 }
   0xa   :  { %24 = vsyncpa [#allocation8], 0 }
   0xb   :  { %26 = vsyncpa [#allocation8 + $0x1], 0 }
   0xc   :  { %27 = vsyncpa [#allocation6], 0 }
   0xd   :  { %29 = vsyncpa [#allocation6 + $0x1], 0  ;;  %s1948_s9 = smov 0   ;;  %s1950_s10 = smov 0  }
   0xe   :  { %s1952_s11 = smov 0   ;;  %s1954_s12 = smov 0  }
   0xf   :  { %s1956_s0 = smov 0   ;;  %s1958_s13 = smov 0  }
  0x10   :  { %s1960_s14 = smov 0   ;;  %s1962_s15 = smov 0  }
  0x11   :  { %s1964_s16 = smov 0   ;;  %s1966_s17 = smov 0  }
  0x12 LB: > { %2389 = sst [smem:[#allocation18_spill]] %s1856_s9  ;;  %s1997_s18 = sadd.s32 4294967295, %s1892_s17   ;;  %s1892_s17 = sphi %s1966_s17, %s2438_s17   ;;  %s1888_s16 = sphi %s1964_s16, %s2437_s16   ;;  %s1884_s15 = sphi %s1962_s15, %s2436_s15   ;;  %s1880_s14 = sphi %s1960_s14, %s2435_s14   ;;  %s1876_s13 = sphi %s1958_s13, %s2434_s13   ;;  %s1872_s0 = sphi %s1956_s0, %s2433_s0   ;;  %s1868_s12 = sphi %s1954_s12, %s2432_s12   ;;  %s1864_s11 = sphi %s1952_s11, %s2429_s11   ;;  %s1860_s10 = sphi %s1950_s10, %s2428_s10   ;;  %s1856_s9 = sphi %s1948_s9, %s2427_s9  }
  0x13   : > { %2390 = sst [smem:[#allocation19_spill]] %s1860_s10  ;;  %s1242_s19 = sadd.s32 4294967294, %s1892_s17  }
  0x14   : > { %2391 = sst [smem:[#allocation20_spill]] %s1864_s11  ;;  %s2001_s20 = sadd.s32 1, %s1892_s17  }
  0x15   : > { %2392 = sst [smem:[#allocation21_spill]] %s1888_s16  ;;  %s138_s23 = sadd.s32 1, %s1888_s16 }
  0x16   : > { %s133_s21 = sld [smem:[#allocation3 + %s1892_s17]]  ;;  %p145_p0 = scmp.ne.s32.totalorder %s1888_s16, %s1884_s15 }
  0x17   : > { %s134_s22 = sld [smem:[#allocation3 + %s2001_s20]]  ;;  %p2383_p1 = scmp.eq.s32.totalorder %s1892_s17, 0 }
  0x18   : > { %p151_p2 = scmp.ne.s32.totalorder %s1884_s15, %s1880_s14  ;;  %p152_p3 = scmp.eq.s32.totalorder %s1997_s18, 0 }
  0x19   : > { %p2013_p4 = por %p2383_p1, %p145_p0  ;;  %s217_s25 = ssub.s32 %s1892_s17, %s2001_s20 }
  0x1a   : > { %p2021_p5 = por %p152_p3, %p151_p2  ;;  %p218_p6 = scmp.eq.s32.totalorder %s217_s25, 0 }
  0x1b   : > { %s220_s27 = sadd.s32 1, %s1864_s11  ;;  %p230_p7 = scmp.ne.s32.totalorder %s1864_s11, %s1860_s10 }
  0x1c   : > { %p231_p8 = scmp.eq.s32.totalorder %s1997_s18, 3  ;;  %p236_p10 = scmp.ne.s32.totalorder %s1860_s10, %s1856_s9 }
  0x1d   : > { %s135_s28 = ssub.s32 %s133_s21, %s134_s22  ;;  %p237_p12 = scmp.eq.s32.totalorder %s1242_s19, 3 }
  0x1e   : > { %p136_p9 = scmp.eq.s32.totalorder %s135_s28, 0  ;;  %p2037_p11 = por %p231_p8, %p230_p7 }
  0x1f   : > { %s2032_s29 = scalar_select %p218_p6, %s1864_s11, %s220_s27  }
  0x20   : > { %s2035_s30 = scalar_select %p136_p9, %s1888_s16, %s138_s23  }
  0x21   : > { %2395 = sst [smem:[#allocation22_spill]] %s2032_s29  ;;  %p2382_p13 = scmp.lt.s32.totalorder %s1892_s17, 4 }
  0x22   : > { %2396 = sst [smem:[#allocation23_spill]] %s2035_s30  ;;  %p2042_p0 = por %p237_p12, %p236_p10 }
  0x23   : > { %s2397_s14 = scalar_select %p2037_p11, 1, 0 }
  0x24   : > { %s2399_s25 = scalar_select %p2042_p0, 1, 0 }
  0x25   : > { %2398 = sst [smem:[#allocation24_spill]] %s2397_s14  ;;  %s281_s21 = sand.u32 1, %s1888_s16  }
  0x26   : > { %2400 = sst [smem:[#allocation25_spill]] %s2399_s25  ;;  %s1245_s22 = sshll.u32 %s281_s21, 6 }
  0x27   : > { %p2051_p2 = pnand %p2382_p13, %p2013_p4  ;;  %s285_s19 = scalar_lea.vmem [#allocation4], %s1245_s22 }
  0x28   : > { %s1559_s27 = scalar_select %p2013_p4, [#allocation3], [#allocation10] }
  0x29   : > { %s1560_s28 = scalar_select %p2013_p4, %s1892_s17, 0 }
  0x2a   : > { %s2440_s27 = smov (!%p2382_p13, %s1559_s27), [#allocation12]  ;;  %s2064_s30 = sshll.u32 %s285_s19, 4 }
  0x2b   : > { %s2442_s28 = smov (!%p2382_p13, %s1560_s28), 0  ;;  %2402 = sst [smem:[#allocation26_spill]] %s2064_s30 }
  0x2c   : > { %s286_s16 = sld [smem:[%s2440_s27 + %s2442_s28]]  ;;  %p1251_p6 = scmp.ge.s32.totalorder %s1892_s17, 1 }
  0x2d   : > { %p335_p7 = scmp.lt.s32.totalorder %s1892_s17, 5  ;;  %s2404_s5 = sld [smem:[#allocation28_spill]] }
  0x2e   : > { %s189_s14 = sld [smem:[#allocation3 + %s1892_s17]]  ;;  %s282_s19 = scalar_lea.sflag [#allocation5], %s281_s21 }
  0x2f   : > { %p2069_p8 = pnand %p1251_p6, %p335_p7  ;;  %s190_s22 = sld [smem:[#allocation3 + %s2001_s20]] }
  0x30   : > { %p1716_p9 = pneg %p2051_p2 }
  0x32   : > { %s1498_s11 = sshll.u32 %s286_s16, 6 }
  0x33   : > { %s291_s9 = scalar_lea.hbm %s2404_s5, %s1498_s11  ;;  %s1719_s16 = scalar_lea.hbm %s2404_s5, 128 }
  0x34   : > { %s292_s8 = sshll.u32 %s291_s9, 4  ;;  %s293_s8 = int_to_ptr.hbm [resolvable:$true] %s292_s8 }
  0x35   : > { %s1712_s4 = sshra.s32 %s293_s8, 4  ;;  %s1713_s4 = int_to_ptr.hbm [resolvable:$true] %s1712_s4 }
  0x36   : > { %s1714_s27 = scalar_lea.hbm %s1713_s4, 64  ;;  %p1720_p6 = scmp.lt.s32.totalorder %s1713_s4, %s2404_s5 }
  0x37   : > { %p1715_p4 = scmp.ne.s32.totalorder %s1713_s4, %s1714_s27  ;;  %p1721_p7 = scmp.lt.s32.totalorder %s1719_s16, %s1714_s27 }
  0x39   : > { %p1717_p10 = pnand %p1716_p9, %p1715_p4  ;;  %p1722_p13 = por %p1721_p7, %p1720_p6 }
  0x3b   : > { %p1718_p12 = pneg %p1717_p10 }
  0x3d   : > { %p1723_p1 = pnand %p1722_p13, %p1718_p12 }
  0x3f   : > { %1726 = shalt.err (!%p1723_p1)
}
  0x40   : > { %s2384_s9 = smov 64   ;;  %s2405_s11 = sld [smem:[#allocation26_spill]] }
  0x41   : > { %s2385_s4 = smov 4   ;;  %p201_p1 = scmp.ne.s32.totalorder %s1876_s13, %s1872_s0 }
  0x42   : > { %p207_p13 = scmp.ne.s32.totalorder %s1872_s0, %s1868_s12  ;;  %s194_s30 = sadd.s32 1, %s1876_s13 }
  0x43   : > { %s314_s24 = sand.u32 1, %s1876_s13   ;;  %s191_s27 = ssub.s32 %s189_s14, %s190_s22 }
  0x44   : > { %p2100_p4 = por %p207_p13, %p152_p3  ;;  %p2408_p9 = scmp.eq.s32.totalorder %s1892_s17, 0 }
  0x45   : > { %p192_p12 = scmp.eq.s32.totalorder %s191_s27, 0  ;;  %s1248_s23 = sshll.u32 %s314_s24, 7 }
  0x46   : > { %s2406_s10 = int_to_ptr.vmem [resolvable:$true] %s2405_s11  ;;  %p203_p10 = por %p201_p1, %p2408_p9 }
  0x47   : > { %1574 = dma.hbm_to_vmem [thread:$0]  (!%p2051_p2), %s293_s8, 1024, %s2406_s10, %s282_s19, %s2384_s9, %s2384_s9, %s2385_s4  }
  0x48   : > { %p2409_p6 = scmp.lt.s32.totalorder %s1892_s17, 4  ;;  %s318_s14 = scalar_lea.vmem [#allocation7], %s1248_s23 }
  0x49   : > { %s2114_s8 = scalar_select %p192_p12, %s1876_s13, %s194_s30  }
  0x4a   : > { %p2109_p7 = pnand %p2409_p6, %p203_p10  ;;  %p2411_p2 = pmov %p2409_p6 }
  0x4b   : > { %s1562_s12 = scalar_select %p203_p10, [#allocation3], [#allocation11] }
  0x4c   : > { %s1563_s19 = scalar_select %p203_p10, %s1892_s17, 0 }
  0x4d   : > { %s2444_s12 = smov (!%p2411_p2, %s1562_s12), [#allocation13]  ;;  %p2412_p3 = pmov %p2411_p2 }
  0x4e   : > { %s327_s22 = sshll.u32 %s318_s14, 4  ;;  %s315_s30 = scalar_lea.sflag [#allocation8], %s314_s24  ;;  %s328_s22 = int_to_ptr.vmem [resolvable:$true] %s327_s22 }
  0x4f   : > { %s2446_s19 = smov (!%p2412_p3, %s1563_s19), 0  ;;  %p1746_p13 = pneg %p2109_p7 }
  0x50   : > { %s319_s16 = sld [smem:[%s2444_s12 + %s2446_s19]]  ;;  %s1749_s19 = scalar_lea.hbm %s2370_s7, 256 }
  0x56   : > { %s1499_s25 = sshll.u32 %s319_s16, 7 }
  0x57   : > { %s324_s27 = scalar_lea.hbm %s2370_s7, %s1499_s25 }
  0x58   : > { %s325_s9 = sshll.u32 %s324_s27, 4  ;;  %s326_s9 = int_to_ptr.hbm [resolvable:$true] %s325_s9 }
  0x59   : > { %s1742_s4 = sshra.s32 %s326_s9, 4  ;;  %s1743_s4 = int_to_ptr.hbm [resolvable:$true] %s1742_s4 }
  0x5a   : > { %s1744_s5 = scalar_lea.hbm %s1743_s4, 128  ;;  %p1750_p12 = scmp.lt.s32.totalorder %s1743_s4, %s2370_s7 }
  0x5b   : > { %p1745_p1 = scmp.ne.s32.totalorder %s1743_s4, %s1744_s5  ;;  %p1751_p6 = scmp.lt.s32.totalorder %s1749_s19, %s1744_s5 }
  0x5d   : > { %p1747_p9 = pnand %p1746_p13, %p1745_p1  ;;  %p1752_p2 = por %p1751_p6, %p1750_p12 }
  0x5f   : > { %p1748_p10 = pneg %p1747_p9 }
  0x61   : > { %p1753_p3 = pnand %p1752_p2, %p1748_p10 }
  0x63   : > { %1756 = shalt.err (!%p1753_p3)
}
  0x64   : > { %s2413_s24 = smov 4   ;;  %s2414_s25 = smov 64  }
  0x65   : > { %1579 = dma.hbm_to_vmem [thread:$0]  (!%p2109_p7), %s326_s9, 2048, %s328_s22, %s315_s30, %s2414_s25, %s2414_s25, %s2413_s24  }
  0x66   : > { %339 = sbr.rel (%p2069_p8) target bundleno = 890 (0x37a), region = 48  ;;  %s341_s11 = sand.u32 (!%p2069_p8), 1, %s1884_s15  }
  0x67   : > { %s1252_s10 = sshll.u32 (!%p2069_p8), %s341_s11, 6  ;;  %s342_s27 = scalar_lea.sflag (!%p2069_p8), [#allocation5], %s341_s11 }
  0x68   : > { %s345_s12 = scalar_lea.vmem (!%p2069_p8), [#allocation4], %s1252_s10 }
  0x6b   : > { %1843 = dma.done.wait (%p2021_p5), %s342_s27, 1024  }
  0x6c   : > { %1845 = vsyncadd (%p2021_p5), %s342_s27, 4294966272  ;;  %s351_s5 = sand.u32 1, %s1872_s0  }
  0x6d   : > { %s1253_s4 = sshll.u32 %s351_s5, 7  ;;  %s352_s28 = scalar_lea.sflag [#allocation8], %s351_s5 }
  0x6e   : > { %s2145_s9 = scalar_lea.vmem [#allocation7], %s1253_s4 }
  0x6f   : > { %1847 = dma.done.wait (%p2100_p4), %s352_s28, 2048  }
  0x70   : > { %1849 = vsyncadd (%p2100_p4), %s352_s28, 4294965248  ;;  %v1509_v0 = vld [vmem:[%s345_s12 + $0x38] sm:$0xff]  ;;  %v1508_v1 = vld [vmem:[%s345_s12 + $0x30] sm:$0xff]  ;;  %s1255_s26 = sshll.u32 %s1997_s18, 1  ;;  %s421_s24 = sld [smem:[#allocation3 + %s1997_s18]]  ;;  %v1897_v24 = vmov 128.0  }
  0x71   : > { %504 = vmatpush.bf16.msra.mxu0 %v1509_v0  ;;  %v1507_v2 = vld [vmem:[%s345_s12 + $0x28] sm:$0xff]  ;;  %v1506_v3 = vld [vmem:[%s345_s12 + $0x20] sm:$0xff]  ;;  %v1505_v4 = vld [vmem:[%s345_s12 + $0x18] sm:$0xff]  ;;  %p409_p5 = scmp.lt.s32.totalorder %s1255_s26, 7  ;;  %1674 = vrcp.f32 %v1897_v24  ;;  %s2421_s4 = sld [smem:[#allocation19_spill]] }
  0x72   : > { %v1504_v5 = vld [vmem:[%s345_s12 + $0x10] sm:$0xff]  ;;  %v1503_v6 = vld [vmem:[%s345_s12 + $0x8] sm:$0xff]  ;;  %v1502_v7 = vld [vmem:[%s345_s12] sm:$0xff]  ;;  %s1558_s22 = sshll.u32 %s1997_s18, 4  ;;  %s2423_s19 = sld [smem:[#allocation29_spill]] }
  0x73   : > { %s2448_s26 = smov (!%p409_p5, %s1255_s26), 7 }
  0x74   : > { %s1256_s29 = sshll.u32 %s2448_s26, 2  ;;  %s1258_s23 = sshll.u32 %s2448_s26, 3 }
  0x75   : > { %505 = vmatpush.bf16.msra.mxu0 %v1508_v1  ;;  %s412_s30 = scalar_lea.vmem %s2364_s1, %s1256_s29  ;;  %s418_s14 = scalar_lea.vmem %s2365_s2, %s1258_s23 }
  0x76   : > { %v1501_v8 = vld [vmem:[%s412_s30] sm:$0xff]  ;;  %v449_v13 = vld [vmem:[%s418_s14 + $0x8] sm:$0xff]  ;;  %p422_p8 = scmp.lt.s32.totalorder %s421_s24, 1  ;;  %s2422_s29 = sld [smem:[#allocation27_spill]] }
  0x77   : > { %v448_v9 = vld [vmem:[%s418_s14] sm:$0xff]  ;;  %v2188_v42 = vpop.eup %1674  ;;  %s405_s28 = sand.u32 1, %s2421_s4  }
  0x78   : > { %s2450_s24 = smov (!%p422_p8, %s421_s24), 1  ;;  %v525_v54 = vmul.f32 128.0, %v2188_v42  ;;  %vm529_vm0 = vweird.f32 %v2188_v42  ;;  %s1254_s21 = sshll.u32 %s405_s28, 4 }
  0x79   : > { %506 = vmatpush.bf16.msra.mxu0 %v1507_v2  ;;  %s1500_s25 = sshll.u32 %s2450_s24, 8  ;;  %s1106_s16 = scalar_lea.hbm %s2423_s19, %s1558_s22 }
  0x7a   : > { %s2170_s27 = scalar_lea.vmem %s2369_s6, %s1500_s25  ;;  %s407_s14 = scalar_lea.vmem [#allocation9], %s1254_s21 }
  0x7b   : > { %v1411_v17 = vld [vmem:[%s2170_s27 + $0xe0] sm:$0xf]  ;;  %v1540_v18 = vld [vmem:[%s2170_s27 + $0xec] sm:$0xf0]  ;;  %v1538_v19 = vld [vmem:[%s2170_s27 + $0xe4] sm:$0xf] }
  0x7c   : > { %v1412_v20 = vor.u32 %v1540_v18, %v1411_v17  ;;  %v1413_v21 = vld [vmem:[%s2170_s27 + $0xf0] sm:$0xf0]  ;;  %v1419_v22 = vld [vmem:[%s2170_s27 + $0xe8] sm:$0xf]  ;;  %v1541_v23 = vld [vmem:[%s2170_s27 + $0xf4] sm:$0xf0] }
  0x7d   : > { %507 = vmatpush.bf16.msra.mxu0 %v1506_v3  ;;  %v1416_v25 = vor.u32 %v1538_v19, %v1413_v21  ;;  %v1420_v26 = vor.u32 %v1541_v23, %v1419_v22  ;;  %v1539_v27 = vld [vmem:[%s2170_s27 + $0xec] sm:$0xf]  ;;  %v1421_v28 = vld [vmem:[%s2170_s27 + $0xf8] sm:$0xf0]  ;;  %v1395_v30 = vld [vmem:[%s2170_s27 + $0xc0] sm:$0xf] }
  0x7e   : > { %756 = vmatpush.bf16.msra.mxu1 %v1412_v20  ;;  %v1424_v29 = vor.u32 %v1539_v27, %v1421_v28  ;;  %v1536_v31 = vld [vmem:[%s2170_s27 + $0xcc] sm:$0xf0]  ;;  %v1534_v32 = vld [vmem:[%s2170_s27 + $0xc4] sm:$0xf]  ;;  %v1397_v34 = vld [vmem:[%s2170_s27 + $0xd0] sm:$0xf0] }
  0x7f   : > { %770 = vmatpush.bf16.msra.mxu2 %v1416_v25  ;;  %784 = vmatpush.bf16.msra.mxu3 %v1420_v26  ;;  %v1396_v33 = vor.u32 %v1536_v31, %v1395_v30  ;;  %v1403_v35 = vld [vmem:[%s2170_s27 + $0xc8] sm:$0xf]  ;;  %v1537_v36 = vld [vmem:[%s2170_s27 + $0xd4] sm:$0xf0]  ;;  %v1400_v37 = vor.u32 %v1534_v32, %v1397_v34  ;;  %v1535_v39 = vld [vmem:[%s2170_s27 + $0xcc] sm:$0xf] }
  0x80   : > { %v1404_v38 = vor.u32 %v1537_v36, %v1403_v35  ;;  %v1405_v40 = vld [vmem:[%s2170_s27 + $0xd8] sm:$0xf0]  ;;  %v1379_v43 = vld [vmem:[%s2170_s27 + $0xa0] sm:$0xf]  ;;  %v1532_v44 = vld [vmem:[%s2170_s27 + $0xac] sm:$0xf0] }
  0x81   : > { %508 = vmatpush.bf16.msra.mxu0 %v1505_v4  ;;  %v1408_v41 = vor.u32 %v1535_v39, %v1405_v40  ;;  %v1530_v45 = vld [vmem:[%s2170_s27 + $0xa4] sm:$0xf]  ;;  %v1380_v46 = vor.u32 %v1532_v44, %v1379_v43  ;;  %v1381_v47 = vld [vmem:[%s2170_s27 + $0xb0] sm:$0xf0]  ;;  %v1387_v48 = vld [vmem:[%s2170_s27 + $0xa8] sm:$0xf] }
  0x82   : > { %757 = vmatpush.bf16.msra.mxu1 %v1396_v33  ;;  %v1533_v49 = vld [vmem:[%s2170_s27 + $0xb4] sm:$0xf0]  ;;  %v1384_v50 = vor.u32 %v1530_v45, %v1381_v47  ;;  %v1531_v52 = vld [vmem:[%s2170_s27 + $0xac] sm:$0xf]  ;;  %v1389_v53 = vld [vmem:[%s2170_s27 + $0xb8] sm:$0xf0] }
  0x83   : > { %771 = vmatpush.bf16.msra.mxu2 %v1400_v37  ;;  %785 = vmatpush.bf16.msra.mxu3 %v1404_v38  ;;  %v1388_v51 = vor.u32 %v1533_v49, %v1387_v48  ;;  %v1392_v55 = vor.u32 %v1531_v52, %v1389_v53  ;;  %v1363_v56 = vld [vmem:[%s2170_s27 + $0x80] sm:$0xf]  ;;  %v1528_v57 = vld [vmem:[%s2170_s27 + $0x8c] sm:$0xf0]  ;;  %v1526_v58 = vld [vmem:[%s2170_s27 + $0x84] sm:$0xf] }
  0x84   : > { %v1364_v59 = vor.u32 %v1528_v57, %v1363_v56  ;;  %v1365_v60 = vld [vmem:[%s2170_s27 + $0x90] sm:$0xf0]  ;;  %v1371_v61 = vld [vmem:[%s2170_s27 + $0x88] sm:$0xf]  ;;  %v1529_v62 = vld [vmem:[%s2170_s27 + $0x94] sm:$0xf0] }
  0x85   : > { %509 = vmatpush.bf16.msra.mxu0 %v1504_v5  ;;  %v1368_v63 = vor.u32 %v1526_v58, %v1365_v60  ;;  %v1372_v0 = vor.u32 %v1529_v62, %v1371_v61  ;;  %v1527_v1 = vld [vmem:[%s2170_s27 + $0x8c] sm:$0xf]  ;;  %v1373_v2 = vld [vmem:[%s2170_s27 + $0x98] sm:$0xf0]  ;;  %v526_v3 = vsub.f32 1.0, %v525_v54  ;;  %s1107_s25 = sshll.u32 %s407_s14, 4  ;;  %s1108_s25 = int_to_ptr.vmem [resolvable:$true] %s1107_s25 }
  0x86   : > { %758 = vmatpush.bf16.msra.mxu1 %v1380_v46  ;;  %v1376_v4 = vor.u32 %v1527_v1, %v1373_v2  ;;  %v1347_v5 = vld [vmem:[%s2170_s27 + $0x60] sm:$0xf]  ;;  %v1357_v17 = vld [vmem:[%s2170_s27 + $0x78] sm:$0xf0]  ;;  %v1520_v21 = vld [vmem:[%s2170_s27 + $0x4c] sm:$0xf0] }
  0x87   : > { %772 = vmatpush.bf16.msra.mxu2 %v1384_v50  ;;  %786 = vmatpush.bf16.msra.mxu3 %v1388_v51  ;;  %v527_v18 = vmul.f32 %v2188_v42, %v526_v3  ;;  %v1331_v20 = vld [vmem:[%s2170_s27 + $0x40] sm:$0xf]  ;;  %v1518_v22 = vld [vmem:[%s2170_s27 + $0x44] sm:$0xf]  ;;  %v1333_v24 = vld [vmem:[%s2170_s27 + $0x50] sm:$0xf0] }
  0x88   : > { %v1332_v23 = vor.u32 %v1520_v21, %v1331_v20  ;;  %v1339_v25 = vld [vmem:[%s2170_s27 + $0x48] sm:$0xf]  ;;  %v1521_v26 = vld [vmem:[%s2170_s27 + $0x54] sm:$0xf0]  ;;  %v1336_v27 = vor.u32 %v1518_v22, %v1333_v24  ;;  %v1341_v30 = vld [vmem:[%s2170_s27 + $0x58] sm:$0xf0] }
  0x89   : > { %510 = vmatpush.bf16.msra.mxu0 %v1503_v6  ;;  %v1524_v6 = vld [vmem:[%s2170_s27 + $0x6c] sm:$0xf0]  ;;  %v1340_v28 = vor.u32 %v1521_v26, %v1339_v25  ;;  %v528_v31 = vadd.f32 %v2188_v42, %v527_v18  ;;  %v1315_v33 = vld [vmem:[%s2170_s27 + $0x20] sm:$0xf]  ;;  %v1514_v35 = vld [vmem:[%s2170_s27 + $0x24] sm:$0xf] }
  0x8a   : > { %759 = vmatpush.bf16.msra.mxu1 %v1364_v59  ;;  %v1516_v34 = vld [vmem:[%s2170_s27 + $0x2c] sm:$0xf0]  ;;  %v1317_v37 = vld [vmem:[%s2170_s27 + $0x30] sm:$0xf0]  ;;  %v1323_v38 = vld [vmem:[%s2170_s27 + $0x28] sm:$0xf] }
  0x8b   : > { %773 = vmatpush.bf16.msra.mxu2 %v1368_v63  ;;  %787 = vmatpush.bf16.msra.mxu3 %v1372_v0  ;;  %v1316_v36 = vor.u32 %v1516_v34, %v1315_v33  ;;  %v1517_v39 = vld [vmem:[%s2170_s27 + $0x34] sm:$0xf0]  ;;  %v1320_v40 = vor.u32 %v1514_v35, %v1317_v37  ;;  %v1515_v43 = vld [vmem:[%s2170_s27 + $0x2c] sm:$0xf]  ;;  %v1325_v44 = vld [vmem:[%s2170_s27 + $0x38] sm:$0xf0]  ;;  %v2235_v45 = vsel %vm529_vm0, %v2188_v42, %v528_v31 }
  0x8c   : > { %v1328_v46 = vor.u32 %v1515_v43, %v1325_v44  ;;  %v1299_v47 = vld [vmem:[%s2170_s27] sm:$0xf]  ;;  %v1512_v48 = vld [vmem:[%s2170_s27 + $0xc] sm:$0xf0]  ;;  %v1510_v49 = vld [vmem:[%s2170_s27 + $0x4] sm:$0xf] }
  0x8d   : > { %511 = vmatpush.bf16.msra.mxu0 %v1502_v7  ;;  %v1522_v7 = vld [vmem:[%s2170_s27 + $0x64] sm:$0xf]  ;;  %v1300_v51 = vor.u32 %v1512_v48, %v1299_v47  ;;  %v1301_v52 = vld [vmem:[%s2170_s27 + $0x10] sm:$0xf0]  ;;  %v1307_v53 = vld [vmem:[%s2170_s27 + $0x8] sm:$0xf] }
  0x8e   : > { %v1513_v54 = vld [vmem:[%s2170_s27 + $0x14] sm:$0xf0]  ;;  %v1304_v56 = vor.u32 %v1510_v49, %v1301_v52  ;;  %v1511_v57 = vld [vmem:[%s2170_s27 + $0xc] sm:$0xf]  ;;  %v1309_v58 = vld [vmem:[%s2170_s27 + $0x18] sm:$0xf0] }
  0x8f   : > { %v1308_v42 = vor.u32 %v1513_v54, %v1307_v53  ;;  %v1312_v59 = vor.u32 %v1511_v57, %v1309_v58  ;;  %v1549_v22 = vld [vmem:[%s2145_s9 + $0x38] sm:$0xff]  ;;  %v1547_v25 = vld [vmem:[%s2145_s9 + $0x28] sm:$0xff]  ;;  %v1556_v26 = vld [vmem:[%s2145_s9 + $0x70] sm:$0xff]  ;;  %s1109_s11 = sshll.u32 %s1106_s16, 4  ;;  %s1095_s18 = scalar_lea.sflag [#allocation6], %s405_s28  ;;  %s1110_s11 = int_to_ptr.hbm [resolvable:$true] %s1109_s11 }
  0x90   : > { %512 = vmatmul.bf16.vlgmr.msra.gmra.mxu0 %v1501_v8  ;;  %v1348_v8 = vor.u32 %v1524_v6, %v1347_v5  ;;  %v1557_v24 = vld [vmem:[%s2145_s9 + $0x78] sm:$0xff]  ;;  %v1543_v35 = vld [vmem:[%s2145_s9 + $0x8] sm:$0xff]  ;;  %v1552_v37 = vld [vmem:[%s2145_s9 + $0x50] sm:$0xff]  ;;  %s1786_s10 = sshra.s32 %s1110_s11, 4  ;;  %s1787_s10 = int_to_ptr.hbm [resolvable:$true] %s1786_s10 }
  0x91   : > { %798 = vmatpush.bf16.msrb.mxu0 %v1424_v29  ;;  %v1519_v29 = vld [vmem:[%s2170_s27 + $0x4c] sm:$0xf]  ;;  %v1553_v34 = vld [vmem:[%s2145_s9 + $0x58] sm:$0xff]  ;;  %v1550_v47 = vld [vmem:[%s2145_s9 + $0x40] sm:$0xff]  ;;  %p1793_p13 = scmp.lt.s32.totalorder %s1787_s10, %s2423_s19 }
  0x92   : > { %760 = vmatpush.bf16.msra.mxu1 %v1348_v8  ;;  %v1344_v32 = vor.u32 %v1519_v29, %v1341_v30  ;;  %v1545_v29 = vld [vmem:[%s2145_s9 + $0x18] sm:$0xff]  ;;  %v1554_v30 = vld [vmem:[%s2145_s9 + $0x60] sm:$0xff] }
  0x95   : > { %799 = vmatpush.bf16.msrb.mxu0 %v1408_v41  ;;  %v1324_v41 = vor.u32 %v1517_v39, %v1323_v38 }
  0x96   : > { %761 = vmatpush.bf16.msra.mxu1 %v1332_v23  ;;  %v1548_v23 = vld [vmem:[%s2145_s9 + $0x30] sm:$0xff] }
  0x99   : > { %800 = vmatpush.bf16.msrb.mxu0 %v1392_v55 }
  0x9a   : > { %762 = vmatpush.bf16.msra.mxu1 %v1316_v36 }
  0x9d   : > { %801 = vmatpush.bf16.msrb.mxu0 %v1376_v4 }
  0x9e   : > { %763 = vmatpush.bf16.msra.mxu1 %v1300_v51 }
  0xa2   : > { %1026 = vmatpush.bf16.msrb.mxu1 %v1549_v22 }
  0xa6   : > { %1027 = vmatpush.bf16.msrb.mxu1 %v1548_v23 }
  0xaa   : > { %1028 = vmatpush.bf16.msrb.mxu1 %v1547_v25 }
 0x10d   : > { %v513_v10 = vpop.f32.mrf.mxu0 }
 0x10e   : > { %v2158_v11 = vadd.f32 %v513_v10, %v448_v9  ;;  %v1349_v9 = vld [vmem:[%s2170_s27 + $0x70] sm:$0xf0]  ;;  %v1355_v10 = vld [vmem:[%s2170_s27 + $0x68] sm:$0xf] }
 0x110   : > { %v518_v12 = vmul.f32 %v2158_v11, %v2158_v11 }
 0x112   : > { %520 = vadd.xlane.f32.xlu0 %v518_v12  ;;  %v1525_v12 = vld [vmem:[%s2170_s27 + $0x74] sm:$0xf0] }
 0x115   : > { %v515_v14 = vpop.f32.mrf.mxu0 }
 0x116   : > { %v2162_v15 = vadd.f32 %v515_v14, %v449_v13  ;;  %v1352_v13 = vor.u32 %v1522_v7, %v1349_v9  ;;  %v1356_v14 = vor.u32 %v1525_v12, %v1355_v10 }
 0x118   : > { %v519_v16 = vmul.f32 %v2162_v15, %v2162_v15  ;;  %774 = vmatpush.bf16.msra.mxu2 %v1352_v13  ;;  %788 = vmatpush.bf16.msra.mxu3 %v1356_v14 }
 0x11a   : > { %522 = vadd.xlane.f32.xlu0 %v519_v16  ;;  %v1523_v16 = vld [vmem:[%s2170_s27 + $0x6c] sm:$0xf]  ;;  %s1788_s27 = scalar_lea.hbm %s1787_s10, 16 }
 0x11b   : > { %v1360_v19 = vor.u32 %v1523_v16, %v1357_v17  ;;  %v1672_v16 = vld [vmem:[%s2366_s3] ss:$0 sm:$0xff]  ;;  %p1789_p4 = scmp.ne.s32.totalorder %s1787_s10, %s1788_s27 }
 0x11c   : > { %775 = vmatpush.bf16.msra.mxu2 %v1336_v27  ;;  %789 = vmatpush.bf16.msra.mxu3 %v1340_v28  ;;  %v1546_v27 = vld [vmem:[%s2145_s9 + $0x20] sm:$0xff]  ;;  %v1555_v28 = vld [vmem:[%s2145_s9 + $0x68] sm:$0xff] }
 0x11d   : > { %802 = vmatpush.bf16.msrb.mxu0 %v1360_v19  ;;  %1029 = vmatpush.bf16.msrb.mxu1 %v1546_v27  ;;  %p1790_p7 = pnand %p1789_p4, %p2037_p11 }
 0x11f   : > { %p1791_p1 = pneg %p1790_p7 }
 0x120   : > { %776 = vmatpush.bf16.msra.mxu2 %v1320_v40  ;;  %790 = vmatpush.bf16.msra.mxu3 %v1324_v41  ;;  %v1542_v40 = vld [vmem:[%s2145_s9] sm:$0xff] }
 0x121   : > { %803 = vmatpush.bf16.msrb.mxu0 %v1344_v32  ;;  %1030 = vmatpush.bf16.msrb.mxu1 %v1545_v29  ;;  %v1544_v32 = vld [vmem:[%s2145_s9 + $0x10] sm:$0xff] }
 0x124   : > { %777 = vmatpush.bf16.msra.mxu2 %v1304_v56  ;;  %791 = vmatpush.bf16.msra.mxu3 %v1308_v42 }
 0x125   : > { %804 = vmatpush.bf16.msrb.mxu0 %v1328_v46  ;;  %1031 = vmatpush.bf16.msrb.mxu1 %v1544_v32  ;;  %v1551_v46 = vld [vmem:[%s2145_s9 + $0x48] sm:$0xff]  ;;  %s1792_s9 = scalar_lea.hbm %s2423_s19, 64 }
 0x126   : > { %p1794_p9 = scmp.lt.s32.totalorder %s1792_s9, %s1788_s27 }
 0x128   : > { %1040 = vmatpush.bf16.msrb.mxu2 %v1557_v24  ;;  %p1795_p10 = por %p1794_p9, %p1793_p13 }
 0x129   : > { %805 = vmatpush.bf16.msrb.mxu0 %v1312_v59  ;;  %1032 = vmatpush.bf16.msrb.mxu1 %v1543_v35 }
 0x12a   : > { %p1796_p12 = pnand %p1795_p10, %p1791_p1 }
 0x12c   : > { %1041 = vmatpush.bf16.msrb.mxu2 %v1556_v26 }
 0x12d   : > { %1033 = vmatpush.bf16.msrb.mxu1 %v1542_v40 }
 0x130   : > { %1042 = vmatpush.bf16.msrb.mxu2 %v1555_v28 }
 0x134   : > { %1043 = vmatpush.bf16.msrb.mxu2 %v1554_v30 }
 0x138   : > { %1044 = vmatpush.bf16.msrb.mxu2 %v1553_v34 }
 0x13c   : > { %1045 = vmatpush.bf16.msrb.mxu2 %v1552_v37 }
 0x140   : > { %1046 = vmatpush.bf16.msrb.mxu2 %v1551_v46 }
 0x144   : > { %1047 = vmatpush.bf16.msrb.mxu2 %v1550_v47 }
 0x185   : > { %v521_v50 = vpop.xlane.xlu0 %520 }
 0x186   : > { %v531_v55 = vmul.f32 %v2235_v45, %v521_v50 }
 0x188   : > { %v533_v60 = vadd.f32 1e-06, %v531_v55 }
 0x18a   : > { %1676 = vrsqrt.f32 %v533_v60  ;;  %vm541_vm2 = vweird.f32 %v533_v60 }
 0x18d   : > { %v523_v61 = vpop.xlane.xlu0 %522 }
 0x18e   : > { %v532_v62 = vmul.f32 %v2235_v45, %v523_v61 }
 0x190   : > { %v1677_v63 = vpop.eup %1676  ;;  %v534_v0 = vadd.f32 1e-06, %v532_v62 }
 0x191   : > { %v536_v1 = vmul.f32 %v1677_v63, %v533_v60  ;;  %vm542_vm1 = vweird.f32 %v1677_v63 }
 0x192   : > { %1678 = vrsqrt.f32 %v534_v0  ;;  %vm543_vm3 = vmor %vm541_vm2, %vm542_vm1  ;;  %vm551_vm5 = vweird.f32 %v534_v0 }
 0x193   : > { %v537_v2 = vmul.f32 %v1677_v63, %v536_v1 }
 0x195   : > { %v538_v3 = vmul.f32 0.5, %v537_v2 }
 0x197   : > { %v539_v4 = vsub.f32 1.5, %v538_v3 }
 0x198   : > { %v1679_v5 = vpop.eup %1678 }
 0x199   : > { %v546_v6 = vmul.f32 %v1679_v5, %v534_v0  ;;  %v540_v7 = vmul.f32 %v1677_v63, %v539_v4  ;;  %vm552_vm4 = vweird.f32 %v1679_v5 }
 0x19a   : > { %vm553_vm6 = vmor %vm551_vm5, %vm552_vm4 }
 0x19b   : > { %v547_v8 = vmul.f32 %v1679_v5, %v546_v6  ;;  %v544_v10 = vsel %vm543_vm3, %v1677_v63, %v540_v7 }
 0x19c   : > { %v555_v14 = vmul.f32 %v544_v10, %v2158_v11 }
 0x19d   : > { %v548_v9 = vmul.f32 0.5, %v547_v8 }
 0x19e   : > { %v561_v19 = vmul.f32 %v1672_v16, %v555_v14 }
 0x19f   : > { %v549_v12 = vsub.f32 1.5, %v548_v9 }
 0x1a1   : > { %v550_v13 = vmul.f32 %v1679_v5, %v549_v12 }
 0x1a3   : > { %v554_v17 = vsel %vm553_vm6, %v1679_v5, %v550_v13 }
 0x1a4   : > { %v556_v18 = vmul.f32 %v554_v17, %v2162_v15 }
 0x1a6   : > { %v562_v20 = vmul.f32 %v1672_v16, %v556_v18 }
 0x1a8   : > { %v563_v21 = vpack.c.bf16 %v562_v20, %v561_v19 }
 0x1aa   : > { %764 = vmatmul.bf16.vlgmr.msra.gmra.mxu1 %v563_v21  ;;  %778 = vmatmul.bf16.vlgmr.msra.gmra.mxu2 %v563_v21 }
 0x1ab   : > { %792 = vmatmul.bf16.vlgmr.msra.gmra.mxu3 %v563_v21  ;;  %806 = vmatmul.bf16.vlgmr.msrb.gmra.mxu0 %v563_v21 }
 0x227   : > { %v2261_v31 = vpop.f32.mrf.mxu1 }
 0x228   : > { %v1425_v33 = vmul.f32 -1.442695, %v2261_v31  ;;  %v807_v20 = vpop.f32.mrf.mxu0 }
 0x22a   : > { %1680 = vpow2.f32 %v1425_v33 }
 0x22d   : > { %v2267_v36 = vpop.f32.mrf.mxu2 }
 0x22e   : > { %v1426_v38 = vmul.f32 -1.442695, %v2267_v36  ;;  %v793_v5 = vpop.f32.mrf.mxu3 }
 0x22f   : > { %v2271_v39 = vpop.f32.mrf.mxu1 }
 0x230   : > { %v1681_v41 = vpop.eup %1680  ;;  %1682 = vpow2.f32 %v1426_v38  ;;  %v1427_v43 = vmul.f32 -1.442695, %v2271_v39 }
 0x231   : > { %v824_v44 = vadd.f32 1.0, %v1681_v41 }
 0x232   : > { %1684 = vpow2.f32 %v1427_v43 }
 0x233   : > { %1686 = vrcp.f32 %v824_v44  ;;  %v839_v62 = vand.u32 2147483648, %v824_v44  ;;  %vm833_vm8 = vweird.f32 %v824_v44  ;;  %v837_v1 = vand.u32 2147483647, %v824_v44 }
 0x235   : > { %v2277_v48 = vpop.f32.mrf.mxu2  ;;  %v840_v7 = vor.u32 1.1754944e-38, %v839_v62  ;;  %vm838_vm11 = vcmp.eq.f32.partialorder %v837_v1, 8.507059e+37 }
 0x236   : > { %v1683_v49 = vpop.eup %1682  ;;  %v1428_v50 = vmul.f32 -1.442695, %v2277_v48  ;;  %v795_v40 = vpop.f32.mrf.mxu3 }
 0x237   : > { %v825_v51 = vadd.f32 1.0, %v1683_v49 }
 0x238   : > { %v1685_v52 = vpop.eup %1684  ;;  %1688 = vpow2.f32 %v1428_v50 }
 0x239   : > { %v1687_v53 = vpop.eup %1686  ;;  %1690 = vrcp.f32 %v825_v51  ;;  %v826_v55 = vadd.f32 1.0, %v1685_v52  ;;  %v852_v8 = vand.u32 2147483647, %v825_v51  ;;  %v854_v12 = vand.u32 2147483648, %v825_v51 }
 0x23a   : > { %v829_v54 = vmul.f32 %v1687_v53, %v824_v44  ;;  %vm834_vm7 = vweird.f32 %v1687_v53  ;;  %vm848_vm13 = vweird.f32 %v825_v51 }
 0x23b   : > { %1692 = vrcp.f32 %v826_v55  ;;  %vm2280_vm9 = vmor %vm833_vm8, %vm834_vm7  ;;  %v869_v13 = vand.u32 2147483648, %v826_v55  ;;  %v867_v17 = vand.u32 2147483647, %v826_v55  ;;  %vm2290_vm15 = vcmp.eq.f32.partialorder %v852_v8, 8.507059e+37 }
 0x23c   : > { %v830_v56 = vsub.f32 1.0, %v829_v54  ;;  %vm863_vm0 = vweird.f32 %v826_v55  ;;  %v855_v25 = vor.u32 1.1754944e-38, %v854_v12 }
 0x23d   : > { %v870_v26 = vor.u32 1.1754944e-38, %v869_v13  ;;  %vm868_vm2 = vcmp.eq.f32.partialorder %v867_v17, 8.507059e+37 }
 0x23e   : > { %v1689_v42 = vpop.eup %1688  ;;  %v831_v57 = vmul.f32 %v1687_v53, %v830_v56 }
 0x23f   : > { %v1691_v58 = vpop.eup %1690  ;;  %v827_v59 = vadd.f32 1.0, %v1689_v42 }
 0x240   : > { %v844_v60 = vmul.f32 %v1691_v58, %v825_v51  ;;  %v832_v61 = vadd.f32 %v1687_v53, %v831_v57  ;;  %vm849_vm10 = vweird.f32 %v1691_v58  ;;  %v809_v51 = vpop.f32.mrf.mxu0 }
 0x241   : > { %1694 = vrcp.f32 %v827_v59  ;;  %v1693_v63 = vpop.eup %1692  ;;  %vm2286_vm14 = vmor %vm848_vm13, %vm849_vm10  ;;  %v884_v30 = vand.u32 2147483648, %v827_v59  ;;  %v882_v34 = vand.u32 2147483647, %v827_v59  ;;  %vm878_vm4 = vweird.f32 %v827_v59 }
 0x242   : > { %v845_v0 = vsub.f32 1.0, %v844_v60  ;;  %v859_v2 = vmul.f32 %v1693_v63, %v826_v55  ;;  %v836_v6 = vsel %vm2280_vm9, %v1687_v53, %v832_v61  ;;  %vm864_vm12 = vweird.f32 %v1693_v63 }
 0x243   : > { %v841_v18 = vsel %vm838_vm11, %v840_v7, %v836_v6  ;;  %vm865_vm1 = vmor %vm863_vm0, %vm864_vm12  ;;  %v885_v43 = vor.u32 1.1754944e-38, %v884_v30  ;;  %vm883_vm6 = vcmp.eq.f32.partialorder %v882_v34, 8.507059e+37 }
 0x244   : > { %v846_v4 = vmul.f32 %v1691_v58, %v845_v0  ;;  %v860_v9 = vsub.f32 1.0, %v859_v2  ;;  %v888_v28 = vmul.f32 %v841_v18, %v2261_v31 }
 0x246   : > { %v847_v10 = vadd.f32 %v1691_v58, %v846_v4  ;;  %v861_v16 = vmul.f32 %v1693_v63, %v860_v9  ;;  %v892_v41 = vmul.f32 %v888_v28, %v793_v5  ;;  %v1673_v9 = vld [vmem:[%s2422_s29] ss:$0 sm:$0xff] }
 0x247   : > { %v1695_v14 = vpop.eup %1694 }
 0x248   : > { %v874_v19 = vmul.f32 %v1695_v14, %v827_v59  ;;  %v862_v23 = vadd.f32 %v1693_v63, %v861_v16  ;;  %v851_v24 = vsel %vm2286_vm14, %v1691_v58, %v847_v10  ;;  %vm879_vm3 = vweird.f32 %v1695_v14 }
 0x249   : > { %v856_v35 = vsel %vm2290_vm15, %v855_v25, %v851_v24  ;;  %vm880_vm5 = vmor %vm878_vm4, %vm879_vm3 }
 0x24a   : > { %v875_v27 = vsub.f32 1.0, %v874_v19  ;;  %v866_v29 = vsel %vm865_vm1, %v1693_v63, %v862_v23  ;;  %v889_v31 = vmul.f32 %v856_v35, %v2267_v36 }
 0x24b   : > { %v871_v32 = vsel %vm868_vm2, %v870_v26, %v866_v29 }
 0x24c   : > { %v876_v33 = vmul.f32 %v1695_v14, %v875_v27  ;;  %v890_v37 = vmul.f32 %v871_v32, %v2271_v39  ;;  %v893_v52 = vmul.f32 %v889_v31, %v807_v20 }
 0x24e   : > { %v877_v38 = vadd.f32 %v1695_v14, %v876_v33  ;;  %v894_v44 = vmul.f32 %v890_v37, %v795_v40 }
 0x250   : > { %v881_v46 = vsel %vm880_vm5, %v1695_v14, %v877_v38  ;;  %v896_v49 = vpack.c.bf16 %v894_v44, %v892_v41 }
 0x251   : > { %v886_v47 = vsel %vm883_vm6, %v885_v43, %v881_v46 }
 0x252   : > { %v891_v50 = vmul.f32 %v886_v47, %v2277_v48  ;;  %1034 = vmatmul.bf16.vlgmr.msrb.gmra.mxu1 %v896_v49 }
 0x254   : > { %v895_v53 = vmul.f32 %v891_v50, %v809_v51 }
 0x256   : > { %v897_v39 = vpack.c.bf16 %v895_v53, %v893_v52 }
 0x258   : > { %1048 = vmatmul.bf16.vlgmr.msrb.gmra.mxu2 %v897_v39 }
 0x2cf   : > { %v1035_v54 = vpop.f32.mrf.mxu1 }
 0x2d0   : > { %v1036_v55 = vadd.f32 %v1035_v54, %v2158_v11 }
 0x2d7   : > { %v1037_v58 = vpop.f32.mrf.mxu1 }
 0x2d8   : > { %v1038_v36 = vadd.f32 %v1037_v58, %v2162_v15 }
 0x2db   : > { %v1049_v56 = vpop.f32.mrf.mxu2 }
 0x2dc   : > { %v1050_v42 = vadd.f32 %v1049_v56, %v1036_v55 }
 0x2de   : > { %v1054_v57 = vmul.f32 %v1050_v42, %v1050_v42 }
 0x2e0   : > { %1056 = vadd.xlane.f32.xlu1 %v1054_v57 }
 0x2e3   : > { %v1051_v59 = vpop.f32.mrf.mxu2 }
 0x2e4   : > { %v1052_v60 = vadd.f32 %v1051_v59, %v1038_v36 }
 0x2e6   : > { %v1055_v61 = vmul.f32 %v1052_v60, %v1052_v60 }
 0x2e8   : > { %1058 = vadd.xlane.f32.xlu1 %v1055_v61 }
 0x353   : > { %v1057_v48 = vpop.xlane.xlu1 %1056 }
 0x354   : > { %v1060_v62 = vmul.f32 %v1057_v48, %v2235_v45 }
 0x356   : > { %v1062_v63 = vadd.f32 1e-06, %v1060_v62 }
 0x358   : > { %1696 = vrsqrt.f32 %v1062_v63  ;;  %vm1070_vm8 = vweird.f32 %v1062_v63 }
 0x35b   : > { %v1059_v0 = vpop.xlane.xlu1 %1058 }
 0x35c   : > { %v1061_v11 = vmul.f32 %v1059_v0, %v2235_v45 }
 0x35e   : > { %v1697_v1 = vpop.eup %1696  ;;  %v1063_v2 = vadd.f32 1e-06, %v1061_v11 }
 0x35f   : > { %v1065_v3 = vmul.f32 %v1697_v1, %v1062_v63  ;;  %vm1071_vm7 = vweird.f32 %v1697_v1 }
 0x360   : > { %1698 = vrsqrt.f32 %v1063_v2  ;;  %vm1072_vm9 = vmor %vm1070_vm8, %vm1071_vm7  ;;  %vm1080_vm11 = vweird.f32 %v1063_v2 }
 0x361   : > { %v1066_v15 = vmul.f32 %v1697_v1, %v1065_v3 }
 0x363   : > { %v1067_v4 = vmul.f32 0.5, %v1066_v15 }
 0x365   : > { %v1068_v5 = vsub.f32 1.5, %v1067_v4 }
 0x366   : > { %v1699_v6 = vpop.eup %1698 }
 0x367   : > { %v1069_v7 = vmul.f32 %v1697_v1, %v1068_v5  ;;  %v1075_v8 = vmul.f32 %v1699_v6, %v1063_v2  ;;  %vm1081_vm10 = vweird.f32 %v1699_v6 }
 0x368   : > { %vm1082_vm12 = vmor %vm1080_vm11, %vm1081_vm10 }
 0x369   : > { %v1073_v45 = vsel %vm1072_vm9, %v1697_v1, %v1069_v7  ;;  %v1076_v10 = vmul.f32 %v1699_v6, %v1075_v8 }
 0x36a   : > { %v1084_v12 = vmul.f32 %v1073_v45, %v1050_v42 }
 0x36b   : > { %v1077_v13 = vmul.f32 0.5, %v1076_v10 }
 0x36c   : > { %v1090_v14 = vmul.f32 %v1673_v9, %v1084_v12 }
 0x36d   : > { %v1078_v16 = vsub.f32 1.5, %v1077_v13 }
 0x36e   : > { %1092 = vst [vmem:[%s407_s14] sm:$0xff] %v1090_v14 }
 0x36f   : > { %v1079_v17 = vmul.f32 %v1699_v6, %v1078_v16 }
 0x371   : > { %v1083_v18 = vsel %vm1082_vm12, %v1699_v6, %v1079_v17 }
 0x372   : > { %v1085_v19 = vmul.f32 %v1083_v18, %v1052_v60 }
 0x374   : > { %v1091_v20 = vmul.f32 %v1673_v9, %v1085_v19 }
 0x376   : > { %1093 = vst [vmem:[%s407_s14 + $0x8] sm:$0xff] %v1091_v20 }
 0x377   : > { %1799 = shalt.err (!%p1796_p12)
}
 0x378   : > { %s1898_s4 = smov 128   ;;  %s1899_s28 = smov 8  }
 0x379   : > { %1567 = dma.vmem_to_hbm [thread:$0]  (%p2037_p11), %s1108_s25, 256, %s1110_s11, %s1095_s18, %s1898_s4, %s1898_s4, %s1899_s28  }
 0x37a PF: > { %s2425_s21 = sld [smem:[#allocation18_spill]]  ;;  %p1585_p6 = scmp.ge.s32.totalorder %s1892_s17, 2 }
 0x37c   : > { %p1581_p2 = pnand %p1585_p6, %p2042_p0 }
 0x37e   : > { %p1582_p3 = pneg %p1581_p2 }
 0x380   : > { %s1124_s30 = sand.u32 1, %s2425_s21  }
 0x381   : > { %s1125_s23 = scalar_lea.sflag [#allocation6], %s1124_s30 }
 0x382   : > { %1851 = dma.done.wait (%p1582_p3), %s1125_s23, 256  }
 0x383   : > { %1853 = vsyncadd (%p1582_p3), %s1125_s23, 4294967040  ;;  %s2427_s9 = sld [smem:[#allocation19_spill]]  ;;  %p32_p11 = scmp.ge.s32.totalorder %s2001_s20, 6  }
 0x384   : > { %s2428_s10 = sld [smem:[#allocation20_spill]]  ;;  %s2432_s12 = smov %s1872_s0 }
 0x385   : > { %s2429_s11 = sld [smem:[#allocation22_spill]]  ;;  %s2433_s0 = smov %s1876_s13 }
 0x386   : > { %s2430_s16 = sld [smem:[#allocation21_spill]]  ;;  %s2434_s13 = smov %s2114_s8 }
 0x387   : > { %s2431_s24 = sld [smem:[#allocation23_spill]]  ;;  %s2435_s14 = smov %s1884_s15 }
 0x388   : > { %s2438_s17 = smov %s2001_s20 }
 0x389   :  { %34 = sbr.rel (!%p32_p11) target bundleno = 18 (0x12), region = 115 }
 0x38c   : > { %s2436_s15 = smov %s2430_s16 }
 0x38d   : > { %s2437_s16 = smov %s2431_s24 }
 0x38e   :  { %1131 = vsyncpa [#allocation5], 1 }
 0x38f   :  { %1133 = vsyncpa [#allocation5 + $0x1], 1 }
 0x390   :  { %1134 = vsyncpa [#allocation8], 1 }
 0x391   :  { %1136 = vsyncpa [#allocation8 + $0x1], 1 }
 0x392   :  { %1137 = vsyncpa [#allocation6], 1 }
 0x393   :  { %1139 = vsyncpa [#allocation6 + $0x1], 1 }

// kernel: cogvlm_forward.7
= control target key start
LH: loop header
LB: loop body
LE: loop exit
PB: predicated region body
PF: predicated region fallthrough
CT: control target
= control target key end

     0   :  { %s1711_s12 = smov 0   ;;  %s2344_s0 = inlined_call_operand.vmem [shape: bf16[64,384], index: 0, kind: input, shape index: {}]   ;;  %s2345_s1 = inlined_call_operand.vmem [shape: f32[32,128], index: 1, kind: input, shape index: {}]   ;;  %s2346_s2 = inlined_call_operand.vmem [shape: f32[32,128], index: 2, kind: input, shape index: {}]   ;;  %s2347_s3 = inlined_call_operand.vmem [shape: bf16[64,128], index: 3, kind: output, shape index: {}]  }
   0x1 LB: > { %s1479_s13 = sadd.s32 4294967295, %s1682_s12   ;;  %p1483_p0 = scmp.ge.s32.totalorder %s1682_s12, 1  ;;  %s1682_s12 = sphi %s1711_s12, %s13_s12  }
   0x2   : > { %p139_p1 = scmp.lt.s32.totalorder %s1682_s12, 3 }
   0x4   : > { %p140_p2 = pnand %p1483_p0, %p139_p1 }
   0x5   : > { %s1484_s14 = sshll.u32 (!%p140_p2), %s1479_s13, 2  ;;  %s1684_s19 = smov (!%p140_p2), 112  }
   0x6   : > { %143 = sbr.rel (%p140_p2) target bundleno = 1528 (0x5f8), region = 32  ;;  %p165_p3 = scmp.lt.s32.totalorder (!%p140_p2), %s1484_s14, 7 }
   0x7   : > { %s1685_s20 = smov (!%p140_p2), 80   ;;  %s1686_s21 = smov (!%p140_p2), 48  }
   0x8   : > { %s1687_s22 = smov (!%p140_p2), 16   ;;  %s1688_s23 = smov (!%p140_p2), 32  }
   0x9   : > { %s1689_s24 = smov (!%p140_p2), 64   ;;  %s1690_s25 = smov (!%p140_p2), 96  }
   0xb   : > { %s2357_s14 = smov (!%p165_p3, %s1484_s14), 7  ;;  %vm245_vm0 = vcmask 130048   ;;  %vm386_vm1 = vcmask 261120   ;;  %vm396_vm2 = vcmask 785408   ;;  %vm391_vm3 = vcmask 523264  }
   0xc   : > { %s1516_s15 = smul.u32 12, %s2357_s14  ;;  %s1487_s17 = sshll.u32 %s2357_s14, 2 }
   0xe   : > { %s1725_s18 = scalar_lea.vmem %s2344_s0, %s1516_s15 }
   0xf   : > { %v182_v0 = vld [vmem:[%s1725_s18 + $0x18] sm:$0xff]  ;;  %v184_v1 = vld [vmem:[%s1725_s18 + $0x24] sm:$0xff]  ;;  %v180_v9 = vld [vmem:[%s1725_s18 + $0xc] sm:$0xff] }
  0x10   : > { %v419_v2 = vrot.slane %v182_v0, 4  ;;  %v420_v3 = vrot.slane %v184_v1, 4  ;;  %v178_v10 = vld [vmem:[%s1725_s18] sm:$0xff]  ;;  %v418_v11 = vrot.slane %v180_v9, 4  ;;  %v1769_v18 = vunpack.c.l.bf16 %v180_v9 }
  0x11   : > { %v417_v12 = vrot.slane %v178_v10, 4  ;;  %v1771_v19 = vunpack.c.l.bf16 %v178_v10  ;;  %v1796_v23 = vunpack.c.l.bf16 %v184_v1  ;;  %v1798_v24 = vunpack.c.l.bf16 %v182_v0 }
  0x12   : > { %v1729_v4 = vunpack.c.l.bf16 %v419_v2  ;;  %v1731_v5 = vunpack.c.l.bf16 %v420_v3  ;;  %v1751_v13 = vunpack.c.l.bf16 %v418_v11  ;;  %v1775_v20 = vsub.f32 0.0, %v1769_v18 }
  0x13   : > { %v1753_v14 = vunpack.c.l.bf16 %v417_v12  ;;  %v1778_v21 = vsub.f32 0.0, %v1771_v19  ;;  %v1782_v22 = vpack.i.bf16 %v1769_v18, %v1771_v19  ;;  %v1807_v25 = vsub.f32 0.0, %v1796_v23 }
  0x14   : > { %v1735_v6 = vpack.i.bf16 %v1731_v5, %v1729_v4  ;;  %v431_v7 = vsub.f32 0.0, %v1729_v4  ;;  %v432_v8 = vsub.f32 0.0, %v1731_v5  ;;  %v430_v15 = vsub.f32 0.0, %v1751_v13 }
  0x15   : > { %v429_v16 = vsub.f32 0.0, %v1753_v14  ;;  %v1547_v17 = vpack.i.bf16 %v1751_v13, %v1753_v14  ;;  %v1810_v26 = vsub.f32 0.0, %v1798_v24  ;;  %v1814_v27 = vpack.i.bf16 %v1796_v23, %v1798_v24 }
  0x16   : > { %1533 = vrot.lane.b32.xlu1 %v1735_v6, %s1684_s19  ;;  %473 = vrot.lane.b32.xlu0 %v431_v7, %s1685_s20 }
  0x17   : > { %1538 = vrot.lane.b32.xlu2 %v1735_v6, %s1685_s20 }
  0x1e   : > { %501 = vrot.lane.b32.xlu1 %v431_v7, %s1686_s21  ;;  %475 = vrot.lane.b32.xlu0 %v432_v8, %s1685_s20 }
  0x1f   : > { %503 = vrot.lane.b32.xlu2 %v432_v8, %s1686_s21 }
  0x26   : > { %531 = vrot.lane.b32.xlu1 %v432_v8, %s1687_s22  ;;  %529 = vrot.lane.b32.xlu0 %v431_v7, %s1687_s22 }
  0x27   : > { %1543 = vrot.lane.b32.xlu2 %v1735_v6, %s1686_s21 }
  0x2e   : > { %471 = vrot.lane.b32.xlu1 %v430_v15, %s1685_s20  ;;  %469 = vrot.lane.b32.xlu0 %v429_v16, %s1685_s20 }
  0x2f   : > { %1548 = vrot.lane.b32.xlu2 %v1547_v17, %s1684_s19 }
  0x36   : > { %499 = vrot.lane.b32.xlu1 %v430_v15, %s1686_s21  ;;  %497 = vrot.lane.b32.xlu0 %v429_v16, %s1686_s21 }
  0x37   : > { %1553 = vrot.lane.b32.xlu2 %v1547_v17, %s1685_s20 }
  0x3e   : > { %527 = vrot.lane.b32.xlu1 %v430_v15, %s1687_s22  ;;  %525 = vrot.lane.b32.xlu0 %v429_v16, %s1687_s22 }
  0x3f   : > { %1558 = vrot.lane.b32.xlu2 %v1547_v17, %s1686_s21 }
  0x46   : > { %252 = vrot.lane.b32.xlu1 %v1775_v20, %s1685_s20  ;;  %250 = vrot.lane.b32.xlu0 %v1778_v21, %s1685_s20 }
  0x47   : > { %1563 = vrot.lane.b32.xlu2 %v1782_v22, %s1684_s19 }
  0x4e   : > { %280 = vrot.lane.b32.xlu1 %v1775_v20, %s1686_s21  ;;  %278 = vrot.lane.b32.xlu0 %v1778_v21, %s1686_s21 }
  0x4f   : > { %1568 = vrot.lane.b32.xlu2 %v1782_v22, %s1685_s20 }
  0x56   : > { %308 = vrot.lane.b32.xlu1 %v1775_v20, %s1687_s22  ;;  %306 = vrot.lane.b32.xlu0 %v1778_v21, %s1687_s22 }
  0x57   : > { %1573 = vrot.lane.b32.xlu2 %v1782_v22, %s1686_s21 }
  0x5e   : > { %256 = vrot.lane.b32.xlu1 %v1807_v25, %s1685_s20  ;;  %254 = vrot.lane.b32.xlu0 %v1810_v26, %s1685_s20 }
  0x5f   : > { %1578 = vrot.lane.b32.xlu2 %v1814_v27, %s1684_s19 }
  0x66   : > { %284 = vrot.lane.b32.xlu1 %v1807_v25, %s1686_s21  ;;  %282 = vrot.lane.b32.xlu0 %v1810_v26, %s1686_s21 }
  0x67   : > { %1583 = vrot.lane.b32.xlu2 %v1814_v27, %s1685_s20  ;;  %s2131_s20 = scalar_lea.vmem %s2347_s3, %s1487_s17 }
  0x6e   : > { %312 = vrot.lane.b32.xlu1 %v1807_v25, %s1687_s22  ;;  %310 = vrot.lane.b32.xlu0 %v1810_v26, %s1687_s22 }
  0x6f   : > { %1588 = vrot.lane.b32.xlu2 %v1814_v27, %s1686_s21 }
  0x71   : > { %v1539_v28 = vpop.permute.xlu2 %1538 }
  0x72   : > { %v1541_v37 = vunpack.i.h.bf16 %v1539_v28  ;;  %v1540_v38 = vunpack.i.l.bf16 %v1539_v28 }
  0x76   : > { %441 = vrot.lane.b32.xlu0 %v431_v7, %s1684_s19  ;;  %443 = vrot.lane.b32.xlu1 %v432_v8, %s1684_s19 }
  0x77   : > { %1593 = vrot.lane.b32.xlu2 %v1735_v6, %s1687_s22 }
  0x79   : > { %v504_v29 = vpop.permute.xlu2 %503 }
  0x7a   : > { %v524_v44 = vsel %vm245_vm0, %v504_v29, %v1541_v37 }
  0x7e   : > { %437 = vrot.lane.b32.xlu0 %v429_v16, %s1684_s19  ;;  %439 = vrot.lane.b32.xlu1 %v430_v15, %s1684_s19 }
  0x7f   : > { %1598 = vrot.lane.b32.xlu2 %v1547_v17, %s1687_s22 }
  0x81   : > { %v1544_v30 = vpop.permute.xlu2 %1543 }
  0x82   : > { %v1546_v45 = vunpack.i.h.bf16 %v1544_v30  ;;  %v1545_v46 = vunpack.i.l.bf16 %v1544_v30 }
  0x88   : > { %v1534_v31 = vpop.permute.xlu1 %1533  ;;  %v474_v32 = vpop.permute.xlu0 %473 }
  0x89   : > { %v1535_v33 = vunpack.i.l.bf16 %v1534_v31  ;;  %v1549_v34 = vpop.permute.xlu2 %1548  ;;  %v1536_v36 = vunpack.i.h.bf16 %v1534_v31 }
  0x8a   : > { %v1551_v52 = vunpack.i.h.bf16 %v1549_v34  ;;  %v1550_v53 = vunpack.i.l.bf16 %v1549_v34 }
  0x8b   : > { %v495_v35 = vsel %vm245_vm0, %v474_v32, %v1535_v33 }
  0x8c   : > { %565 = vrot.lane.b32.xlu0 %v495_v35, %s1688_s23 }
  0x90   : > { %v502_v39 = vpop.permute.xlu1 %501  ;;  %v476_v40 = vpop.permute.xlu0 %475 }
  0x91   : > { %v496_v41 = vsel %vm245_vm0, %v476_v40, %v1536_v36  ;;  %v523_v42 = vsel %vm245_vm0, %v502_v39, %v1540_v38  ;;  %v1554_v43 = vpop.permute.xlu2 %1553 }
  0x92   : > { %567 = vrot.lane.b32.xlu1 %v496_v41, %s1688_s23  ;;  %581 = vrot.lane.b32.xlu2 %v523_v42, %s1689_s24  ;;  %v1556_v58 = vunpack.i.h.bf16 %v1554_v43  ;;  %v1555_v59 = vunpack.i.l.bf16 %v1554_v43 }
  0x94   : > { %583 = vrot.lane.b32.xlu0 %v524_v44, %s1689_s24 }
  0x98   : > { %v532_v47 = vpop.permute.xlu1 %531  ;;  %v530_v48 = vpop.permute.xlu0 %529 }
  0x99   : > { %v551_v49 = vsel %vm245_vm0, %v530_v48, %v1545_v46  ;;  %v552_v50 = vsel %vm245_vm0, %v532_v47, %v1546_v45  ;;  %v1559_v51 = vpop.permute.xlu2 %1558 }
  0x9a   : > { %597 = vrot.lane.b32.xlu1 %v551_v49, %s1690_s25  ;;  %599 = vrot.lane.b32.xlu2 %v552_v50, %s1690_s25  ;;  %v1561_v1 = vunpack.i.h.bf16 %v1559_v51  ;;  %v1560_v2 = vunpack.i.l.bf16 %v1559_v51 }
  0xa0   : > { %v472_v54 = vpop.permute.xlu1 %471  ;;  %v470_v55 = vpop.permute.xlu0 %469 }
  0xa1   : > { %v494_v56 = vsel %vm245_vm0, %v472_v54, %v1551_v52  ;;  %v493_v57 = vsel %vm245_vm0, %v470_v55, %v1550_v53  ;;  %v1564_v60 = vpop.permute.xlu2 %1563 }
  0xa2   : > { %563 = vrot.lane.b32.xlu1 %v494_v56, %s1688_s23  ;;  %561 = vrot.lane.b32.xlu0 %v493_v57, %s1688_s23  ;;  %v1565_v10 = vunpack.i.l.bf16 %v1564_v60  ;;  %v1566_v17 = vunpack.i.h.bf16 %v1564_v60 }
  0xa8   : > { %v500_v61 = vpop.permute.xlu1 %499  ;;  %v498_v62 = vpop.permute.xlu0 %497 }
  0xa9   : > { %v521_v63 = vsel %vm245_vm0, %v498_v62, %v1555_v59  ;;  %v522_v0 = vsel %vm245_vm0, %v500_v61, %v1556_v58  ;;  %v1569_v3 = vpop.permute.xlu2 %1568 }
  0xaa   : > { %577 = vrot.lane.b32.xlu2 %v521_v63, %s1689_s24  ;;  %579 = vrot.lane.b32.xlu0 %v522_v0, %s1689_s24  ;;  %v1571_v28 = vunpack.i.h.bf16 %v1569_v3  ;;  %v1570_v29 = vunpack.i.l.bf16 %v1569_v3 }
  0xb0   : > { %v528_v6 = vpop.permute.xlu1 %527  ;;  %v526_v7 = vpop.permute.xlu0 %525 }
  0xb1   : > { %v549_v8 = vsel %vm245_vm0, %v526_v7, %v1560_v2  ;;  %v550_v9 = vsel %vm245_vm0, %v528_v6, %v1561_v1  ;;  %v1574_v16 = vpop.permute.xlu2 %1573 }
  0xb2   : > { %593 = vrot.lane.b32.xlu1 %v549_v8, %s1690_s25  ;;  %595 = vrot.lane.b32.xlu2 %v550_v9, %s1690_s25  ;;  %v1575_v34 = vunpack.i.l.bf16 %v1574_v16  ;;  %v1906_v8 = vld [vmem:[%s2345_s1 + $0x18] sm:$0xff] }
  0xb3   : > { %217 = vrot.lane.b32.xlu0 %v1778_v21, %s1684_s19  ;;  %v1911_v9 = vld [vmem:[%s2346_s2 + $0x18] sm:$0xff] }
  0xb8   : > { %v253_v11 = vpop.permute.xlu1 %252  ;;  %v251_v12 = vpop.permute.xlu0 %250 }
  0xb9   : > { %v274_v15 = vsel %vm245_vm0, %v251_v12, %v1565_v10  ;;  %v275_v21 = vsel %vm245_vm0, %v253_v11, %v1566_v17 }
  0xba   : > { %219 = vrot.lane.b32.xlu1 %v1775_v20, %s1684_s19  ;;  %1603 = vrot.lane.b32.xlu2 %v1782_v22, %s1687_s22  ;;  %v1579_v20 = vpop.permute.xlu2 %1578  ;;  %v1576_v22 = vunpack.i.h.bf16 %v1574_v16  ;;  %v556_v16 = vmul.f32 %v1731_v5, %v1906_v8 }
  0xbb   : > { %342 = vrot.lane.b32.xlu0 %v274_v15, %s1688_s23  ;;  %v1580_v39 = vunpack.i.l.bf16 %v1579_v20  ;;  %v1581_v44 = vunpack.i.h.bf16 %v1579_v20 }
  0xc0   : > { %v281_v30 = vpop.permute.xlu1 %280  ;;  %v279_v31 = vpop.permute.xlu0 %278 }
  0xc1   : > { %v303_v32 = vsel %vm245_vm0, %v281_v30, %v1571_v28  ;;  %v302_v33 = vsel %vm245_vm0, %v279_v31, %v1570_v29  ;;  %v1923_v30 = vld [vmem:[%s2345_s1 + $0x10] sm:$0xff] }
  0xc2   : > { %344 = vrot.lane.b32.xlu1 %v275_v21, %s1688_s23  ;;  %358 = vrot.lane.b32.xlu2 %v302_v33, %s1689_s24  ;;  %v1584_v40 = vpop.permute.xlu2 %1583  ;;  %v1928_v31 = vld [vmem:[%s2346_s2 + $0x10] sm:$0xff]  ;;  %v555_v5 = vmul.f32 %v1729_v4, %v1923_v30 }
  0xc3   : > { %360 = vrot.lane.b32.xlu0 %v303_v32, %s1689_s24  ;;  %v1586_v45 = vunpack.i.h.bf16 %v1584_v40  ;;  %v1585_v46 = vunpack.i.l.bf16 %v1584_v40 }
  0xc8   : > { %v309_v35 = vpop.permute.xlu1 %308  ;;  %v307_v36 = vpop.permute.xlu0 %306 }
  0xc9   : > { %v331_v37 = vsel %vm245_vm0, %v309_v35, %v1576_v22  ;;  %v330_v38 = vsel %vm245_vm0, %v307_v36, %v1575_v34 }
  0xca   : > { %376 = vrot.lane.b32.xlu2 %v331_v37, %s1690_s25  ;;  %374 = vrot.lane.b32.xlu1 %v330_v38, %s1690_s25  ;;  %v1589_v47 = vpop.permute.xlu2 %1588 }
  0xcb   : > { %221 = vrot.lane.b32.xlu0 %v1810_v26, %s1684_s19 }
  0xd0   : > { %v257_v41 = vpop.permute.xlu1 %256  ;;  %v255_v42 = vpop.permute.xlu0 %254 }
  0xd1   : > { %v276_v43 = vsel %vm245_vm0, %v255_v42, %v1580_v39  ;;  %v277_v49 = vsel %vm245_vm0, %v257_v41, %v1581_v44 }
  0xd2   : > { %1608 = vrot.lane.b32.xlu2 %v1814_v27, %s1687_s22  ;;  %223 = vrot.lane.b32.xlu1 %v1807_v25, %s1684_s19  ;;  %v1591_v25 = vunpack.i.h.bf16 %v1589_v47  ;;  %v1590_v27 = vunpack.i.l.bf16 %v1589_v47  ;;  %v1594_v56 = vpop.permute.xlu2 %1593 }
  0xd3   : > { %346 = vrot.lane.b32.xlu0 %v276_v43, %s1688_s23  ;;  %v1596_v0 = vunpack.i.h.bf16 %v1594_v56  ;;  %v1595_v2 = vunpack.i.l.bf16 %v1594_v56 }
  0xd8   : > { %v285_v48 = vpop.permute.xlu1 %284  ;;  %v283_v26 = vpop.permute.xlu0 %282 }
  0xd9   : > { %v305_v50 = vsel %vm245_vm0, %v285_v48, %v1586_v45  ;;  %v304_v51 = vsel %vm245_vm0, %v283_v26, %v1585_v46  ;;  %v187_v48 = vld [vmem:[%s2345_s1 + $0x8] sm:$0xff] }
  0xda   : > { %348 = vrot.lane.b32.xlu1 %v277_v49, %s1688_s23  ;;  %362 = vrot.lane.b32.xlu2 %v304_v51, %s1689_s24  ;;  %v1599_v58 = vpop.permute.xlu2 %1598  ;;  %v191_v26 = vld [vmem:[%s2346_s2 + $0x8] sm:$0xff] }
  0xdb   : > { %364 = vrot.lane.b32.xlu0 %v305_v50, %s1689_s24  ;;  %v1601_v42 = vunpack.i.h.bf16 %v1599_v58  ;;  %v1600_v44 = vunpack.i.l.bf16 %v1599_v58 }
  0xe0   : > { %v313_v52 = vpop.permute.xlu1 %312  ;;  %v311_v53 = vpop.permute.xlu0 %310 }
  0xe1   : > { %v333_v54 = vsel %vm245_vm0, %v313_v52, %v1591_v25  ;;  %v332_v55 = vsel %vm245_vm0, %v311_v53, %v1590_v27  ;;  %v554_v27 = vmul.f32 %v1751_v13, %v187_v48 }
  0xe2   : > { %380 = vrot.lane.b32.xlu2 %v333_v54, %s1690_s25  ;;  %378 = vrot.lane.b32.xlu1 %v332_v55, %s1690_s25  ;;  %v186_v54 = vld [vmem:[%s2345_s1] sm:$0xff] }
  0xe3   : > { %v190_v55 = vld [vmem:[%s2346_s2] sm:$0xff] }
  0xe8   : > { %v442_v57 = vpop.permute.xlu0 %441  ;;  %v444_v59 = vpop.permute.xlu1 %443 }
  0xe9   : > { %v468_v3 = vsel %vm245_vm0, %v444_v59, %v1596_v0  ;;  %v467_v12 = vsel %vm245_vm0, %v442_v57, %v1595_v2  ;;  %v553_v57 = vmul.f32 %v1753_v14, %v186_v54 }
  0xec   : > { %v582_v61 = vpop.permute.xlu2 %581 }
  0xf0   : > { %v438_v60 = vpop.permute.xlu0 %437  ;;  %v440_v62 = vpop.permute.xlu1 %439 }
  0xf1   : > { %v466_v45 = vsel %vm245_vm0, %v440_v62, %v1601_v42  ;;  %v465_v25 = vsel %vm245_vm0, %v438_v60, %v1600_v44 }
  0xf4   : > { %v600_v1 = vpop.permute.xlu2 %599 }
  0xfe   : > { %v566_v63 = vpop.permute.xlu0 %565 }
  0xff   : > { %v607_v28 = vsel %vm386_vm1, %v467_v12, %v566_v63 }
 0x100   : > { %v611_v33 = vsel %vm391_vm3, %v607_v28, %v582_v61 }
 0x104   : > { %v568_v6 = vpop.permute.xlu1 %567  ;;  %v578_v15 = vpop.permute.xlu2 %577 }
 0x105   : > { %v608_v7 = vsel %vm386_vm1, %v468_v3, %v568_v6 }
 0x106   : > { %v584_v10 = vpop.permute.xlu0 %583 }
 0x107   : > { %v612_v11 = vsel %vm391_vm3, %v608_v7, %v584_v10 }
 0x108   : > { %v616_v17 = vsel %vm396_vm2, %v612_v11, %v600_v1 }
 0x109   : > { %v620_v29 = vmul.f32 %v616_v17, %v1911_v9 }
 0x10b   : > { %v624_v21 = vadd.f32 %v620_v29, %v556_v16 }
 0x10c   : > { %v598_v32 = vpop.permute.xlu1 %597  ;;  %v596_v37 = vpop.permute.xlu2 %595 }
 0x10d   : > { %v615_v20 = vsel %vm396_vm2, %v611_v33, %v598_v32  ;;  %v632_v34 = vpack.c.bf16 %v624_v21, %v624_v21 }
 0x10e   : > { %v619_v22 = vmul.f32 %v615_v20, %v1928_v31 }
 0x10f   : > { %v650_v38 = vunpack.c.l.b16 %v632_v34 }
 0x110   : > { %v623_v35 = vadd.f32 %v619_v22, %v555_v5  ;;  %v335_v5 = vmul.f32 %v1769_v18, %v187_v48 }
 0x112   : > { %v631_v36 = vpack.c.bf16 %v623_v35, %v623_v35 }
 0x114   : > { %v649_v39 = vunpack.c.l.b16 %v631_v36  ;;  %v562_v40 = vpop.permute.xlu0 %561  ;;  %v564_v43 = vpop.permute.xlu1 %563  ;;  %v334_v36 = vmul.f32 %v1771_v19, %v186_v54 }
 0x115   : > { %v1604_v46 = vpop.permute.xlu2 %1603  ;;  %v606_v47 = vsel %vm386_vm1, %v466_v45, %v564_v43  ;;  %v605_v53 = vsel %vm386_vm1, %v465_v25, %v562_v40 }
 0x116   : > { %v1935_v41 = vpack.c.b16 %v650_v38, %v649_v39  ;;  %v609_v59 = vsel %vm391_vm3, %v605_v53, %v578_v15  ;;  %v1606_v11 = vunpack.i.h.bf16 %v1604_v46  ;;  %v1605_v15 = vunpack.i.l.bf16 %v1604_v46 }
 0x118   : > { %v663_v4 = vsel %vm386_vm1, %v1935_v41, 0 }
 0x119   : > { %671 = vmatpush.bf16.xpose.msra.mxu0 %v663_v4 }
 0x11c   : > { %v580_v49 = vpop.permute.xlu0 %579 }
 0x11d   : > { %v610_v50 = vsel %vm391_vm3, %v606_v47, %v580_v49  ;;  %v359_v61 = vpop.permute.xlu2 %358 }
 0x11e   : > { %v614_v51 = vsel %vm396_vm2, %v610_v50, %v596_v37 }
 0x11f   : > { %v618_v52 = vmul.f32 %v614_v51, %v191_v26 }
 0x121   : > { %v622_v56 = vadd.f32 %v618_v52, %v554_v27 }
 0x123   : > { %v630_v63 = vpack.c.bf16 %v622_v56, %v622_v56  ;;  %v337_v56 = vmul.f32 %v1796_v23, %v1906_v8 }
 0x124   : > { %v594_v58 = vpop.permute.xlu1 %593 }
 0x125   : > { %v613_v60 = vsel %vm396_vm2, %v609_v59, %v594_v58  ;;  %v218_v13 = vpop.permute.xlu0 %217  ;;  %v648_v2 = vunpack.c.l.b16 %v630_v63  ;;  %v377_v12 = vpop.permute.xlu2 %376 }
 0x126   : > { %v617_v62 = vmul.f32 %v613_v60, %v190_v55  ;;  %v246_v21 = vsel %vm245_vm0, %v218_v13, %v1605_v15 }
 0x128   : > { %v621_v0 = vadd.f32 %v617_v62, %v553_v57 }
 0x12a   : > { %v629_v1 = vpack.c.bf16 %v621_v0, %v621_v0 }
 0x12c   : > { %v647_v3 = vunpack.c.l.b16 %v629_v1  ;;  %v220_v6 = vpop.permute.xlu1 %219 }
 0x12d   : > { %v343_v7 = vpop.permute.xlu0 %342  ;;  %v247_v16 = vsel %vm245_vm0, %v220_v6, %v1606_v11  ;;  %v1609_v34 = vpop.permute.xlu2 %1608 }
 0x12e   : > { %v1961_v10 = vpack.c.b16 %v648_v2, %v647_v3  ;;  %v387_v22 = vsel %vm386_vm1, %v246_v21, %v343_v7  ;;  %v1611_v50 = vunpack.i.h.bf16 %v1609_v34  ;;  %v1610_v19 = vunpack.i.l.bf16 %v1609_v34 }
 0x12f   : > { %v392_v38 = vsel %vm391_vm3, %v387_v22, %v359_v61  ;;  %v336_v61 = vmul.f32 %v1798_v24, %v1923_v30  ;;  %v194_v24 = vlaneseq }
 0x130   : > { %v660_v14 = vsel %vm386_vm1, %v1961_v10, 0 }
 0x131   : > { %672 = vmatpush.bf16.xpose.msra.mxu0 %v660_v14  ;;  %v1997_v30 = vshrl.u32 %v194_v24, 7 }
 0x133   : > { %v2017_v21 = vadd.s32 16, %v1997_v30 }
 0x134   : > { %v345_v17 = vpop.permute.xlu1 %344 }
 0x135   : > { %v388_v28 = vsel %vm386_vm1, %v247_v16, %v345_v17  ;;  %v361_v29 = vpop.permute.xlu0 %360  ;;  %v363_v45 = vpop.permute.xlu2 %362  ;;  %v2008_v16 = vadd.s32 8, %v1997_v30 }
 0x136   : > { %v393_v32 = vsel %vm391_vm3, %v388_v28, %v361_v29 }
 0x137   : > { %v398_v33 = vsel %vm396_vm2, %v393_v32, %v377_v12  ;;  %v1999_v12 = vand.u32 127, %v194_v24 }
 0x138   : > { %v402_v20 = vmul.f32 %v398_v33, %v191_v26 }
 0x139   : > { %vm201_vm4 = vcmp.le.s32.totalorder %v1999_v12, %v1997_v30  ;;  %vm202_vm5 = vcmp.le.s32.totalorder %v1999_v12, %v2008_v16  ;;  %vm203_vm6 = vcmp.le.s32.totalorder %v1999_v12, %v2017_v21 }
 0x13a   : > { %v406_v35 = vadd.f32 %v402_v20, %v335_v5  ;;  %v2028_v20 = vadd.s32 24, %v1997_v30 }
 0x13c   : > { %v375_v37 = vpop.permute.xlu1 %374  ;;  %v410_v42 = vmul.f32 0.17677669, %v406_v35  ;;  %vm204_vm7 = vcmp.le.s32.totalorder %v1999_v12, %v2028_v20 }
 0x13d   : > { %v397_v39 = vsel %vm396_vm2, %v392_v38, %v375_v37  ;;  %v222_v40 = vpop.permute.xlu0 %221  ;;  %v381_v54 = vpop.permute.xlu2 %380 }
 0x13e   : > { %v401_v4 = vmul.f32 %v397_v39, %v190_v55  ;;  %v626_v43 = vpack.c.bf16 %v410_v42, %v410_v42  ;;  %v248_v55 = vsel %vm245_vm0, %v222_v40, %v1610_v19  ;;  %v1496_v42 = vld [vmem:[%s1725_s18 + $0x20] sm:$0xf] }
 0x140   : > { %v405_v18 = vadd.f32 %v401_v4, %v334_v36  ;;  %v638_v26 = vunpack.c.l.b16 %v626_v43  ;;  %v1515_v4 = vld [vmem:[%s1725_s18 + $0x28] sm:$0xf0] }
 0x142   : > { %v409_v44 = vmul.f32 0.17677669, %v405_v18 }
 0x144   : > { %v625_v46 = vpack.c.bf16 %v409_v44, %v409_v44  ;;  %v224_v47 = vpop.permute.xlu1 %223  ;;  %v2054_v44 = vor.u32 %v1515_v4, %v1496_v42 }
 0x145   : > { %v347_v48 = vpop.permute.xlu0 %346  ;;  %v249_v25 = vsel %vm245_vm0, %v224_v47, %v1611_v50  ;;  %v1514_v47 = vld [vmem:[%s1725_s18 + $0x10] sm:$0xf0] }
 0x146   : > { %v637_v49 = vunpack.c.l.b16 %v625_v46  ;;  %v389_v60 = vsel %vm386_vm1, %v248_v55, %v347_v48  ;;  %810 = vmatpush.bf16.msra.mxu1 %v2054_v44  ;;  %v1492_v46 = vld [vmem:[%s1725_s18 + $0x8] sm:$0xf] }
 0x147   : > { %v394_v63 = vsel %vm391_vm3, %v389_v60, %v363_v45  ;;  %v2061_v48 = vor.u32 %v1514_v47, %v1492_v46 }
 0x148   : > { %v1975_v51 = vpack.c.b16 %v638_v26, %v637_v49 }
 0x14a   : > { %1488 = vmatmul.msk.bf16.vlgmr.msra.gmra.mxu0 %vm386_vm1, %v1975_v51  ;;  %811 = vmatpush.bf16.msra.mxu1 %v2061_v48 }
 0x14c   : > { %v349_v27 = vpop.permute.xlu1 %348 }
 0x14d   : > { %v390_v52 = vsel %vm386_vm1, %v249_v25, %v349_v27  ;;  %v365_v53 = vpop.permute.xlu0 %364 }
 0x14e   : > { %v395_v57 = vsel %vm391_vm3, %v390_v52, %v365_v53 }
 0x14f   : > { %v400_v58 = vsel %vm396_vm2, %v395_v57, %v381_v54 }
 0x150   : > { %v404_v59 = vmul.f32 %v400_v58, %v1911_v9 }
 0x152   : > { %v408_v13 = vadd.f32 %v404_v59, %v337_v56 }
 0x154   : > { %v379_v62 = vpop.permute.xlu1 %378  ;;  %v412_v1 = vmul.f32 0.17677669, %v408_v13 }
 0x155   : > { %v399_v0 = vsel %vm396_vm2, %v394_v63, %v379_v62 }
 0x156   : > { %v403_v23 = vmul.f32 %v399_v0, %v1928_v31  ;;  %v628_v2 = vpack.c.bf16 %v412_v1, %v412_v1 }
 0x158   : > { %v407_v8 = vadd.f32 %v403_v23, %v336_v61  ;;  %v640_v7 = vunpack.c.l.b16 %v628_v2 }
 0x15a   : > { %v411_v3 = vmul.f32 0.17677669, %v407_v8 }
 0x15c   : > { %v627_v6 = vpack.c.bf16 %v411_v3, %v411_v3 }
 0x15e   : > { %v639_v9 = vunpack.c.l.b16 %v627_v6 }
 0x160   : > { %v1993_v11 = vpack.c.b16 %v640_v7, %v639_v9 }
 0x162   : > { %1489 = vmatmul.msk.bf16.gmra.mxu0 %vm386_vm1, %v1993_v11 }
 0x1c7   : > { %v674_v31 = vpop.f32.mrf.mxu0 }
 0x1c8   : > { %v684_v14 = vsel %vm201_vm4, %v674_v31, -1e+30 }
 0x1c9   : > { %v688_v15 = vsel %vm386_vm1, %v684_v14, -inf }
 0x1ca   : > { %689 = vmax.xlane.f32.xlu0 %v688_v15 }
 0x1cf   : > { %v676_v17 = vpop.f32.mrf.mxu0 }
 0x1d0   : > { %v685_v28 = vsel %vm202_vm5, %v676_v17, -1e+30 }
 0x1d1   : > { %v691_v29 = vsel %vm386_vm1, %v685_v28, -inf }
 0x1d2   : > { %692 = vmax.xlane.f32.xlu1 %v691_v29 }
 0x1de   : > { %836 = vrot.lane.b32.xlu0 %v1961_v10, %s1690_s25 }
 0x1df   : > { %v679_v5 = vpop.f32.mrf.mxu0 }
 0x1e0   : > { %v686_v32 = vsel %vm203_vm6, %v679_v5, -1e+30 }
 0x1e1   : > { %v694_v33 = vsel %vm386_vm1, %v686_v32, -inf }
 0x1e2   : > { %695 = vmax.xlane.f32.xlu2 %v694_v33 }
 0x1e6   : > { %834 = vrot.lane.b32.xlu0 %v1993_v11, %s1690_s25 }
 0x1e7   : > { %v681_v22 = vpop.f32.mrf.mxu0 }
 0x1e8   : > { %v687_v34 = vsel %vm204_vm7, %v681_v22, -1e+30 }
 0x1e9   : > { %v697_v35 = vsel %vm386_vm1, %v687_v34, -inf }
 0x1ea   : > { %698 = vmax.xlane.f32.xlu2 %v697_v35 }
 0x1eb   : > { %832 = vrot.lane.b32.xlu1 %v1975_v51, %s1690_s25 }
 0x202   : > { %838 = vrot.lane.b32.xlu2 %v1935_v41, %s1690_s25 }
 0x20a   : > { %1035 = vrot.lane.b32.xlu2 %v1935_v41, %s1689_s24 }
 0x212   : > { %1033 = vrot.lane.b32.xlu2 %v1961_v10, %s1689_s24 }
 0x21a   : > { %1029 = vrot.lane.b32.xlu2 %v1975_v51, %s1689_s24 }
 0x222   : > { %1228 = vrot.lane.b32.xlu2 %v1993_v11, %s1688_s23 }
 0x23d   : > { %v690_v36 = vpop.xlane.xlu0 %689 }
 0x23e   : > { %v700_v37 = vsub.f32 %v684_v14, %v690_v36 }
 0x240   : > { %v704_v38 = vmul.f32 1.442695, %v700_v37 }
 0x242   : > { %1612 = vpow2.f32 %v704_v38 }
 0x245   : > { %v693_v39 = vpop.xlane.xlu1 %692 }
 0x246   : > { %v701_v40 = vsub.f32 %v685_v28, %v693_v39 }
 0x248   : > { %v2052_v18 = vpop.eup %1612  ;;  %v706_v43 = vmul.f32 1.442695, %v701_v40 }
 0x249   : > { %v712_v45 = vsel %vm386_vm1, %v2052_v18, 0.0 }
 0x24a   : > { %1614 = vpow2.f32 %v706_v43  ;;  %713 = vadd.xlane.f32.xlu0 %v712_v45 }
 0x250   : > { %v2064_v26 = vpop.eup %1614  ;;  %v837_v59 = vpop.permute.xlu0 %836 }
 0x251   : > { %v715_v49 = vsel %vm386_vm1, %v2064_v26, 0.0  ;;  %v847_v13 = vsel %vm386_vm1, %v837_v59, 0 }
 0x252   : > { %716 = vadd.xlane.f32.xlu1 %v715_v49 }
 0x255   : > { %v696_v50 = vpop.xlane.xlu2 %695 }
 0x256   : > { %v702_v19 = vsub.f32 %v686_v32, %v696_v50 }
 0x258   : > { %v708_v25 = vmul.f32 1.442695, %v702_v19  ;;  %v835_v0 = vpop.permute.xlu0 %834 }
 0x25a   : > { %1616 = vpow2.f32 %v708_v25 }
 0x25d   : > { %v699_v27 = vpop.xlane.xlu2 %698 }
 0x25e   : > { %v703_v52 = vsub.f32 %v687_v34, %v699_v27  ;;  %1232 = vrot.lane.b32.xlu0 %v1935_v41, %s1688_s23 }
 0x260   : > { %v2070_v53 = vpop.eup %1616  ;;  %v710_v54 = vmul.f32 1.442695, %v703_v52 }
 0x261   : > { %v718_v55 = vsel %vm386_vm1, %v2070_v53, 0.0 }
 0x262   : > { %1618 = vpow2.f32 %v710_v54  ;;  %719 = vadd.xlane.f32.xlu1 %v718_v55 }
 0x265   : > { %v839_v56 = vpop.permute.xlu2 %838 }
 0x266   : > { %1230 = vrot.lane.b32.xlu0 %v1961_v10, %s1688_s23  ;;  %v850_v57 = vsel %vm386_vm1, %v839_v56, 0  ;;  %v833_v10 = vpop.permute.xlu1 %832 }
 0x267   : > { %858 = vmatpush.bf16.xpose.msra.mxu2 %v850_v57 }
 0x268   : > { %v2077_v58 = vpop.eup %1618 }
 0x269   : > { %v721_v41 = vsel %vm386_vm1, %v2077_v58, 0.0 }
 0x26a   : > { %722 = vadd.xlane.f32.xlu1 %v721_v41 }
 0x26d   : > { %v1036_v60 = vpop.permute.xlu2 %1035 }
 0x26e   : > { %1031 = vrot.lane.b32.xlu0 %v1993_v11, %s1689_s24  ;;  %v1047_v61 = vsel %vm386_vm1, %v1036_v60, 0 }
 0x26f   : > { %859 = vmatpush.bf16.xpose.msra.mxu2 %v847_v13  ;;  %1055 = vmatpush.bf16.xpose.msrb.mxu1 %v1047_v61 }
 0x275   : > { %v1034_v62 = vpop.permute.xlu2 %1033 }
 0x276   : > { %1500 = vmatmul.msk.bf16.vlgmr.msra.gmra.mxu2 %vm386_vm1, %v833_v10  ;;  %v1044_v63 = vsel %vm386_vm1, %v1034_v62, 0 }
 0x277   : > { %1056 = vmatpush.bf16.xpose.msrb.mxu1 %v1044_v63 }
 0x283   : > { %1226 = vrot.lane.b32.xlu1 %v1975_v51, %s1688_s23 }
 0x286   : > { %1501 = vmatmul.msk.bf16.gmra.mxu2 %vm386_vm1, %v835_v0 }
 0x2bd   : > { %v714_v1 = vpop.xlane.xlu0 %713 }
 0x2be   : > { %1620 = vrcp.f32 %v714_v1  ;;  %v735_v24 = vand.u32 2147483648, %v714_v1  ;;  %vm729_vm9 = vweird.f32 %v714_v1  ;;  %v733_v14 = vand.u32 2147483647, %v714_v1 }
 0x2c0   : > { %v736_v33 = vor.u32 1.1754944e-38, %v735_v24  ;;  %vm734_vm13 = vcmp.eq.f32.partialorder %v733_v14, 8.507059e+37 }
 0x2c4   : > { %v1621_v23 = vpop.eup %1620 }
 0x2c5   : > { %v725_v8 = vmul.f32 %v1621_v23, %v714_v1  ;;  %v717_v2 = vpop.xlane.xlu1 %716  ;;  %vm730_vm8 = vweird.f32 %v1621_v23 }
 0x2c6   : > { %1622 = vrcp.f32 %v717_v2  ;;  %vm2090_vm10 = vmor %vm729_vm9, %vm730_vm8  ;;  %v750_v28 = vand.u32 2147483648, %v717_v2  ;;  %v748_v5 = vand.u32 2147483647, %v717_v2  ;;  %vm744_vm12 = vweird.f32 %v717_v2 }
 0x2c7   : > { %v726_v3 = vsub.f32 1.0, %v725_v8 }
 0x2c8   : > { %v751_v34 = vor.u32 1.1754944e-38, %v750_v28  ;;  %vm749_vm15 = vcmp.eq.f32.partialorder %v748_v5, 8.507059e+37 }
 0x2c9   : > { %v727_v6 = vmul.f32 %v1621_v23, %v726_v3 }
 0x2cb   : > { %v728_v11 = vadd.f32 %v1621_v23, %v727_v6 }
 0x2cc   : > { %v1623_v7 = vpop.eup %1622 }
 0x2cd   : > { %v740_v9 = vmul.f32 %v1623_v7, %v717_v2  ;;  %vm745_vm11 = vweird.f32 %v1623_v7  ;;  %v732_v32 = vsel %vm2090_vm10, %v1621_v23, %v728_v11  ;;  %v1030_v2 = vpop.permute.xlu2 %1029 }
 0x2ce   : > { %vm746_vm14 = vmor %vm744_vm12, %vm745_vm11  ;;  %v737_v36 = vsel %vm734_vm13, %v736_v33, %v732_v32  ;;  %vm827_vm13 = vcmask 257024  }
 0x2cf   : > { %v741_v31 = vsub.f32 1.0, %v740_v9  ;;  %v738_v40 = vmul.f32 %v2052_v18, %v737_v36 }
 0x2d0   : > { %v1233_v51 = vpop.permute.xlu0 %1232 }
 0x2d1   : > { %v742_v17 = vmul.f32 %v1623_v7, %v741_v31  ;;  %v1244_v29 = vsel %vm386_vm1, %v1233_v51, 0 }
 0x2d2   : > { %1252 = vmatpush.bf16.xpose.msrb.mxu0 %v1244_v29 }
 0x2d3   : > { %v743_v22 = vadd.f32 %v1623_v7, %v742_v17 }
 0x2d5   : > { %v720_v35 = vpop.xlane.xlu1 %719  ;;  %v747_v37 = vsel %vm746_vm14, %v1623_v7, %v743_v22  ;;  %v1229_v7 = vpop.permute.xlu2 %1228 }
 0x2d6   : > { %1624 = vrcp.f32 %v720_v35  ;;  %v752_v38 = vsel %vm749_vm15, %v751_v34, %v747_v37  ;;  %v765_v52 = vand.u32 2147483648, %v720_v35  ;;  %vm759_vm2 = vweird.f32 %v720_v35 }
 0x2d7   : > { %v753_v42 = vmul.f32 %v2064_v26, %v752_v38  ;;  %v763_v18 = vand.u32 2147483647, %v720_v35 }
 0x2d8   : > { %v1231_v39 = vpop.permute.xlu0 %1230  ;;  %v766_v41 = vor.u32 1.1754944e-38, %v765_v52 }
 0x2d9   : > { %v1241_v4 = vsel %vm386_vm1, %v1231_v39, 0  ;;  %v784_v43 = vpack.c.bf16 %v753_v42, %v738_v40  ;;  %vm764_vm9 = vcmp.eq.f32.partialorder %v763_v18, 8.507059e+37 }
 0x2da   : > { %1253 = vmatpush.bf16.xpose.msrb.mxu0 %v1241_v4 }
 0x2db   : > { %1498 = vmatmul.msk.bf16.vlgmr.msra.gmra.mxu1 %vm386_vm1, %v784_v43 }
 0x2dc   : > { %v1625_v45 = vpop.eup %1624 }
 0x2dd   : > { %v755_v46 = vmul.f32 %v1625_v45, %v720_v35  ;;  %v723_v47 = vpop.xlane.xlu1 %722  ;;  %vm760_vm0 = vweird.f32 %v1625_v45 }
 0x2de   : > { %1626 = vrcp.f32 %v723_v47  ;;  %vm761_vm3 = vmor %vm759_vm2, %vm760_vm0  ;;  %v780_v54 = vand.u32 2147483648, %v723_v47  ;;  %v778_v56 = vand.u32 2147483647, %v723_v47  ;;  %vm774_vm10 = vweird.f32 %v723_v47 }
 0x2df   : > { %v756_v49 = vsub.f32 1.0, %v755_v46 }
 0x2e0   : > { %v781_v60 = vor.u32 1.1754944e-38, %v780_v54  ;;  %vm779_vm12 = vcmp.eq.f32.partialorder %v778_v56, 8.507059e+37  ;;  %v1032_v14 = vpop.permute.xlu0 %1031 }
 0x2e1   : > { %v757_v50 = vmul.f32 %v1625_v45, %v756_v49 }
 0x2e3   : > { %v758_v25 = vadd.f32 %v1625_v45, %v757_v50 }
 0x2e4   : > { %v1627_v19 = vpop.eup %1626 }
 0x2e5   : > { %v770_v27 = vmul.f32 %v1627_v19, %v723_v47  ;;  %vm775_vm8 = vweird.f32 %v1627_v19  ;;  %v762_v57 = vsel %vm761_vm3, %v1625_v45, %v758_v25 }
 0x2e6   : > { %vm776_vm11 = vmor %vm774_vm10, %vm775_vm8  ;;  %v767_v13 = vsel %vm764_vm9, %v766_v41, %v762_v57 }
 0x2e7   : > { %v771_v26 = vsub.f32 1.0, %v770_v27  ;;  %v768_v62 = vmul.f32 %v2070_v53, %v767_v13 }
 0x2e9   : > { %v772_v55 = vmul.f32 %v1627_v19, %v771_v26 }
 0x2eb   : > { %v773_v59 = vadd.f32 %v1627_v19, %v772_v55 }
 0x2ed   : > { %v777_v61 = vsel %vm776_vm11, %v1627_v19, %v773_v59 }
 0x2ee   : > { %v782_v10 = vsel %vm779_vm12, %v781_v60, %v777_v61 }
 0x2ef   : > { %v783_v63 = vmul.f32 %v2077_v58, %v782_v10 }
 0x2f1   : > { %v785_v0 = vpack.c.bf16 %v783_v63, %v768_v62 }
 0x2f3   : > { %1499 = vmatmul.msk.bf16.gmra.mxu1 %vm386_vm1, %v785_v0 }
 0x2f5   : > { %v1227_v1 = vpop.permute.xlu1 %1226 }
 0x2f6   : > { %1508 = vmatmul.msk.bf16.vlgmr.msrb.gmra.mxu0 %vm386_vm1, %v1227_v1 }
 0x2f9   : > { %v861_v23 = vpop.f32.mrf.mxu2 }
 0x2fa   : > { %v871_v8 = vsel %vm201_vm4, %v861_v23, -1e+30 }
 0x2fb   : > { %v875_v3 = vsel %vm386_vm1, %v871_v8, -inf }
 0x2fc   : > { %876 = vmax.xlane.f32.xlu1 %v875_v3 }
 0x301   : > { %v863_v6 = vpop.f32.mrf.mxu2 }
 0x302   : > { %v872_v53 = vsel %vm202_vm5, %v863_v6, -1e+30 }
 0x303   : > { %1504 = vmatmul.msk.bf16.vlgmr.msrb.gmra.mxu1 %vm386_vm1, %v1030_v2  ;;  %v878_v58 = vsel %vm386_vm1, %v872_v53, -inf }
 0x304   : > { %879 = vmax.xlane.f32.xlu0 %v878_v58 }
 0x306   : > { %1509 = vmatmul.msk.bf16.gmra.mxu0 %vm386_vm1, %v1229_v7 }
 0x309   : > { %v866_v9 = vpop.f32.mrf.mxu2 }
 0x30a   : > { %v873_v11 = vsel %vm203_vm6, %v866_v9, -1e+30 }
 0x30b   : > { %v881_v24 = vsel %vm386_vm1, %v873_v11, -inf }
 0x30c   : > { %882 = vmax.xlane.f32.xlu2 %v881_v24 }
 0x311   : > { %v868_v31 = vpop.f32.mrf.mxu2 }
 0x312   : > { %v2122_v51 = vsel %vm204_vm7, %v868_v31, -1e+30 }
 0x313   : > { %1505 = vmatmul.msk.bf16.gmra.mxu1 %vm386_vm1, %v1032_v14  ;;  %v884_v15 = vsel %vm386_vm1, %v2122_v51, -inf }
 0x314   : > { %885 = vmax.xlane.f32.xlu1 %v884_v15 }
 0x358   : > { %v813_v17 = vpop.f32.mrf.mxu1 }
 0x359   : > { %v823_v28 = vpack.c.bf16 %v813_v17, %v813_v17 }
 0x35b   : > { %828 = vst.msk [vmem:[%s2131_s20] sm:$0xf] %vm827_vm13, %v823_v28 }
 0x360   : > { %v815_v29 = vpop.f32.mrf.mxu1 }
 0x361   : > { %v824_v5 = vpack.c.bf16 %v815_v29, %v815_v29 }
 0x363   : > { %829 = vst.msk [vmem:[%s2131_s20 + $0x4] sm:$0xf] %vm827_vm13, %v824_v5 }
 0x36f   : > { %v877_v49 = vpop.xlane.xlu1 %876 }
 0x370   : > { %v818_v32 = vpop.f32.mrf.mxu1  ;;  %v887_v52 = vsub.f32 %v871_v8, %v877_v49 }
 0x371   : > { %v825_v33 = vpack.c.bf16 %v818_v32, %v818_v32 }
 0x372   : > { %v891_v54 = vmul.f32 1.442695, %v887_v52 }
 0x373   : > { %830 = vst.msk [vmem:[%s2131_s20 + $0x8] sm:$0xf] %vm827_vm13, %v825_v33  ;;  %v1255_v22 = vpop.f32.mrf.mxu0 }
 0x374   : > { %v2142_v34 = vsel %vm201_vm4, %v1255_v22, -1e+30 }
 0x375   : > { %v1269_v35 = vsel %vm386_vm1, %v2142_v34, -inf }
 0x376   : > { %1270 = vmax.xlane.f32.xlu1 %v1269_v35 }
 0x377   : > { %v880_v36 = vpop.xlane.xlu0 %879 }
 0x378   : > { %v888_v37 = vsub.f32 %v872_v53, %v880_v36  ;;  %v820_v38 = vpop.f32.mrf.mxu1 }
 0x379   : > { %v826_v39 = vpack.c.bf16 %v820_v38, %v820_v38 }
 0x37a   : > { %v893_v40 = vmul.f32 1.442695, %v888_v37 }
 0x37b   : > { %831 = vst.msk [vmem:[%s2131_s20 + $0xc] sm:$0xf] %vm827_vm13, %v826_v39  ;;  %v1257_v42 = vpop.f32.mrf.mxu0 }
 0x37c   : > { %1628 = vpow2.f32 %v893_v40  ;;  %v1266_v4 = vsel %vm202_vm5, %v1257_v42, -1e+30 }
 0x37d   : > { %v1272_v43 = vsel %vm386_vm1, %v1266_v4, -inf }
 0x37e   : > { %1273 = vmax.xlane.f32.xlu0 %v1272_v43 }
 0x37f   : > { %v883_v45 = vpop.xlane.xlu2 %882 }
 0x380   : > { %v889_v46 = vsub.f32 %v873_v11, %v883_v45  ;;  %v1058_v47 = vpop.f32.mrf.mxu1 }
 0x381   : > { %v1068_v2 = vsel %vm201_vm4, %v1058_v47, -1e+30 }
 0x382   : > { %v2152_v50 = vpop.eup %1628  ;;  %v895_v19 = vmul.f32 1.442695, %v889_v46  ;;  %v1072_v21 = vsel %vm386_vm1, %v1068_v2, -inf }
 0x383   : > { %v1260_v25 = vpop.f32.mrf.mxu0  ;;  %v902_v27 = vsel %vm386_vm1, %v2152_v50, 0.0 }
 0x384   : > { %1630 = vpow2.f32 %v895_v19  ;;  %v2159_v18 = vsel %vm203_vm6, %v1260_v25, -1e+30  ;;  %903 = vadd.xlane.f32.xlu2 %v902_v27 }
 0x385   : > { %v1275_v26 = vsel %vm386_vm1, %v2159_v18, -inf  ;;  %1632 = vpow2.f32 %v891_v54 }
 0x386   : > { %1276 = vmax.xlane.f32.xlu1 %v1275_v26 }
 0x387   : > { %v886_v10 = vpop.xlane.xlu1 %885 }
 0x388   : > { %v1060_v55 = vpop.f32.mrf.mxu1  ;;  %v890_v1 = vsub.f32 %v2122_v51, %v886_v10 }
 0x389   : > { %v2166_v56 = vsel %vm202_vm5, %v1060_v55, -1e+30 }
 0x38a   : > { %v2168_v57 = vpop.eup %1630  ;;  %v1075_v41 = vsel %vm386_vm1, %v2166_v56, -inf  ;;  %v897_v8 = vmul.f32 1.442695, %v890_v1 }
 0x38b   : > { %v1262_v59 = vpop.f32.mrf.mxu0  ;;  %v905_v13 = vsel %vm386_vm1, %v2168_v57, 0.0  ;;  %v2186_v63 = vpop.eup %1632 }
 0x38c   : > { %v2175_v60 = vsel %vm204_vm7, %v1262_v59, -1e+30  ;;  %1076 = vmax.xlane.f32.xlu2 %v1075_v41  ;;  %v899_v23 = vsel %vm386_vm1, %v2186_v63, 0.0  ;;  %1634 = vpow2.f32 %v897_v8 }
 0x38d   : > { %v1278_v16 = vsel %vm386_vm1, %v2175_v60, -inf }
 0x38e   : > { %906 = vadd.xlane.f32.xlu1 %v905_v13  ;;  %1279 = vmax.xlane.f32.xlu0 %v1278_v16 }
 0x390   : > { %v1063_v61 = vpop.f32.mrf.mxu1 }
 0x391   : > { %v2184_v62 = vsel %vm203_vm6, %v1063_v61, -1e+30 }
 0x392   : > { %v1078_v0 = vsel %vm386_vm1, %v2184_v62, -inf  ;;  %v2197_v3 = vpop.eup %1634 }
 0x393   : > { %v908_v6 = vsel %vm386_vm1, %v2197_v3, 0.0 }
 0x394   : > { %1079 = vmax.xlane.f32.xlu2 %v1078_v0 }
 0x396   : > { %900 = vadd.xlane.f32.xlu0 %v899_v23 }
 0x398   : > { %v1065_v53 = vpop.f32.mrf.mxu1 }
 0x399   : > { %v2208_v30 = vsel %vm204_vm7, %v1065_v53, -1e+30 }
 0x39a   : > { %v1081_v58 = vsel %vm386_vm1, %v2208_v30, -inf }
 0x39e   : > { %1073 = vmax.xlane.f32.xlu0 %v1072_v21 }
 0x3a6   : > { %909 = vadd.xlane.f32.xlu0 %v908_v6 }
 0x3a7   : > { %973 = vrot.lane.b32.xlu1 %v2061_v48, %s1690_s25 }
 0x3ac   : > { %975 = vrot.lane.b32.xlu2 %v2054_v44, %s1690_s25 }
 0x3d1   : > { %1082 = vmax.xlane.f32.xlu1 %v1081_v58 }
 0x3e9   : > { %v1271_v7 = vpop.xlane.xlu1 %1270 }
 0x3ea   : > { %v1281_v9 = vsub.f32 %v2142_v34, %v1271_v7  ;;  %1172 = vrot.lane.b32.xlu1 %v2054_v44, %s1689_s24 }
 0x3ec   : > { %v1285_v11 = vmul.f32 1.442695, %v1281_v9 }
 0x3ee   : > { %1636 = vpow2.f32 %v1285_v11 }
 0x3f1   : > { %v1274_v24 = vpop.xlane.xlu0 %1273 }
 0x3f2   : > { %v1282_v31 = vsub.f32 %v1266_v4, %v1274_v24 }
 0x3f4   : > { %v2215_v14 = vpop.eup %1636  ;;  %v1287_v51 = vmul.f32 1.442695, %v1282_v31 }
 0x3f5   : > { %v1293_v12 = vsel %vm386_vm1, %v2215_v14, 0.0 }
 0x3f6   : > { %1638 = vpow2.f32 %v1287_v51  ;;  %1294 = vadd.xlane.f32.xlu2 %v1293_v12 }
 0x3f7   : > { %v904_v20 = vpop.xlane.xlu2 %903 }
 0x3f8   : > { %1640 = vrcp.f32 %v904_v20  ;;  %v937_v46 = vand.u32 2147483648, %v904_v20  ;;  %vm931_vm5 = vweird.f32 %v904_v20  ;;  %v935_v19 = vand.u32 2147483647, %v904_v20 }
 0x3f9   : > { %v2223_v28 = vpop.xlane.xlu1 %1276 }
 0x3fa   : > { %vm936_vm15 = vcmp.eq.f32.partialorder %v935_v19, 8.507059e+37 }
 0x3fc   : > { %v2219_v15 = vpop.eup %1638 }
 0x3fd   : > { %v1296_v17 = vsel %vm386_vm1, %v2219_v15, 0.0 }
 0x3fe   : > { %1297 = vadd.xlane.f32.xlu0 %v1296_v17  ;;  %v1641_v32 = vpop.eup %1640 }
 0x3ff   : > { %v1077_v29 = vpop.xlane.xlu2 %1076  ;;  %v927_v33 = vmul.f32 %v1641_v32, %v904_v20  ;;  %vm932_vm4 = vweird.f32 %v1641_v32 }
 0x400   : > { %v1085_v47 = vsub.f32 %v2166_v56, %v1077_v29  ;;  %vm2237_vm6 = vmor %vm931_vm5, %vm932_vm4  ;;  %v938_v56 = vor.u32 1.1754944e-38, %v937_v46 }
 0x401   : > { %v2225_v5 = vpop.xlane.xlu0 %1279  ;;  %v2229_v34 = vpop.xlane.xlu1 %906  ;;  %v928_v36 = vsub.f32 1.0, %v927_v33 }
 0x402   : > { %v1090_v41 = vmul.f32 1.442695, %v1085_v47  ;;  %vm946_vm8 = vweird.f32 %v2229_v34 }
 0x403   : > { %v929_v37 = vmul.f32 %v1641_v32, %v928_v36 }
 0x405   : > { %v930_v43 = vadd.f32 %v1641_v32, %v929_v37 }
 0x407   : > { %v2227_v22 = vpop.xlane.xlu2 %1079  ;;  %v934_v55 = vsel %vm2237_vm6, %v1641_v32, %v930_v43  ;;  %v1284_v43 = vsub.f32 %v2175_v60, %v2225_v5  ;;  %v1283_v60 = vsub.f32 %v2159_v18, %v2223_v28 }
 0x408   : > { %v939_v1 = vsel %vm936_vm15, %v938_v56, %v934_v55 }
 0x409   : > { %v901_v35 = vpop.xlane.xlu0 %900  ;;  %v940_v21 = vmul.f32 %v2152_v50, %v939_v1  ;;  %v950_v50 = vand.u32 2147483647, %v2229_v34  ;;  %v1291_v46 = vmul.f32 1.442695, %v1284_v43  ;;  %v1289_v5 = vmul.f32 1.442695, %v1283_v60 }
 0x40a   : > { %1642 = vrcp.f32 %v901_v35  ;;  %v922_v26 = vand.u32 2147483648, %v901_v35  ;;  %v920_v54 = vand.u32 2147483647, %v901_v35  ;;  %vm916_vm14 = vweird.f32 %v901_v35 }
 0x40b   : > { %1644 = vrcp.f32 %v2229_v34  ;;  %vm951_vm11 = vcmp.eq.f32.partialorder %v950_v50, 8.507059e+37 }
 0x40c   : > { %v923_v16 = vor.u32 1.1754944e-38, %v922_v26  ;;  %vm921_vm2 = vcmp.eq.f32.partialorder %v920_v54, 8.507059e+37 }
 0x40e   : > { %1369 = vrot.lane.b32.xlu2 %v2054_v44, %s1688_s23 }
 0x40f   : > { %v976_v38 = vpop.permute.xlu2 %975 }
 0x410   : > { %v1643_v39 = vpop.eup %1642  ;;  %991 = vmatpush.bf16.msra.mxu3 %v976_v38 }
 0x411   : > { %v912_v40 = vmul.f32 %v1643_v39, %v901_v35  ;;  %v1074_v42 = vpop.xlane.xlu0 %1073  ;;  %v2234_v4 = vpop.eup %1644  ;;  %vm917_vm7 = vweird.f32 %v1643_v39 }
 0x412   : > { %v1084_v45 = vsub.f32 %v1068_v2, %v1074_v42  ;;  %v942_v44 = vmul.f32 %v2234_v4, %v2229_v34  ;;  %vm918_vm0 = vmor %vm916_vm14, %vm917_vm7  ;;  %vm947_vm3 = vweird.f32 %v2234_v4 }
 0x413   : > { %v913_v49 = vsub.f32 1.0, %v912_v40  ;;  %vm948_vm9 = vmor %vm946_vm8, %vm947_vm3 }
 0x414   : > { %v1088_v25 = vmul.f32 1.442695, %v1084_v45  ;;  %v943_v13 = vsub.f32 1.0, %v942_v44 }
 0x415   : > { %v914_v52 = vmul.f32 %v1643_v39, %v913_v49 }
 0x416   : > { %1646 = vpow2.f32 %v1088_v25  ;;  %1367 = vrot.lane.b32.xlu2 %v2061_v48, %s1688_s23  ;;  %v944_v6 = vmul.f32 %v2234_v4, %v943_v13 }
 0x417   : > { %v915_v59 = vadd.f32 %v1643_v39, %v914_v52 }
 0x418   : > { %v945_v11 = vadd.f32 %v2234_v4, %v944_v6 }
 0x419   : > { %v910_v61 = vpop.xlane.xlu0 %909  ;;  %v974_v10 = vpop.permute.xlu1 %973  ;;  %v919_v0 = vsel %vm918_vm0, %v1643_v39, %v915_v59 }
 0x41a   : > { %1648 = vrcp.f32 %v910_v61  ;;  %992 = vmatpush.bf16.msra.mxu3 %v974_v10  ;;  %v924_v23 = vsel %vm921_vm2, %v923_v16, %v919_v0  ;;  %v967_v51 = vand.u32 2147483648, %v910_v61  ;;  %v965_v17 = vand.u32 2147483647, %v910_v61 }
 0x41b   : > { %1650 = vpow2.f32 %v1090_v41  ;;  %v925_v2 = vmul.f32 %v2186_v63, %v924_v23  ;;  %v952_v63 = vand.u32 2147483648, %v2229_v34  ;;  %v949_v29 = vsel %vm948_vm9, %v2234_v4, %v945_v11 }
 0x41c   : > { %v2247_v8 = vpop.eup %1646  ;;  %vm961_vm12 = vweird.f32 %v910_v61  ;;  %v968_v35 = vor.u32 1.1754944e-38, %v967_v51  ;;  %vm966_vm4 = vcmp.eq.f32.partialorder %v965_v17, 8.507059e+37 }
 0x41d   : > { %v1096_v53 = vsel %vm386_vm1, %v2247_v8, 0.0  ;;  %v971_v58 = vpack.c.bf16 %v940_v21, %v925_v2  ;;  %v953_v32 = vor.u32 1.1754944e-38, %v952_v63 }
 0x41e   : > { %1097 = vadd.xlane.f32.xlu0 %v1096_v53 }
 0x41f   : > { %1502 = vmatmul.msk.bf16.vlgmr.msra.gmra.mxu3 %vm386_vm1, %v971_v58  ;;  %v954_v36 = vsel %vm951_vm11, %v953_v32, %v949_v29 }
 0x420   : > { %v1649_v7 = vpop.eup %1648  ;;  %v955_v38 = vmul.f32 %v2168_v57, %v954_v36 }
 0x421   : > { %v2255_v9 = vpop.eup %1650  ;;  %v957_v24 = vmul.f32 %v1649_v7, %v910_v61  ;;  %vm962_vm10 = vweird.f32 %v1649_v7 }
 0x422   : > { %v1099_v12 = vsel %vm386_vm1, %v2255_v9, 0.0  ;;  %vm963_vm13 = vmor %vm961_vm12, %vm962_vm10 }
 0x423   : > { %v958_v31 = vsub.f32 1.0, %v957_v24 }
 0x425   : > { %v959_v20 = vmul.f32 %v1649_v7, %v958_v31 }
 0x426   : > { %1100 = vadd.xlane.f32.xlu0 %v1099_v12 }
 0x427   : > { %v960_v33 = vadd.f32 %v1649_v7, %v959_v20 }
 0x429   : > { %v964_v34 = vsel %vm963_vm13, %v1649_v7, %v960_v33 }
 0x42a   : > { %v969_v37 = vsel %vm966_vm4, %v968_v35, %v964_v34 }
 0x42b   : > { %v970_v39 = vmul.f32 %v2197_v3, %v969_v37  ;;  %v1086_v3 = vsub.f32 %v2184_v62, %v2227_v22 }
 0x42d   : > { %v972_v40 = vpack.c.bf16 %v970_v39, %v955_v38  ;;  %v1092_v49 = vmul.f32 1.442695, %v1086_v3 }
 0x42f   : > { %1503 = vmatmul.msk.bf16.gmra.mxu3 %vm386_vm1, %v972_v40 }
 0x43a   : > { %1170 = vrot.lane.b32.xlu0 %v2061_v48, %s1689_s24 }
 0x444   : > { %v1083_v42 = vpop.xlane.xlu1 %1082 }
 0x445   : > { %v1087_v4 = vsub.f32 %v2208_v30, %v1083_v42 }
 0x447   : > { %v1094_v45 = vmul.f32 1.442695, %v1087_v4 }
 0x449   : > { %1652 = vpow2.f32 %v1094_v45 }
 0x44a   : > { %1654 = vpow2.f32 %v1291_v46 }
 0x44b   : > { %1656 = vpow2.f32 %v1092_v49 }
 0x44c   : > { %1658 = vpow2.f32 %v1289_v5 }
 0x44f   : > { %v2273_v47 = vpop.eup %1652 }
 0x450   : > { %v1105_v57 = vsel %vm386_vm1, %v2273_v47, 0.0  ;;  %v2279_v48 = vpop.eup %1654 }
 0x451   : > { %1106 = vadd.xlane.f32.xlu1 %v1105_v57  ;;  %v1302_v30 = vsel %vm386_vm1, %v2279_v48, 0.0  ;;  %v2285_v19 = vpop.eup %1656 }
 0x452   : > { %v1102_v25 = vsel %vm386_vm1, %v2285_v19, 0.0  ;;  %v2289_v62 = vpop.eup %1658 }
 0x453   : > { %v1299_v27 = vsel %vm386_vm1, %v2289_v62, 0.0 }
 0x459   : > { %1303 = vadd.xlane.f32.xlu1 %v1302_v30 }
 0x45c   : > { %v1173_v50 = vpop.permute.xlu1 %1172 }
 0x45d   : > { %1188 = vmatpush.bf16.msrb.mxu3 %v1173_v50 }
 0x464   : > { %1103 = vadd.xlane.f32.xlu0 %v1102_v25 }
 0x469   : > { %v1295_v22 = vpop.xlane.xlu2 %1294 }
 0x46a   : > { %1660 = vrcp.f32 %v1295_v22  ;;  %v1316_v13 = vand.u32 2147483648, %v1295_v22  ;;  %vm1310_vm6 = vweird.f32 %v1295_v22  ;;  %v1314_v16 = vand.u32 2147483647, %v1295_v22 }
 0x46c   : > { %1300 = vadd.xlane.f32.xlu0 %v1299_v27  ;;  %v1317_v2 = vor.u32 1.1754944e-38, %v1316_v13  ;;  %vm1315_vm15 = vcmp.eq.f32.partialorder %v1314_v16, 8.507059e+37 }
 0x470   : > { %v1661_v44 = vpop.eup %1660 }
 0x471   : > { %v1306_v52 = vmul.f32 %v1661_v44, %v1295_v22  ;;  %v1298_v18 = vpop.xlane.xlu0 %1297  ;;  %v1370_v28 = vpop.permute.xlu2 %1369  ;;  %vm1311_vm5 = vweird.f32 %v1661_v44 }
 0x472   : > { %1662 = vrcp.f32 %v1298_v18  ;;  %1385 = vmatpush.bf16.msrb.mxu2 %v1370_v28  ;;  %vm1312_vm7 = vmor %vm1310_vm6, %vm1311_vm5  ;;  %v1331_v10 = vand.u32 2147483648, %v1298_v18  ;;  %v1329_v23 = vand.u32 2147483647, %v1298_v18  ;;  %vm1325_vm0 = vweird.f32 %v1298_v18 }
 0x473   : > { %v1307_v26 = vsub.f32 1.0, %v1306_v52 }
 0x474   : > { %v1332_v6 = vor.u32 1.1754944e-38, %v1331_v10  ;;  %vm1330_vm3 = vcmp.eq.f32.partialorder %v1329_v23, 8.507059e+37 }
 0x475   : > { %v1308_v54 = vmul.f32 %v1661_v44, %v1307_v26 }
 0x477   : > { %v1309_v56 = vadd.f32 %v1661_v44, %v1308_v54 }
 0x478   : > { %v1663_v55 = vpop.eup %1662 }
 0x479   : > { %v1321_v41 = vmul.f32 %v1663_v55, %v1298_v18  ;;  %v1368_v59 = vpop.permute.xlu2 %1367  ;;  %v1313_v0 = vsel %vm1312_vm7, %v1661_v44, %v1309_v56  ;;  %vm1326_vm14 = vweird.f32 %v1663_v55 }
 0x47a   : > { %1386 = vmatpush.bf16.msrb.mxu2 %v1368_v59  ;;  %vm1327_vm2 = vmor %vm1325_vm0, %vm1326_vm14  ;;  %v1318_v53 = vsel %vm1315_vm15, %v1317_v2, %v1313_v0 }
 0x47b   : > { %v1322_v61 = vsub.f32 1.0, %v1321_v41  ;;  %v1319_v11 = vmul.f32 %v2215_v14, %v1318_v53 }
 0x47d   : > { %v1323_v1 = vmul.f32 %v1663_v55, %v1322_v61 }
 0x47f   : > { %v1324_v21 = vadd.f32 %v1663_v55, %v1323_v1 }
 0x481   : > { %v1328_v58 = vsel %vm1327_vm2, %v1663_v55, %v1324_v21 }
 0x482   : > { %v1333_v7 = vsel %vm1330_vm3, %v1332_v6, %v1328_v58 }
 0x483   : > { %v1334_v24 = vmul.f32 %v2219_v15, %v1333_v7 }
 0x485   : > { %v1365_v63 = vpack.c.bf16 %v1334_v24, %v1319_v11 }
 0x487   : > { %1510 = vmatmul.msk.bf16.vlgmr.msrb.gmra.mxu2 %vm386_vm1, %v1365_v63 }
 0x491   : > { %v1098_v31 = vpop.xlane.xlu0 %1097 }
 0x492   : > { %1664 = vrcp.f32 %v1098_v31  ;;  %v1119_v14 = vand.u32 2147483648, %v1098_v31  ;;  %vm1113_vm9 = vweird.f32 %v1098_v31  ;;  %v1117_v15 = vand.u32 2147483647, %v1098_v31 }
 0x494   : > { %v1120_v4 = vor.u32 1.1754944e-38, %v1119_v14  ;;  %vm1118_vm12 = vcmp.eq.f32.partialorder %v1117_v15, 8.507059e+37 }
 0x498   : > { %v1665_v51 = vpop.eup %1664 }
 0x499   : > { %v1109_v12 = vmul.f32 %v1665_v51, %v1098_v31  ;;  %v1101_v20 = vpop.xlane.xlu0 %1100  ;;  %vm1114_vm8 = vweird.f32 %v1665_v51 }
 0x49a   : > { %1666 = vrcp.f32 %v1101_v20  ;;  %vm1115_vm10 = vmor %vm1113_vm9, %vm1114_vm8  ;;  %v1134_v37 = vand.u32 2147483648, %v1101_v20  ;;  %v1132_v42 = vand.u32 2147483647, %v1101_v20  ;;  %vm1128_vm13 = vweird.f32 %v1101_v20 }
 0x49b   : > { %v1110_v17 = vsub.f32 1.0, %v1109_v12 }
 0x49c   : > { %v1135_v45 = vor.u32 1.1754944e-38, %v1134_v37  ;;  %vm1133_vm5 = vcmp.eq.f32.partialorder %v1132_v42, 8.507059e+37 }
 0x49d   : > { %v1111_v29 = vmul.f32 %v1665_v51, %v1110_v17 }
 0x49f   : > { %v1112_v33 = vadd.f32 %v1665_v51, %v1111_v29 }
 0x4a0   : > { %v1667_v32 = vpop.eup %1666 }
 0x4a1   : > { %v1124_v35 = vmul.f32 %v1667_v32, %v1101_v20  ;;  %v1116_v39 = vsel %vm1115_vm10, %v1665_v51, %v1112_v33  ;;  %vm1129_vm11 = vweird.f32 %v1667_v32 }
 0x4a2   : > { %v994_v34 = vpop.f32.mrf.mxu3  ;;  %vm1130_vm4 = vmor %vm1128_vm13, %vm1129_vm11  ;;  %v1121_v46 = vsel %vm1118_vm12, %v1120_v4, %v1116_v39 }
 0x4a3   : > { %v1125_v36 = vsub.f32 1.0, %v1124_v35  ;;  %v1004_v38 = vpack.c.bf16 %v994_v34, %v994_v34  ;;  %v1122_v30 = vmul.f32 %v2247_v8, %v1121_v46 }
 0x4a5   : > { %v1126_v40 = vmul.f32 %v1667_v32, %v1125_v36  ;;  %1012 = vrot.lane.b32.xlu1 %v1004_v38, %s1688_s23 }
 0x4a7   : > { %v1127_v43 = vadd.f32 %v1667_v32, %v1126_v40 }
 0x4a9   : > { %v1131_v57 = vsel %vm1130_vm4, %v1667_v32, %v1127_v43 }
 0x4aa   : > { %v1136_v3 = vsel %vm1133_vm5, %v1135_v45, %v1131_v57  ;;  %v996_v49 = vpop.f32.mrf.mxu3 }
 0x4ab   : > { %v1137_v60 = vmul.f32 %v2255_v9, %v1136_v3  ;;  %v1005_v5 = vpack.c.bf16 %v996_v49, %v996_v49 }
 0x4ac   : > { %v1171_v25 = vpop.permute.xlu0 %1170 }
 0x4ad   : > { %1189 = vmatpush.bf16.msrb.mxu3 %v1171_v25  ;;  %v1168_v22 = vpack.c.bf16 %v1137_v60, %v1122_v30  ;;  %1014 = vrot.lane.b32.xlu2 %v1005_v5, %s1688_s23 }
 0x4b0   : > { %1506 = vmatmul.msk.bf16.vlgmr.msrb.gmra.mxu3 %vm386_vm1, %v1168_v22 }
 0x4b2   : > { %v999_v27 = vpop.f32.mrf.mxu3 }
 0x4b3   : > { %v1006_v44 = vpack.c.bf16 %v999_v27, %v999_v27 }
 0x4b5   : > { %1016 = vrot.lane.b32.xlu2 %v1006_v44, %s1688_s23 }
 0x4ba   : > { %v1001_v52 = vpop.f32.mrf.mxu3 }
 0x4bb   : > { %v1007_v18 = vpack.c.bf16 %v1001_v52, %v1001_v52 }
 0x4bd   : > { %1018 = vrot.lane.b32.xlu0 %v1007_v18, %s1688_s23 }
 0x4c4   : > { %v1107_v28 = vpop.xlane.xlu1 %1106 }
 0x4c5   : > { %1668 = vrcp.f32 %v1107_v28  ;;  %v1164_v1 = vand.u32 2147483648, %v1107_v28  ;;  %vm1158_vm7 = vweird.f32 %v1107_v28  ;;  %v1162_v23 = vand.u32 2147483647, %v1107_v28 }
 0x4c7   : > { %v1165_v24 = vor.u32 1.1754944e-38, %v1164_v1  ;;  %vm1163_vm0 = vcmp.eq.f32.partialorder %v1162_v23, 8.507059e+37 }
 0x4cb   : > { %v1669_v9 = vpop.eup %1668 }
 0x4cc   : > { %v1304_v8 = vpop.xlane.xlu1 %1303  ;;  %v1154_v26 = vmul.f32 %v1669_v9, %v1107_v28  ;;  %vm1159_vm6 = vweird.f32 %v1669_v9 }
 0x4cd   : > { %1670 = vrcp.f32 %v1304_v8  ;;  %vm2303_vm14 = vmor %vm1158_vm7, %vm1159_vm6  ;;  %vm1355_vm10 = vweird.f32 %v1304_v8  ;;  %v1361_v29 = vand.u32 2147483648, %v1304_v8  ;;  %v1359_v35 = vand.u32 2147483647, %v1304_v8 }
 0x4ce   : > { %v1155_v55 = vsub.f32 1.0, %v1154_v26  ;;  %vm1024_vm7 = vcmask 519424  }
 0x4cf   : > { %v1362_v42 = vor.u32 1.1754944e-38, %v1361_v29  ;;  %vm1360_vm13 = vcmp.eq.f32.partialorder %v1359_v35, 8.507059e+37 }
 0x4d0   : > { %v1156_v59 = vmul.f32 %v1669_v9, %v1155_v55 }
 0x4d2   : > { %v1157_v61 = vadd.f32 %v1669_v9, %v1156_v59 }
 0x4d3   : > { %v1671_v54 = vpop.eup %1670 }
 0x4d4   : > { %v1351_v41 = vmul.f32 %v1671_v54, %v1304_v8  ;;  %v1161_v11 = vsel %vm2303_vm14, %v1669_v9, %v1157_v61  ;;  %vm1356_vm3 = vweird.f32 %v1671_v54  ;;  %vm1418_vm14 = vcmask 1044224  }
 0x4d5   : > { %v1166_v12 = vsel %vm1163_vm0, %v1165_v24, %v1161_v11  ;;  %vm2309_vm11 = vmor %vm1355_vm10, %vm1356_vm3 }
 0x4d6   : > { %v1352_v16 = vsub.f32 1.0, %v1351_v41  ;;  %v1167_v36 = vmul.f32 %v2273_v47, %v1166_v12 }
 0x4d7   : > { %v1104_v56 = vpop.xlane.xlu0 %1103 }
 0x4d8   : > { %1672 = vrcp.f32 %v1104_v56  ;;  %v1353_v6 = vmul.f32 %v1671_v54, %v1352_v16  ;;  %v1149_v53 = vand.u32 2147483648, %v1104_v56  ;;  %v1147_v7 = vand.u32 2147483647, %v1104_v56 }
 0x4d9   : > { %vm1143_vm2 = vweird.f32 %v1104_v56 }
 0x4da   : > { %v1354_v31 = vadd.f32 %v1671_v54, %v1353_v6  ;;  %v1150_v51 = vor.u32 1.1754944e-38, %v1149_v53  ;;  %vm1148_vm9 = vcmp.eq.f32.partialorder %v1147_v7, 8.507059e+37 }
 0x4dc   : > { %v1358_v37 = vsel %vm2309_vm11, %v1671_v54, %v1354_v31 }
 0x4de   : > { %v1673_v13 = vpop.eup %1672 }
 0x4df   : > { %v1139_v10 = vmul.f32 %v1673_v13, %v1104_v56  ;;  %v1301_v0 = vpop.xlane.xlu0 %1300  ;;  %vm1144_vm15 = vweird.f32 %v1673_v13 }
 0x4e0   : > { %1674 = vrcp.f32 %v1301_v0  ;;  %vm1145_vm8 = vmor %vm1143_vm2, %vm1144_vm15  ;;  %v1346_v34 = vand.u32 2147483648, %v1301_v0  ;;  %v1344_v39 = vand.u32 2147483647, %v1301_v0  ;;  %vm1340_vm4 = vweird.f32 %v1301_v0 }
 0x4e1   : > { %v1140_v2 = vsub.f32 1.0, %v1139_v10 }
 0x4e2   : > { %v1347_v43 = vor.u32 1.1754944e-38, %v1346_v34  ;;  %vm1345_vm6 = vcmp.eq.f32.partialorder %v1344_v39, 8.507059e+37 }
 0x4e3   : > { %v1141_v58 = vmul.f32 %v1673_v13, %v1140_v2 }
 0x4e5   : > { %v1142_v63 = vadd.f32 %v1673_v13, %v1141_v58 }
 0x4e6   : > { %v1675_v50 = vpop.eup %1674 }
 0x4e7   : > { %v1336_v20 = vmul.f32 %v1675_v50, %v1301_v0  ;;  %v1146_v17 = vsel %vm1145_vm8, %v1673_v13, %v1142_v63  ;;  %vm1341_vm12 = vweird.f32 %v1675_v50 }
 0x4e8   : > { %v1151_v32 = vsel %vm1148_vm9, %v1150_v51, %v1146_v17  ;;  %vm1342_vm5 = vmor %vm1340_vm4, %vm1341_vm12 }
 0x4e9   : > { %v1337_v14 = vsub.f32 1.0, %v1336_v20  ;;  %v1152_v15 = vmul.f32 %v2285_v19, %v1151_v32  ;;  %v1363_v19 = vsel %vm1360_vm13, %v1362_v42, %v1358_v37 }
 0x4ea   : > { %v1364_v57 = vmul.f32 %v2279_v48, %v1363_v19 }
 0x4eb   : > { %v1338_v38 = vmul.f32 %v1675_v50, %v1337_v14  ;;  %v1169_v40 = vpack.c.bf16 %v1167_v36, %v1152_v15 }
 0x4ed   : > { %v1339_v4 = vadd.f32 %v1675_v50, %v1338_v38  ;;  %1507 = vmatmul.msk.bf16.gmra.mxu3 %vm386_vm1, %v1169_v40 }
 0x4ef   : > { %v1343_v47 = vsel %vm1342_vm5, %v1675_v50, %v1339_v4 }
 0x4f0   : > { %v1348_v45 = vsel %vm1345_vm6, %v1347_v43, %v1343_v47 }
 0x4f1   : > { %v1349_v46 = vmul.f32 %v2289_v62, %v1348_v45 }
 0x4f3   : > { %v1366_v3 = vpack.c.bf16 %v1364_v57, %v1349_v46 }
 0x4f5   : > { %1511 = vmatmul.msk.bf16.gmra.mxu2 %vm386_vm1, %v1366_v3  ;;  %vm1221_vm1 = vcmask 781824  }
 0x507   : > { %v1015_v60 = vpop.permute.xlu2 %1014 }
 0x508   : > { %1026 = vst.msk [vmem:[%s2131_s20 + $0x4] sm:$0xf] %vm1024_vm7, %v1015_v60 }
 0x50a   : > { %v1388_v49 = vpop.f32.mrf.mxu2 }
 0x50b   : > { %v1398_v30 = vpack.c.bf16 %v1388_v49, %v1388_v49 }
 0x50d   : > { %1406 = vrot.lane.b32.xlu0 %v1398_v30, %s1690_s25 }
 0x50f   : > { %v1017_v25 = vpop.permute.xlu2 %1016 }
 0x510   : > { %1027 = vst.msk [vmem:[%s2131_s20 + $0x8] sm:$0xf] %vm1024_vm7, %v1017_v25 }
 0x512   : > { %v1390_v52 = vpop.f32.mrf.mxu2 }
 0x513   : > { %v1399_v26 = vpack.c.bf16 %v1390_v52, %v1390_v52 }
 0x517   : > { %v1013_v5 = vpop.permute.xlu1 %1012 }
 0x518   : > { %1025 = vst.msk [vmem:[%s2131_s20] sm:$0xf] %vm1024_vm7, %v1013_v5 }
 0x52f   : > { %v1019_v22 = vpop.permute.xlu0 %1018 }
 0x530   : > { %1028 = vst.msk [vmem:[%s2131_s20 + $0xc] sm:$0xf] %vm1024_vm7, %v1019_v22 }
 0x533   : > { %v1191_v27 = vpop.f32.mrf.mxu3 }
 0x534   : > { %v1201_v62 = vpack.c.bf16 %v1191_v27, %v1191_v27 }
 0x536   : > { %1209 = vrot.lane.b32.xlu2 %v1201_v62, %s1689_s24 }
 0x53b   : > { %v1193_v48 = vpop.f32.mrf.mxu3 }
 0x53c   : > { %v1202_v44 = vpack.c.bf16 %v1193_v48, %v1193_v48 }
 0x53e   : > { %1211 = vrot.lane.b32.xlu1 %v1202_v44, %s1689_s24 }
 0x570   : > { %v1196_v18 = vpop.f32.mrf.mxu3 }
 0x571   : > { %v1203_v28 = vpack.c.bf16 %v1196_v18, %v1196_v18 }
 0x573   : > { %1213 = vrot.lane.b32.xlu2 %v1203_v28, %s1689_s24 }
 0x578   : > { %v1198_v8 = vpop.f32.mrf.mxu3  ;;  %v1393_v9 = vpop.f32.mrf.mxu2 }
 0x579   : > { %v1204_v54 = vpack.c.bf16 %v1198_v8, %v1198_v8  ;;  %v1400_v56 = vpack.c.bf16 %v1393_v9, %v1393_v9 }
 0x57b   : > { %1408 = vrot.lane.b32.xlu2 %v1399_v26, %s1690_s25  ;;  %1215 = vrot.lane.b32.xlu1 %v1204_v54, %s1689_s24 }
 0x57f   : > { %v1407_v61 = vpop.permute.xlu0 %1406 }
 0x580   : > { %v1395_v55 = vpop.f32.mrf.mxu2 }
 0x581   : > { %v1401_v41 = vpack.c.bf16 %v1395_v55, %v1395_v55 }
 0x583   : > { %1410 = vrot.lane.b32.xlu1 %v1400_v56, %s1690_s25  ;;  %1412 = vrot.lane.b32.xlu0 %v1401_v41, %s1690_s25 }
 0x590   : > { %v1210_v59 = vpop.permute.xlu2 %1209 }
 0x591   : > { %1222 = vst.msk [vmem:[%s2131_s20] sm:$0xf] %vm1221_vm1, %v1210_v59 }
 0x592   : > { %1419 = vst.msk [vmem:[%s2131_s20] sm:$0xf] %vm1418_vm14, %v1407_v61 }
 0x5b0   : > { %v1212_v13 = vpop.permute.xlu1 %1211 }
 0x5b1   : > { %1223 = vst.msk [vmem:[%s2131_s20 + $0x4] sm:$0xf] %vm1221_vm1, %v1212_v13 }
 0x5cd   : > { %v1214_v16 = vpop.permute.xlu2 %1213 }
 0x5ce   : > { %1224 = vst.msk [vmem:[%s2131_s20 + $0x8] sm:$0xf] %vm1221_vm1, %v1214_v16 }
 0x5d5   : > { %v1409_v0 = vpop.permute.xlu2 %1408 }
 0x5d6   : > { %1420 = vst.msk [vmem:[%s2131_s20 + $0x4] sm:$0xf] %vm1418_vm14, %v1409_v0 }
 0x5ed   : > { %v1216_v10 = vpop.permute.xlu1 %1215 }
 0x5ee   : > { %1225 = vst.msk [vmem:[%s2131_s20 + $0xc] sm:$0xf] %vm1221_vm1, %v1216_v10 }
 0x5f5   : > { %v1411_v1 = vpop.permute.xlu1 %1410  ;;  %v1413_v23 = vpop.permute.xlu0 %1412 }
 0x5f6   : > { %1421 = vst.msk [vmem:[%s2131_s20 + $0x8] sm:$0xf] %vm1418_vm14, %v1411_v1 }
 0x5f7   : > { %1422 = vst.msk [vmem:[%s2131_s20 + $0xc] sm:$0xf] %vm1418_vm14, %v1413_v23 }
 0x5f8 PF: > { %s13_s12 = sadd.s32 1, %s1682_s12  }
 0x5f9   : > { %p10_p4 = scmp.ge.s32.totalorder %s13_s12, 4  }
 0x5fb   :  { %12 = sbr.rel (!%p10_p4) target bundleno = 1 (0x1), region = 62 }

// kernel: cogvlm_forward.8
= control target key start
LH: loop header
LB: loop body
LE: loop exit
PB: predicated region body
PF: predicated region fallthrough
CT: control target
= control target key end

     0   :  { %s1676_s30 = smov [#allocation3]   ;;  %s1985_s0 = inlined_call_operand.vmem [shape: s32[4], index: 0, kind: input, shape index: {}]   ;;  %s1986_s1 = inlined_call_operand.vmem [shape: bf16[64,128], index: 1, kind: input, shape index: {}]   ;;  %s1987_s2 = inlined_call_operand.vmem [shape: f32[64,128], index: 2, kind: input, shape index: {}]   ;;  %s1988_s3 = inlined_call_operand.vmem [shape: f32[1,128], index: 3, kind: input, shape index: {}]   ;;  %s1989_s4 = inlined_call_operand.vmem [shape: bf16[2,128,128], index: 4, kind: input, shape index: {}]   ;;  %s1990_s5 = inlined_call_operand.vmem [shape: bf16[2,128,512], index: 5, kind: input, shape index: {}]   ;;  %s1991_s6 = inlined_call_operand.hbm [shape: bf16[2,256,128], index: 6, kind: input, shape index: {}]   ;;  %s1992_s7 = inlined_call_operand.vmem [shape: bf16[64,128], index: 7, kind: output, shape index: {0}]   ;;  %s1993_s8 = inlined_call_operand.vmem [shape: f32[64,128], index: 8, kind: output, shape index: {1}]  }
   0x1   :  { %s15_s29 = sshll.u32 %s1985_s0, 4  ;;  %s16_s29 = int_to_ptr.vmem [resolvable:$true] %s15_s29 }
   0x2   :  { %18 = dma.vmem_to_smem %s16_s29, 16, %s1676_s30, [#allocation2] }
   0x3   :  { %1654 = dma.done.wait [#allocation2], 16 }
   0x4   :  { %1655 = vsyncadd [#allocation2], 4294967280 }
   0x5   :  { %21 = sfence }
   0x6   :  { %22 = vsyncpa [#allocation5], 0 }
   0x7   :  { %24 = vsyncpa [#allocation5 + $0x1], 0  ;;  %s1728_s9 = smov 0   ;;  %s1730_s10 = smov 0  }
   0x8   :  { %s1732_s11 = smov 0   ;;  %s1734_s12 = smov 0  }
   0x9 LB: > { %s1744_s0 = sadd.s32 1, %s1674_s12   ;;  %s1746_s13 = sadd.s32 4294967295, %s1674_s12   ;;  %s1674_s12 = sphi %s1734_s12, %s2007_s12   ;;  %s1670_s11 = sphi %s1732_s11, %s2006_s11   ;;  %s1666_s10 = sphi %s1730_s10, %s2005_s10   ;;  %s1662_s9 = sphi %s1728_s9, %s2004_s9  }
   0xa   : > { %s163_s14 = sld [smem:[#allocation3 + %s1674_s12]]  ;;  %p175_p0 = scmp.ne.s32.totalorder %s1670_s11, %s1666_s10 }
   0xb   : > { %s164_s15 = sld [smem:[#allocation3 + %s1744_s0]]  ;;  %p176_p1 = scmp.eq.s32.totalorder %s1674_s12, 0 }
   0xc   : > { %p181_p2 = scmp.ne.s32.totalorder %s1666_s10, %s1662_s9  ;;  %p182_p3 = scmp.eq.s32.totalorder %s1746_s13, 0 }
   0xd   : > { %p1753_p4 = por %p176_p1, %p175_p0  ;;  %s298_s18 = sand.u32 1, %s1670_s11  }
   0xe   : > { %p1757_p5 = por %p182_p3, %p181_p2  ;;  %s168_s19 = sadd.s32 1, %s1670_s11 }
   0xf   : > { %s1210_s20 = sshll.u32 %s298_s18, 7  ;;  %p1536_p6 = scmp.lt.s32.totalorder %s1674_s12, 4 }
  0x10   : > { %s1526_s22 = scalar_select %p1753_p4, [#allocation3], [#allocation6] }
  0x11   : > { %s165_s21 = ssub.s32 %s163_s14, %s164_s15  ;;  %p1772_p8 = pnand %p1536_p6, %p1753_p4 }
  0x12   : > { %p166_p7 = scmp.eq.s32.totalorder %s165_s21, 0  ;;  %s2009_s22 = smov (!%p1536_p6, %s1526_s22), [#allocation7] }
  0x13   : > { %s1527_s24 = scalar_select %p1753_p4, %s1674_s12, 0 }
  0x14   : > { %s1766_s23 = scalar_select %p166_p7, %s1670_s11, %s168_s19  }
  0x15   : > { %s2011_s24 = smov (!%p1536_p6, %s1527_s24), 0  ;;  %s302_s27 = scalar_lea.vmem [#allocation4], %s1210_s20 }
  0x16   : > { %s303_s26 = sld [smem:[%s2009_s22 + %s2011_s24]]  ;;  %s1776_s28 = sshll.u32 %s302_s27, 4  ;;  %s312_s28 = int_to_ptr.vmem [resolvable:$true] %s1776_s28 }
  0x17   : > { %p1213_p9 = scmp.ge.s32.totalorder %s1674_s12, 1  ;;  %p319_p10 = scmp.lt.s32.totalorder %s1674_s12, 5 }
  0x18   : > { %s299_s19 = scalar_lea.sflag [#allocation5], %s298_s18  ;;  %p1612_p13 = pneg %p1772_p8 }
  0x19   : > { %p1778_p11 = pnand %p1213_p9, %p319_p10  ;;  %s1615_s24 = scalar_lea.hbm %s1991_s6, 256 }
  0x1c   : > { %s1461_s30 = sshll.u32 %s303_s26, 7 }
  0x1d   : > { %s308_s15 = scalar_lea.hbm %s1991_s6, %s1461_s30 }
  0x1e   : > { %s309_s16 = sshll.u32 %s308_s15, 4  ;;  %s310_s16 = int_to_ptr.hbm [resolvable:$true] %s309_s16 }
  0x1f   : > { %s1608_s21 = sshra.s32 %s310_s16, 4  ;;  %s1609_s21 = int_to_ptr.hbm [resolvable:$true] %s1608_s21 }
  0x20   : > { %s1610_s20 = scalar_lea.hbm %s1609_s21, 128  ;;  %p1616_p2 = scmp.lt.s32.totalorder %s1609_s21, %s1991_s6 }
  0x21   : > { %p1611_p12 = scmp.ne.s32.totalorder %s1609_s21, %s1610_s20  ;;  %p1617_p3 = scmp.lt.s32.totalorder %s1615_s24, %s1610_s20 }
  0x23   : > { %p1613_p0 = pnand %p1612_p13, %p1611_p12  ;;  %p1618_p4 = por %p1617_p3, %p1616_p2 }
  0x25   : > { %p1614_p1 = pneg %p1613_p0 }
  0x27   : > { %p1619_p6 = pnand %p1618_p4, %p1614_p1 }
  0x29   : > { %1622 = shalt.err (!%p1619_p6)
}
  0x2a   : > { %s1677_s18 = smov 64   ;;  %s1678_s30 = smov 4  }
  0x2b   : > { %1535 = dma.hbm_to_vmem [thread:$0]  (!%p1772_p8), %s310_s16, 2048, %s312_s28, %s299_s19, %s1677_s18, %s1677_s18, %s1678_s30  }
  0x2c   : > { %323 = sbr.rel (%p1778_p11) target bundleno = 694 (0x2b6), region = 44  ;;  %s325_s9 = sand.u32 (!%p1778_p11), 1, %s1666_s10  }
  0x2d   : > { %s1214_s14 = sshll.u32 (!%p1778_p11), %s325_s9, 7  ;;  %s326_s15 = scalar_lea.sflag (!%p1778_p11), [#allocation5], %s325_s9 }
  0x2e   : > { %s1799_s12 = scalar_lea.vmem (!%p1778_p11), [#allocation4], %s1214_s14 }
  0x31   : > { %1657 = dma.done.wait (%p1757_p5), %s326_s15, 2048  }
  0x32   : > { %1659 = vsyncadd (%p1757_p5), %s326_s15, 4294965248  ;;  %s400_s21 = sld [smem:[#allocation3 + %s1746_s13]]  ;;  %s1215_s19 = sshll.u32 %s1746_s13, 1  ;;  %v1679_v24 = vmov 128.0  }
  0x33   : > { %p389_p5 = scmp.lt.s32.totalorder %s1215_s19, 7  ;;  %1574 = vrcp.f32 %v1679_v24 }
  0x35   : > { %s2015_s19 = smov (!%p389_p5, %s1215_s19), 7 }
  0x36   : > { %s1216_s17 = sshll.u32 %s2015_s19, 2  ;;  %s1218_s26 = sshll.u32 %s2015_s19, 3 }
  0x37   : > { %s392_s24 = scalar_lea.vmem %s1986_s1, %s1216_s17  ;;  %s398_s30 = scalar_lea.vmem %s1987_s2, %s1218_s26 }
  0x38   : > { %p401_p7 = scmp.lt.s32.totalorder %s400_s21, 1  ;;  %v1464_v8 = vld [vmem:[%s392_s24] sm:$0xff]  ;;  %s425_s15 = scalar_lea.vmem %s1993_s8, %s1218_s26  ;;  %v446_v13 = vld [vmem:[%s398_s30 + $0x8] sm:$0xff] }
  0x39   : > { %v445_v9 = vld [vmem:[%s398_s30] sm:$0xff]  ;;  %v1857_v42 = vpop.eup %1574  ;;  %s419_s24 = scalar_lea.vmem %s1992_s7, %s1216_s17 }
  0x3a   : > { %s2013_s21 = smov (!%p401_p7, %s400_s21), 1  ;;  %v522_v54 = vmul.f32 128.0, %v1857_v42  ;;  %vm526_vm0 = vweird.f32 %v1857_v42 }
  0x3b   : > { %s1462_s25 = sshll.u32 %s2013_s21, 6  ;;  %s407_s21 = sld [smem:[#allocation3 + %s1746_s13]] }
  0x3c   : > { %s405_s16 = scalar_lea.vmem %s1989_s4, %s1462_s25 }
  0x3d   : > { %v1472_v0 = vld [vmem:[%s405_s16 + $0x38] sm:$0xff]  ;;  %v1471_v1 = vld [vmem:[%s405_s16 + $0x30] sm:$0xff]  ;;  %v1470_v2 = vld [vmem:[%s405_s16 + $0x28] sm:$0xff] }
  0x3e   : > { %501 = vmatpush.bf16.msra.mxu0 %v1472_v0  ;;  %v1469_v3 = vld [vmem:[%s405_s16 + $0x20] sm:$0xff]  ;;  %v1468_v4 = vld [vmem:[%s405_s16 + $0x18] sm:$0xff]  ;;  %v1467_v5 = vld [vmem:[%s405_s16 + $0x10] sm:$0xff] }
  0x3f   : > { %v1466_v6 = vld [vmem:[%s405_s16 + $0x8] sm:$0xff]  ;;  %v1465_v7 = vld [vmem:[%s405_s16] sm:$0xff] }
  0x41   : > { %p408_p8 = scmp.lt.s32.totalorder %s407_s21, 1 }
  0x42   : > { %502 = vmatpush.bf16.msra.mxu0 %v1471_v1 }
  0x43   : > { %s2017_s21 = smov (!%p408_p8, %s407_s21), 1 }
  0x44   : > { %s1463_s25 = sshll.u32 %s2017_s21, 8 }
  0x45   : > { %s1839_s16 = scalar_lea.vmem %s1990_s5, %s1463_s25 }
  0x46   : > { %503 = vmatpush.bf16.msra.mxu0 %v1470_v2  ;;  %v1377_v17 = vld [vmem:[%s1839_s16 + $0xe0] sm:$0xf]  ;;  %v1503_v18 = vld [vmem:[%s1839_s16 + $0xec] sm:$0xf0]  ;;  %v1501_v19 = vld [vmem:[%s1839_s16 + $0xe4] sm:$0xf] }
  0x47   : > { %v1378_v20 = vor.u32 %v1503_v18, %v1377_v17  ;;  %v1379_v21 = vld [vmem:[%s1839_s16 + $0xf0] sm:$0xf0]  ;;  %v1385_v22 = vld [vmem:[%s1839_s16 + $0xe8] sm:$0xf]  ;;  %v1504_v23 = vld [vmem:[%s1839_s16 + $0xf4] sm:$0xf0] }
  0x48   : > { %v1382_v25 = vor.u32 %v1501_v19, %v1379_v21  ;;  %v1386_v26 = vor.u32 %v1504_v23, %v1385_v22  ;;  %v1502_v27 = vld [vmem:[%s1839_s16 + $0xec] sm:$0xf]  ;;  %v1387_v28 = vld [vmem:[%s1839_s16 + $0xf8] sm:$0xf0]  ;;  %v1361_v30 = vld [vmem:[%s1839_s16 + $0xc0] sm:$0xf] }
  0x49   : > { %753 = vmatpush.bf16.msra.mxu1 %v1378_v20  ;;  %v1390_v29 = vor.u32 %v1502_v27, %v1387_v28  ;;  %v1499_v31 = vld [vmem:[%s1839_s16 + $0xcc] sm:$0xf0]  ;;  %v1497_v32 = vld [vmem:[%s1839_s16 + $0xc4] sm:$0xf]  ;;  %v1363_v34 = vld [vmem:[%s1839_s16 + $0xd0] sm:$0xf0] }
  0x4a   : > { %504 = vmatpush.bf16.msra.mxu0 %v1469_v3  ;;  %767 = vmatpush.bf16.msra.mxu2 %v1382_v25  ;;  %v1362_v33 = vor.u32 %v1499_v31, %v1361_v30  ;;  %v1369_v35 = vld [vmem:[%s1839_s16 + $0xc8] sm:$0xf]  ;;  %v1500_v36 = vld [vmem:[%s1839_s16 + $0xd4] sm:$0xf0]  ;;  %v1366_v37 = vor.u32 %v1497_v32, %v1363_v34  ;;  %v1498_v39 = vld [vmem:[%s1839_s16 + $0xcc] sm:$0xf] }
  0x4b   : > { %781 = vmatpush.bf16.msra.mxu3 %v1386_v26  ;;  %v1370_v38 = vor.u32 %v1500_v36, %v1369_v35  ;;  %v1371_v40 = vld [vmem:[%s1839_s16 + $0xd8] sm:$0xf0]  ;;  %v1345_v43 = vld [vmem:[%s1839_s16 + $0xa0] sm:$0xf]  ;;  %v1495_v44 = vld [vmem:[%s1839_s16 + $0xac] sm:$0xf0] }
  0x4c   : > { %v1374_v41 = vor.u32 %v1498_v39, %v1371_v40  ;;  %v1493_v45 = vld [vmem:[%s1839_s16 + $0xa4] sm:$0xf]  ;;  %v1346_v46 = vor.u32 %v1495_v44, %v1345_v43  ;;  %v1347_v47 = vld [vmem:[%s1839_s16 + $0xb0] sm:$0xf0]  ;;  %v1353_v48 = vld [vmem:[%s1839_s16 + $0xa8] sm:$0xf] }
  0x4d   : > { %754 = vmatpush.bf16.msra.mxu1 %v1362_v33  ;;  %v1496_v49 = vld [vmem:[%s1839_s16 + $0xb4] sm:$0xf0]  ;;  %v1350_v50 = vor.u32 %v1493_v45, %v1347_v47  ;;  %v1494_v52 = vld [vmem:[%s1839_s16 + $0xac] sm:$0xf]  ;;  %v1355_v53 = vld [vmem:[%s1839_s16 + $0xb8] sm:$0xf0] }
  0x4e   : > { %505 = vmatpush.bf16.msra.mxu0 %v1468_v4  ;;  %768 = vmatpush.bf16.msra.mxu2 %v1366_v37  ;;  %v1354_v51 = vor.u32 %v1496_v49, %v1353_v48  ;;  %v1358_v55 = vor.u32 %v1494_v52, %v1355_v53  ;;  %v1329_v56 = vld [vmem:[%s1839_s16 + $0x80] sm:$0xf]  ;;  %v1491_v57 = vld [vmem:[%s1839_s16 + $0x8c] sm:$0xf0]  ;;  %v1489_v58 = vld [vmem:[%s1839_s16 + $0x84] sm:$0xf] }
  0x4f   : > { %782 = vmatpush.bf16.msra.mxu3 %v1370_v38  ;;  %v1330_v59 = vor.u32 %v1491_v57, %v1329_v56  ;;  %v1331_v60 = vld [vmem:[%s1839_s16 + $0x90] sm:$0xf0]  ;;  %v1337_v61 = vld [vmem:[%s1839_s16 + $0x88] sm:$0xf]  ;;  %v1492_v62 = vld [vmem:[%s1839_s16 + $0x94] sm:$0xf0] }
  0x50   : > { %v1334_v63 = vor.u32 %v1489_v58, %v1331_v60  ;;  %v1338_v0 = vor.u32 %v1492_v62, %v1337_v61  ;;  %v1490_v1 = vld [vmem:[%s1839_s16 + $0x8c] sm:$0xf]  ;;  %v1339_v2 = vld [vmem:[%s1839_s16 + $0x98] sm:$0xf0]  ;;  %v523_v3 = vsub.f32 1.0, %v522_v54 }
  0x51   : > { %755 = vmatpush.bf16.msra.mxu1 %v1346_v46  ;;  %v1342_v4 = vor.u32 %v1490_v1, %v1339_v2  ;;  %v1323_v17 = vld [vmem:[%s1839_s16 + $0x78] sm:$0xf0]  ;;  %v1297_v20 = vld [vmem:[%s1839_s16 + $0x40] sm:$0xf]  ;;  %v1483_v21 = vld [vmem:[%s1839_s16 + $0x4c] sm:$0xf0] }
  0x52   : > { %506 = vmatpush.bf16.msra.mxu0 %v1467_v5  ;;  %769 = vmatpush.bf16.msra.mxu2 %v1350_v50  ;;  %v1313_v5 = vld [vmem:[%s1839_s16 + $0x60] sm:$0xf]  ;;  %v524_v18 = vmul.f32 %v1857_v42, %v523_v3  ;;  %v1481_v22 = vld [vmem:[%s1839_s16 + $0x44] sm:$0xf]  ;;  %v1298_v23 = vor.u32 %v1483_v21, %v1297_v20  ;;  %v1299_v24 = vld [vmem:[%s1839_s16 + $0x50] sm:$0xf0] }
  0x53   : > { %783 = vmatpush.bf16.msra.mxu3 %v1354_v51  ;;  %v1305_v25 = vld [vmem:[%s1839_s16 + $0x48] sm:$0xf]  ;;  %v1484_v26 = vld [vmem:[%s1839_s16 + $0x54] sm:$0xf0]  ;;  %v1302_v27 = vor.u32 %v1481_v22, %v1299_v24  ;;  %v1307_v30 = vld [vmem:[%s1839_s16 + $0x58] sm:$0xf0] }
  0x54   : > { %v1306_v28 = vor.u32 %v1484_v26, %v1305_v25  ;;  %v525_v31 = vadd.f32 %v1857_v42, %v524_v18  ;;  %v1281_v33 = vld [vmem:[%s1839_s16 + $0x20] sm:$0xf]  ;;  %v1479_v34 = vld [vmem:[%s1839_s16 + $0x2c] sm:$0xf0]  ;;  %v1477_v35 = vld [vmem:[%s1839_s16 + $0x24] sm:$0xf] }
  0x55   : > { %756 = vmatpush.bf16.msra.mxu1 %v1330_v59  ;;  %v1282_v36 = vor.u32 %v1479_v34, %v1281_v33  ;;  %v1283_v37 = vld [vmem:[%s1839_s16 + $0x30] sm:$0xf0]  ;;  %v1289_v38 = vld [vmem:[%s1839_s16 + $0x28] sm:$0xf]  ;;  %v1480_v39 = vld [vmem:[%s1839_s16 + $0x34] sm:$0xf0] }
  0x56   : > { %507 = vmatpush.bf16.msra.mxu0 %v1466_v6  ;;  %770 = vmatpush.bf16.msra.mxu2 %v1334_v63  ;;  %v1487_v6 = vld [vmem:[%s1839_s16 + $0x6c] sm:$0xf0]  ;;  %v1286_v40 = vor.u32 %v1477_v35, %v1283_v37  ;;  %v1478_v43 = vld [vmem:[%s1839_s16 + $0x2c] sm:$0xf]  ;;  %v1291_v44 = vld [vmem:[%s1839_s16 + $0x38] sm:$0xf0]  ;;  %v527_v45 = vsel %vm526_vm0, %v1857_v42, %v525_v31 }
  0x57   : > { %784 = vmatpush.bf16.msra.mxu3 %v1338_v0  ;;  %v1294_v46 = vor.u32 %v1478_v43, %v1291_v44  ;;  %v1265_v47 = vld [vmem:[%s1839_s16] sm:$0xf]  ;;  %v1475_v48 = vld [vmem:[%s1839_s16 + $0xc] sm:$0xf0]  ;;  %v1473_v49 = vld [vmem:[%s1839_s16 + $0x4] sm:$0xf] }
  0x58   : > { %v1266_v51 = vor.u32 %v1475_v48, %v1265_v47  ;;  %v1267_v52 = vld [vmem:[%s1839_s16 + $0x10] sm:$0xf0]  ;;  %v1273_v53 = vld [vmem:[%s1839_s16 + $0x8] sm:$0xf]  ;;  %v1476_v54 = vld [vmem:[%s1839_s16 + $0x14] sm:$0xf0] }
  0x59   : > { %v1270_v56 = vor.u32 %v1473_v49, %v1267_v52  ;;  %v1274_v57 = vor.u32 %v1476_v54, %v1273_v53  ;;  %v1474_v58 = vld [vmem:[%s1839_s16 + $0xc] sm:$0xf]  ;;  %v1275_v42 = vld [vmem:[%s1839_s16 + $0x18] sm:$0xf0]  ;;  %v1511_v22 = vld [vmem:[%s1799_s12 + $0x30] sm:$0xff] }
  0x5a   : > { %508 = vmatpush.bf16.msra.mxu0 %v1465_v7  ;;  %v1485_v7 = vld [vmem:[%s1839_s16 + $0x64] sm:$0xf]  ;;  %v1278_v59 = vor.u32 %v1474_v58, %v1275_v42  ;;  %v1519_v24 = vld [vmem:[%s1799_s12 + $0x70] sm:$0xff]  ;;  %v1518_v26 = vld [vmem:[%s1799_s12 + $0x68] sm:$0xff] }
  0x5b   : > { %v1509_v25 = vld [vmem:[%s1799_s12 + $0x20] sm:$0xff]  ;;  %v1506_v33 = vld [vmem:[%s1799_s12 + $0x8] sm:$0xff]  ;;  %v1515_v35 = vld [vmem:[%s1799_s12 + $0x50] sm:$0xff] }
  0x5c   : > { %v1514_v43 = vld [vmem:[%s1799_s12 + $0x48] sm:$0xff]  ;;  %v1513_v44 = vld [vmem:[%s1799_s12 + $0x40] sm:$0xff] }
  0x5d   : > { %509 = vmatmul.bf16.vlgmr.msra.gmra.mxu0 %v1464_v8  ;;  %v1314_v8 = vor.u32 %v1487_v6, %v1313_v5 }
  0x5e   : > { %795 = vmatpush.bf16.msrb.mxu0 %v1390_v29  ;;  %v1482_v29 = vld [vmem:[%s1839_s16 + $0x4c] sm:$0xf] }
  0x5f   : > { %757 = vmatpush.bf16.msra.mxu1 %v1314_v8  ;;  %v1310_v32 = vor.u32 %v1482_v29, %v1307_v30  ;;  %v1507_v30 = vld [vmem:[%s1799_s12 + $0x10] sm:$0xff] }
  0x62   : > { %796 = vmatpush.bf16.msrb.mxu0 %v1374_v41  ;;  %v1290_v41 = vor.u32 %v1480_v39, %v1289_v38  ;;  %v1505_v38 = vld [vmem:[%s1799_s12] sm:$0xff] }
  0x63   : > { %758 = vmatpush.bf16.msra.mxu1 %v1298_v23  ;;  %v1520_v23 = vld [vmem:[%s1799_s12 + $0x78] sm:$0xff] }
  0x66   : > { %797 = vmatpush.bf16.msrb.mxu0 %v1358_v55 }
  0x67   : > { %759 = vmatpush.bf16.msra.mxu1 %v1282_v36 }
  0x6a   : > { %798 = vmatpush.bf16.msrb.mxu0 %v1342_v4 }
  0x6b   : > { %760 = vmatpush.bf16.msra.mxu1 %v1266_v51 }
  0xda   : > { %v510_v10 = vpop.f32.mrf.mxu0 }
  0xdb   : > { %v1825_v11 = vadd.f32 %v510_v10, %v445_v9  ;;  %v1315_v9 = vld [vmem:[%s1839_s16 + $0x70] sm:$0xf0]  ;;  %v1321_v10 = vld [vmem:[%s1839_s16 + $0x68] sm:$0xf] }
  0xdd   : > { %1055 = vst [vmem:[%s425_s15] sm:$0xff] %v1825_v11  ;;  %v515_v12 = vmul.f32 %v1825_v11, %v1825_v11 }
  0xdf   : > { %517 = vadd.xlane.f32.xlu0 %v515_v12  ;;  %v1488_v12 = vld [vmem:[%s1839_s16 + $0x74] sm:$0xf0] }
  0xe2   : > { %v512_v14 = vpop.f32.mrf.mxu0 }
  0xe3   : > { %v1830_v15 = vadd.f32 %v512_v14, %v446_v13  ;;  %v1318_v13 = vor.u32 %v1485_v7, %v1315_v9  ;;  %v1322_v14 = vor.u32 %v1488_v12, %v1321_v10 }
  0xe5   : > { %1056 = vst [vmem:[%s425_s15 + $0x8] sm:$0xff] %v1830_v15  ;;  %v516_v16 = vmul.f32 %v1830_v15, %v1830_v15  ;;  %771 = vmatpush.bf16.msra.mxu2 %v1318_v13  ;;  %785 = vmatpush.bf16.msra.mxu3 %v1322_v14 }
  0xe7   : > { %519 = vadd.xlane.f32.xlu0 %v516_v16  ;;  %v1486_v16 = vld [vmem:[%s1839_s16 + $0x6c] sm:$0xf] }
  0xe8   : > { %v1326_v19 = vor.u32 %v1486_v16, %v1323_v17  ;;  %v1573_v16 = vld [vmem:[%s1988_s3] ss:$0 sm:$0xff] }
  0xe9   : > { %772 = vmatpush.bf16.msra.mxu2 %v1302_v27  ;;  %786 = vmatpush.bf16.msra.mxu3 %v1306_v28  ;;  %v1508_v27 = vld [vmem:[%s1799_s12 + $0x18] sm:$0xff]  ;;  %v1517_v28 = vld [vmem:[%s1799_s12 + $0x60] sm:$0xff] }
  0xea   : > { %799 = vmatpush.bf16.msrb.mxu0 %v1326_v19 }
  0xed   : > { %773 = vmatpush.bf16.msra.mxu2 %v1286_v40  ;;  %787 = vmatpush.bf16.msra.mxu3 %v1290_v41 }
  0xee   : > { %800 = vmatpush.bf16.msrb.mxu0 %v1310_v32  ;;  %v1516_v32 = vld [vmem:[%s1799_s12 + $0x58] sm:$0xff] }
  0xf1   : > { %774 = vmatpush.bf16.msra.mxu2 %v1270_v56  ;;  %788 = vmatpush.bf16.msra.mxu3 %v1274_v57 }
  0xf2   : > { %801 = vmatpush.bf16.msrb.mxu0 %v1294_v46 }
  0xf5   : > { %1037 = vmatpush.bf16.msrb.mxu2 %v1520_v23 }
  0xf6   : > { %802 = vmatpush.bf16.msrb.mxu0 %v1278_v59 }
  0xf9   : > { %1038 = vmatpush.bf16.msrb.mxu2 %v1519_v24 }
  0xfd   : > { %1039 = vmatpush.bf16.msrb.mxu2 %v1518_v26 }
 0x101   : > { %1040 = vmatpush.bf16.msrb.mxu2 %v1517_v28 }
 0x105   : > { %1041 = vmatpush.bf16.msrb.mxu2 %v1516_v32 }
 0x109   : > { %1042 = vmatpush.bf16.msrb.mxu2 %v1515_v35 }
 0x10d   : > { %1043 = vmatpush.bf16.msrb.mxu2 %v1514_v43 }
 0x111   : > { %1044 = vmatpush.bf16.msrb.mxu2 %v1513_v44 }
 0x152   : > { %v518_v50 = vpop.xlane.xlu0 %517 }
 0x153   : > { %v528_v55 = vmul.f32 %v527_v45, %v518_v50 }
 0x155   : > { %v530_v60 = vadd.f32 1e-06, %v528_v55 }
 0x157   : > { %1576 = vrsqrt.f32 %v530_v60  ;;  %vm538_vm2 = vweird.f32 %v530_v60 }
 0x15a   : > { %v520_v61 = vpop.xlane.xlu0 %519 }
 0x15b   : > { %v529_v62 = vmul.f32 %v527_v45, %v520_v61 }
 0x15d   : > { %v1577_v63 = vpop.eup %1576  ;;  %v531_v0 = vadd.f32 1e-06, %v529_v62 }
 0x15e   : > { %v533_v1 = vmul.f32 %v1577_v63, %v530_v60  ;;  %vm539_vm1 = vweird.f32 %v1577_v63 }
 0x15f   : > { %1578 = vrsqrt.f32 %v531_v0  ;;  %vm540_vm3 = vmor %vm538_vm2, %vm539_vm1  ;;  %vm548_vm5 = vweird.f32 %v531_v0 }
 0x160   : > { %v534_v2 = vmul.f32 %v1577_v63, %v533_v1 }
 0x162   : > { %v535_v3 = vmul.f32 0.5, %v534_v2 }
 0x164   : > { %v536_v4 = vsub.f32 1.5, %v535_v3 }
 0x165   : > { %v1579_v5 = vpop.eup %1578 }
 0x166   : > { %v543_v6 = vmul.f32 %v1579_v5, %v531_v0  ;;  %v537_v7 = vmul.f32 %v1577_v63, %v536_v4  ;;  %vm549_vm4 = vweird.f32 %v1579_v5 }
 0x167   : > { %vm550_vm6 = vmor %vm548_vm5, %vm549_vm4 }
 0x168   : > { %v544_v8 = vmul.f32 %v1579_v5, %v543_v6  ;;  %v541_v10 = vsel %vm540_vm3, %v1577_v63, %v537_v7 }
 0x169   : > { %v552_v14 = vmul.f32 %v541_v10, %v1825_v11  ;;  %v1512_v11 = vld [vmem:[%s1799_s12 + $0x38] sm:$0xff] }
 0x16a   : > { %v545_v9 = vmul.f32 0.5, %v544_v8  ;;  %1023 = vmatpush.bf16.msrb.mxu1 %v1512_v11 }
 0x16b   : > { %v558_v19 = vmul.f32 %v1573_v16, %v552_v14 }
 0x16c   : > { %v546_v12 = vsub.f32 1.5, %v545_v9 }
 0x16e   : > { %v547_v13 = vmul.f32 %v1579_v5, %v546_v12  ;;  %1024 = vmatpush.bf16.msrb.mxu1 %v1511_v22 }
 0x170   : > { %v551_v17 = vsel %vm550_vm6, %v1579_v5, %v547_v13 }
 0x171   : > { %v553_v18 = vmul.f32 %v551_v17, %v1830_v15  ;;  %v1510_v15 = vld [vmem:[%s1799_s12 + $0x28] sm:$0xff] }
 0x172   : > { %1025 = vmatpush.bf16.msrb.mxu1 %v1510_v15 }
 0x173   : > { %v559_v20 = vmul.f32 %v1573_v16, %v553_v18 }
 0x175   : > { %v560_v21 = vpack.c.bf16 %v559_v20, %v558_v19 }
 0x176   : > { %1026 = vmatpush.bf16.msrb.mxu1 %v1509_v25 }
 0x177   : > { %761 = vmatmul.bf16.vlgmr.msra.gmra.mxu1 %v560_v21  ;;  %775 = vmatmul.bf16.vlgmr.msra.gmra.mxu2 %v560_v21 }
 0x178   : > { %789 = vmatmul.bf16.vlgmr.msra.gmra.mxu3 %v560_v21  ;;  %803 = vmatmul.bf16.vlgmr.msrb.gmra.mxu0 %v560_v21 }
 0x17a   : > { %1027 = vmatpush.bf16.msrb.mxu1 %v1508_v27 }
 0x17e   : > { %1028 = vmatpush.bf16.msrb.mxu1 %v1507_v30 }
 0x182   : > { %1029 = vmatpush.bf16.msrb.mxu1 %v1506_v33 }
 0x186   : > { %1030 = vmatpush.bf16.msrb.mxu1 %v1505_v38 }
 0x1f4   : > { %v1926_v29 = vpop.f32.mrf.mxu1 }
 0x1f5   : > { %v1391_v31 = vmul.f32 -1.442695, %v1926_v29  ;;  %v804_v17 = vpop.f32.mrf.mxu0 }
 0x1f7   : > { %1580 = vpow2.f32 %v1391_v31 }
 0x1fa   : > { %v1932_v34 = vpop.f32.mrf.mxu2 }
 0x1fb   : > { %v1392_v36 = vmul.f32 -1.442695, %v1932_v34  ;;  %v790_v2 = vpop.f32.mrf.mxu3 }
 0x1fc   : > { %v1936_v37 = vpop.f32.mrf.mxu1 }
 0x1fd   : > { %v1581_v39 = vpop.eup %1580  ;;  %1582 = vpow2.f32 %v1392_v36  ;;  %v1393_v40 = vmul.f32 -1.442695, %v1936_v37  ;;  %v806_v44 = vpop.f32.mrf.mxu0 }
 0x1fe   : > { %v821_v41 = vadd.f32 1.0, %v1581_v39 }
 0x1ff   : > { %1584 = vpow2.f32 %v1393_v40 }
 0x200   : > { %1586 = vrcp.f32 %v821_v41  ;;  %v836_v59 = vand.u32 2147483648, %v821_v41  ;;  %vm830_vm8 = vweird.f32 %v821_v41  ;;  %v834_v62 = vand.u32 2147483647, %v821_v41 }
 0x202   : > { %v1942_v45 = vpop.f32.mrf.mxu2  ;;  %v837_v4 = vor.u32 1.1754944e-38, %v836_v59  ;;  %vm835_vm11 = vcmp.eq.f32.partialorder %v834_v62, 8.507059e+37 }
 0x203   : > { %v1583_v46 = vpop.eup %1582  ;;  %v1394_v47 = vmul.f32 -1.442695, %v1942_v45  ;;  %v792_v33 = vpop.f32.mrf.mxu3 }
 0x204   : > { %v822_v48 = vadd.f32 1.0, %v1583_v46 }
 0x205   : > { %v1585_v49 = vpop.eup %1584  ;;  %1588 = vpow2.f32 %v1394_v47 }
 0x206   : > { %v1587_v50 = vpop.eup %1586  ;;  %1590 = vrcp.f32 %v822_v48  ;;  %v823_v52 = vadd.f32 1.0, %v1585_v49  ;;  %v849_v5 = vand.u32 2147483647, %v822_v48  ;;  %v851_v8 = vand.u32 2147483648, %v822_v48 }
 0x207   : > { %v826_v51 = vmul.f32 %v1587_v50, %v821_v41  ;;  %vm831_vm7 = vweird.f32 %v1587_v50  ;;  %vm845_vm13 = vweird.f32 %v822_v48 }
 0x208   : > { %1592 = vrcp.f32 %v823_v52  ;;  %vm1945_vm9 = vmor %vm830_vm8, %vm831_vm7  ;;  %v866_v9 = vand.u32 2147483648, %v823_v52  ;;  %v864_v13 = vand.u32 2147483647, %v823_v52  ;;  %vm1955_vm15 = vcmp.eq.f32.partialorder %v849_v5, 8.507059e+37 }
 0x209   : > { %v827_v53 = vsub.f32 1.0, %v826_v51  ;;  %vm860_vm0 = vweird.f32 %v823_v52  ;;  %v852_v11 = vor.u32 1.1754944e-38, %v851_v8 }
 0x20a   : > { %v867_v22 = vor.u32 1.1754944e-38, %v866_v9  ;;  %vm865_vm2 = vcmp.eq.f32.partialorder %v864_v13, 8.507059e+37 }
 0x20b   : > { %v1589_v54 = vpop.eup %1588  ;;  %v828_v55 = vmul.f32 %v1587_v50, %v827_v53 }
 0x20c   : > { %v1591_v56 = vpop.eup %1590  ;;  %v824_v57 = vadd.f32 1.0, %v1589_v54 }
 0x20d   : > { %v841_v58 = vmul.f32 %v1591_v56, %v822_v48  ;;  %v829_v42 = vadd.f32 %v1587_v50, %v828_v55  ;;  %vm846_vm10 = vweird.f32 %v1591_v56 }
 0x20e   : > { %1594 = vrcp.f32 %v824_v57  ;;  %v1593_v60 = vpop.eup %1592  ;;  %vm1951_vm14 = vmor %vm845_vm13, %vm846_vm10  ;;  %v881_v25 = vand.u32 2147483648, %v824_v57  ;;  %v879_v28 = vand.u32 2147483647, %v824_v57  ;;  %vm875_vm4 = vweird.f32 %v824_v57 }
 0x20f   : > { %v842_v61 = vsub.f32 1.0, %v841_v58  ;;  %v856_v63 = vmul.f32 %v1593_v60, %v823_v52  ;;  %v833_v3 = vsel %vm1945_vm9, %v1587_v50, %v829_v42  ;;  %vm861_vm12 = vweird.f32 %v1593_v60 }
 0x210   : > { %v838_v14 = vsel %vm835_vm11, %v837_v4, %v833_v3  ;;  %vm862_vm1 = vmor %vm860_vm0, %vm861_vm12  ;;  %v882_v36 = vor.u32 1.1754944e-38, %v881_v25  ;;  %vm880_vm6 = vcmp.eq.f32.partialorder %v879_v28, 8.507059e+37 }
 0x211   : > { %v843_v1 = vmul.f32 %v1591_v56, %v842_v61  ;;  %v857_v6 = vsub.f32 1.0, %v856_v63  ;;  %v885_v15 = vmul.f32 %v838_v14, %v1926_v29 }
 0x213   : > { %v844_v7 = vadd.f32 %v1591_v56, %v843_v1  ;;  %v858_v12 = vmul.f32 %v1593_v60, %v857_v6  ;;  %v889_v35 = vmul.f32 %v885_v15, %v790_v2 }
 0x214   : > { %v1595_v10 = vpop.eup %1594 }
 0x215   : > { %v871_v16 = vmul.f32 %v1595_v10, %v824_v57  ;;  %v859_v20 = vadd.f32 %v1593_v60, %v858_v12  ;;  %v848_v21 = vsel %vm1951_vm14, %v1591_v56, %v844_v7  ;;  %vm876_vm3 = vweird.f32 %v1595_v10 }
 0x216   : > { %v853_v30 = vsel %vm1955_vm15, %v852_v11, %v848_v21  ;;  %vm877_vm5 = vmor %vm875_vm4, %vm876_vm3 }
 0x217   : > { %v872_v23 = vsub.f32 1.0, %v871_v16  ;;  %v863_v24 = vsel %vm862_vm1, %v1593_v60, %v859_v20  ;;  %v886_v29 = vmul.f32 %v853_v30, %v1932_v34 }
 0x218   : > { %v868_v26 = vsel %vm865_vm2, %v867_v22, %v863_v24 }
 0x219   : > { %v873_v27 = vmul.f32 %v1595_v10, %v872_v23  ;;  %v887_v31 = vmul.f32 %v868_v26, %v1936_v37  ;;  %v890_v46 = vmul.f32 %v886_v29, %v804_v17 }
 0x21b   : > { %v874_v32 = vadd.f32 %v1595_v10, %v873_v27  ;;  %v891_v38 = vmul.f32 %v887_v31, %v792_v33 }
 0x21d   : > { %v878_v39 = vsel %vm877_vm5, %v1595_v10, %v874_v32  ;;  %v893_v41 = vpack.c.bf16 %v891_v38, %v889_v35 }
 0x21e   : > { %v883_v40 = vsel %vm880_vm6, %v882_v36, %v878_v39 }
 0x21f   : > { %v888_v43 = vmul.f32 %v883_v40, %v1942_v45  ;;  %1031 = vmatmul.bf16.vlgmr.msrb.gmra.mxu1 %v893_v41 }
 0x221   : > { %v892_v37 = vmul.f32 %v888_v43, %v806_v44 }
 0x223   : > { %v894_v47 = vpack.c.bf16 %v892_v37, %v890_v46 }
 0x225   : > { %1045 = vmatmul.bf16.vlgmr.msrb.gmra.mxu2 %v894_v47 }
 0x29c   : > { %v1032_v48 = vpop.f32.mrf.mxu1 }
 0x2a4   : > { %v1034_v50 = vpop.f32.mrf.mxu1 }
 0x2a8   : > { %v1046_v49 = vpop.f32.mrf.mxu2 }
 0x2a9   : > { %v1047_v52 = vadd.f32 %v1046_v49, %v1032_v48 }
 0x2b0   : > { %v1048_v51 = vpop.f32.mrf.mxu2 }
 0x2b1   : > { %v1049_v53 = vadd.f32 %v1048_v51, %v1034_v50 }
 0x2b3   : > { %v1524_v34 = vpack.c.bf16 %v1049_v53, %v1047_v52 }
 0x2b5   : > { %1525 = vst [vmem:[%s419_s24] sm:$0xff] %v1524_v34  }
 0x2b6 PF: > { %p27_p9 = scmp.ge.s32.totalorder %s1744_s0, 6   ;;  %s2004_s9 = smov %s1666_s10 }
 0x2b7   : > { %s2005_s10 = smov %s1670_s11  ;;  %s2006_s11 = smov %s1766_s23 }
 0x2b8   : > { %s2007_s12 = smov %s1744_s0  ;;  %29 = sbr.rel (!%p27_p9) target bundleno = 9 (0x9), region = 108 }
 0x2bd   :  { %1096 = vsyncpa [#allocation5], 1 }
 0x2be   :  { %1098 = vsyncpa [#allocation5 + $0x1], 1 }

</bundles_post_ra>
